<compile_context>
chip_gen: v6e
topology: v6e:2x2x1
jax: 0.10.0
libtpu: 0.0.40
codegen_flags: <defaults>
</compile_context>

<pallas_src>
import functools

import jax
import jax.numpy as jnp
from jax import lax
from jax.experimental import pallas as pl
from jax.experimental.pallas import tpu as pltpu


def _round_up(x, m):
    return (x + m - 1) // m * m


# ----------------------------- fused per-batch kernel --------------------------------


def _fused_attention_pooling_kernel(
    x_ph_ref,    # [1, 4, L+PADR, C] f32  phase-decomposed input, zero right-pad
    wd_ref,      # [16, C, C]        bf16 down-conv taps, [kh*4+kw, c_in, c_out]
    bd_ref,      # [1, C]            f32
    wfgh_ref,    # [3, C, Cm]        bf16 1x1 conv weights (f, g, h), transposed
    bfgh_ref,    # [3, 1, Cm]        f32
    km_ref,      # [1, L]            f32  additive key mask (-1e30 off pooled anchors)
    qm_ref,      # [L, 1]            f32  multiplicative query-valid mask (0/1)
    wup_ref,     # [16, Cm, C]       bf16 gamma-folded ConvTranspose phase/tap weights
    bup_ref,     # [1, C]            f32  gamma-folded bias
    out_ref,     # [1, 4, L, C]      f32  phase-decomposed output
    fh_ref,      # scratch [2, L+PADR, Cm] f32 (zero-padded pooling buffer)
    opad_ref,    # scratch [PADL+L, Cm]    f32 (left-zero-padded o for the up-sample taps)
    *, W2, L, PADL,
):
    # Scratch pads feed masked / boundary positions -> must be finite zeros every step.
    fh_ref[...] = jnp.zeros_like(fh_ref)
    opad_ref[...] = jnp.zeros_like(opad_ref)

    # ---- down-sample conv (k=4, s=2) as 16 tap GEMMs over the phase-decomposed input.
    # Tap (kh, kw) reads phase (kh%2, kw%2) shifted by (kh//2)*W2 + kw//2 sublanes; reads
    # that run past a row only land in positions that are masked/cropped downstream.
    acc = None
    for kh in range(4):
        for kw in range(4):
            p = (kh % 2) * 2 + (kw % 2)
            d = (kh // 2) * W2 + (kw // 2)
            slab = x_ph_ref[0, p, d:d + L, :].astype(jnp.bfloat16)       # [L, C]
            term = jnp.dot(slab, wd_ref[kh * 4 + kw],
                           preferred_element_type=jnp.float32)
            acc = term if acc is None else acc + term
    xd = (acc + bd_ref[...]).astype(jnp.bfloat16)                        # [L, C]

    # ---- 1x1 convs f / g / h (bf16 MXU, f32 accumulation) ----
    fT = jnp.dot(xd, wfgh_ref[0], preferred_element_type=jnp.float32) + bfgh_ref[0]
    gT = jnp.dot(xd, wfgh_ref[1], preferred_element_type=jnp.float32) + bfgh_ref[1]
    hT = jnp.dot(xd, wfgh_ref[2], preferred_element_type=jnp.float32) + bfgh_ref[2]

    # ---- fused MaxPool2d(2) on f and h: shifted-slab max via the zero-padded scratch.
    # Pooled values are correct at the 2x2 window anchors; everything else is masked.
    fh_ref[0, 0:L, :] = fT
    fh_ref[1, 0:L, :] = hT

    def pooled(idx):
        m = fh_ref[idx, 0:L, :]
        for d in (1, W2, W2 + 1):
            m = jnp.maximum(m, fh_ref[idx, d:d + L, :])
        return m.astype(jnp.bfloat16)                                    # [L, Cm]

    fpT = pooled(0)
    hpT = pooled(1)

    # ---- attention: s = g^T f_pool ; beta = softmax_k(s) ; o = beta h_pool^T ----
    s = lax.dot_general(gT.astype(jnp.bfloat16), fpT,
                        (((1,), (1,)), ((), ())),
                        preferred_element_type=jnp.float32)              # [Lq, Lk]
    s = s + km_ref[...]                         # -1e30 off the valid pooled anchors
    s = s - jnp.max(s, axis=-1, keepdims=True)
    e = jnp.exp(s)
    beta = e * pl.reciprocal(jnp.sum(e, axis=-1, keepdims=True), approx=True)
    o = jnp.dot(beta.astype(jnp.bfloat16), hpT,
                preferred_element_type=jnp.float32)                      # [Lq, Cm]
    o = o * qm_ref[...]                         # zero the padded / invalid query rows

    # ---- ConvTranspose(k=4, s=2) via sub-pixel phases + gamma(folded) + bias + residual.
    opad_ref[PADL:PADL + L, :] = o              # left zero-pad supplies the boundary zeros
    for a in range(2):
        for b in range(2):
            up = None
            for dkh in range(2):
                for dkw in range(2):
                    d = dkh * W2 + dkw
                    t = ((a * 2 + b) * 2 + dkh) * 2 + dkw
                    slab = opad_ref[PADL - d:PADL - d + L, :].astype(jnp.bfloat16)
                    term = jnp.dot(slab, wup_ref[t],
                                   preferred_element_type=jnp.float32)   # [L, C]
                    up = term if up is None else up + term
            ph = a * 2 + b
            out_ref[0, ph] = up + bup_ref[...] + x_ph_ref[0, ph, 0:L, :]


# ----------------------------- wrapper -----------------------------------------------


def attention_with_pooling_forward(x, params, *, ksize=4, down_scale=2, pool_scale=2):
    assert ksize == 4 and down_scale == 2 and pool_scale == 2, (
        "Pallas kernel is specialized to the module defaults (ksize=4, scales=2).")
    N, C, H, W = x.shape
    assert C % 16 == 0 and H % 2 == 0 and W % 2 == 0 and H >= 4 and W >= 4
    Cm = C // 16
    H2, W2 = H // 2, W // 2
    L = H2 * W2                      # padded (phase-grid) spatial extent
    Hd, Wd = H2 - 1, W2 - 1          # valid down-sampled extent
    Hp, Wp = Hd // 2, Wd // 2        # max-pooled extent
    PADR = W2 + 1                    # right zero-pad: shifted tap/pool reads stay in range
    PADL = _round_up(W2 + 1, 8)      # left zero-pad (sublane aligned) for the up-sample

    # ---- layout glue: phase-decompose x (single transpose + pad of O(|x|) data) --------
    x_ph = x.astype(jnp.float32).reshape(N, C, H2, 2, W2, 2)
    x_ph = x_ph.transpose(0, 3, 5, 2, 4, 1).reshape(N, 4, L, C)
    x_ph = jnp.pad(x_ph, ((0, 0), (0, 0), (0, PADR), (0, 0)))            # [N, 4, L+PADR, C]

    # ---- weights (all MXU operands pre-cast to bf16; biases stay f32) ------------------
    wd_t = params["w_down"].transpose(2, 3, 1, 0).reshape(16, C, C).astype(jnp.bfloat16)
    b_down = params["b_down"].reshape(1, C).astype(jnp.float32)

    w_fgh = jnp.stack([params["w_f"].reshape(Cm, C).T,
                       params["w_g"].reshape(Cm, C).T,
                       params["w_h"].reshape(Cm, C).T]).astype(jnp.bfloat16)   # [3, C, Cm]
    b_fgh = jnp.stack([params["b_f"], params["b_g"],
                       params["b_h"]]).reshape(3, 1, Cm).astype(jnp.float32)

    # gamma * (conv_transpose(o) + b_up) + x  ->  fold gamma into the weights and bias.
    gamma = params["gamma"].astype(jnp.float32)[0]
    wup_list = []
    for a in range(2):
        for b in range(2):
            for dkh in range(2):
                for dkw in range(2):
                    wup_list.append(params["w_up"][:, :, a + 2 * dkh, b + 2 * dkw])
    wup_t = (gamma * jnp.stack(wup_list)).astype(jnp.bfloat16)                 # [16, Cm, C]
    b_up_g = (gamma * params["b_up"]).reshape(1, C).astype(jnp.float32)

    # ---- masks over the padded (H2 x W2) grid ------------------------------------------
    ii = jnp.arange(L) // W2
    jj = jnp.arange(L) % W2
    key_valid = (ii % 2 == 0) & (jj % 2 == 0) & (ii // 2 < Hp) & (jj // 2 < Wp)
    key_mask = jnp.where(key_valid, 0.0, -1e30).reshape(1, L).astype(jnp.float32)
    q_mask = ((ii < Hd) & (jj < Wd)).astype(jnp.float32).reshape(L, 1)

    kernel = functools.partial(_fused_attention_pooling_kernel,
                               W2=W2, L=L, PADL=PADL)

    out_ph = pl.pallas_call(
        kernel,
        out_shape=jax.ShapeDtypeStruct((N, 4, L, C), jnp.float32),
        grid=(N,),
        in_specs=[
            pl.BlockSpec((1, 4, L + PADR, C), lambda n: (n, 0, 0, 0)),
            pl.BlockSpec((16, C, C), lambda n: (0, 0, 0)),
            pl.BlockSpec((1, C), lambda n: (0, 0)),
            pl.BlockSpec((3, C, Cm), lambda n: (0, 0, 0)),
            pl.BlockSpec((3, 1, Cm), lambda n: (0, 0, 0)),
            pl.BlockSpec((1, L), lambda n: (0, 0)),
            pl.BlockSpec((L, 1), lambda n: (0, 0)),
            pl.BlockSpec((16, Cm, C), lambda n: (0, 0, 0)),
            pl.BlockSpec((1, C), lambda n: (0, 0)),
        ],
        out_specs=pl.BlockSpec((1, 4, L, C), lambda n: (n, 0, 0, 0)),
        scratch_shapes=[
            pltpu.VMEM((2, L + PADR, Cm), jnp.float32),
            pltpu.VMEM((PADL + L, Cm), jnp.float32),
        ],
        compiler_params=pltpu.CompilerParams(
            dimension_semantics=("parallel",),
            vmem_limit_bytes=32 * 1024 * 1024),
    )(x_ph, wd_t, b_down, w_fgh, b_fgh, key_mask, q_mask, wup_t, b_up_g)

    # ---- recombine the 4 output phases back to NCHW (single output-sized transpose) ----
    out = out_ph.reshape(N, 2, 2, H2, W2, C).transpose(0, 5, 3, 1, 4, 2)
    return out.reshape(N, C, H, W)


# ----------------------------- pure-JAX reference ------------------------------------


def reference_forward(x, params, *, ksize=4, down_scale=2, pool_scale=2):
    N, C, H, W = x.shape
    Cm = C // 16
    xd = lax.conv_general_dilated(x, params["w_down"], (down_scale, down_scale), "VALID",
                                  dimension_numbers=("NCHW", "OIHW", "NCHW"))
    xd = xd + params["b_down"][None, :, None, None]
    Hd, Wd = xd.shape[2], xd.shape[3]

    def conv1x1(t, w, b):
        return jnp.einsum("ncij,kc->nkij", t, w.reshape(Cm, C)) + b[None, :, None, None]

    f = conv1x1(xd, params["w_f"], params["b_f"])
    g = conv1x1(xd, params["w_g"], params["b_g"])
    h = conv1x1(xd, params["w_h"], params["b_h"])
    pool = lambda t: lax.reduce_window(t, -jnp.inf, lax.max,
                                       (1, 1, pool_scale, pool_scale),
                                       (1, 1, pool_scale, pool_scale), "VALID")
    f = pool(f)
    h = pool(h)
    gf = g.reshape(N, Cm, Hd * Wd)
    ff = f.reshape(N, Cm, -1)
    hf = h.reshape(N, Cm, -1)
    s = jnp.einsum("ncp,ncq->npq", gf, ff)
    beta = jax.nn.softmax(s, axis=-1)
    o = jnp.einsum("npq,ncq->npc", beta, hf)
    o = o.transpose(0, 2, 1).reshape(N, Cm, Hd, Wd)
    # ConvTranspose2d(Cm, C, ksize, stride=down_scale), padding=0 -- direct definition.
    up = jnp.zeros((N, C, H, W), jnp.float32)
    for kh in range(ksize):
        for kw in range(ksize):
            contrib = jnp.einsum("ncij,ck->nkij", o, params["w_up"][:, :, kh, kw])
            up = up.at[:, :, kh:kh + down_scale * (Hd - 1) + 1:down_scale,
                             kw:kw + down_scale * (Wd - 1) + 1:down_scale].add(contrib)
    up = up + params["b_up"][None, :, None, None]
    return params["gamma"] * up + x


# ----------------------------- demo / self-check -------------------------------------


if __name__ == "__main__":
    # channels must be >= 16 (the module uses channels // 16 inner channels).
    N, C, H, W = 2, 32, 16, 16
    ksize, down_scale, pool_scale = 4, 2, 2
    Cm = C // 16

    key = jax.random.PRNGKey(0)
    ks = jax.random.split(key, 11)
    x = jax.random.normal(ks[0], (N, C, H, W), jnp.float32)
    params = {
        "w_down": jax.random.normal(ks[1], (C, C, ksize, ksize), jnp.float32)
                  / (C * ksize * ksize) ** 0.5,
        "b_down": jax.random.normal(ks[2], (C,), jnp.float32) * 0.1,
        "w_f": jax.random.normal(ks[3], (Cm, C, 1, 1), jnp.float32) / C ** 0.5,
        "b_f": jax.random.normal(ks[4], (Cm,), jnp.float32) * 0.1,
        "w_g": jax.random.normal(ks[5], (Cm, C, 1, 1), jnp.float32) / C ** 0.5,
        "b_g": jax.random.normal(ks[6], (Cm,), jnp.float32) * 0.1,
        "w_h": jax.random.normal(ks[7], (Cm, C, 1, 1), jnp.float32) / C ** 0.5,
        "b_h": jax.random.normal(ks[8], (Cm,), jnp.float32) * 0.1,
        "w_up": jax.random.normal(ks[9], (Cm, C, ksize, ksize), jnp.float32)
                / (Cm * ksize * ksize) ** 0.5,
        "b_up": jax.random.normal(ks[10], (C,), jnp.float32) * 0.1,
        # nn.Parameter(torch.zeros(1)) in the module; use a non-zero "trained" value so
        # the attention branch actually contributes to the checked output.
        "gamma": jnp.full((1,), 0.8, jnp.float32),
    }

    fwd = jax.jit(functools.partial(attention_with_pooling_forward,
                                    ksize=ksize, down_scale=down_scale,
                                    pool_scale=pool_scale))
    y = jax.block_until_ready(fwd(x, params))

    ref = reference_forward(x, params, ksize=ksize, down_scale=down_scale,
                            pool_scale=pool_scale)

    assert y.shape == (N, C, H, W), y.shape
    # All MXU operands are bf16 (f32 accumulation) -> a few e-2 abs error at O(1) scales.
    assert jnp.allclose(y, ref, atol=7.5e-2, rtol=5e-2), float(jnp.max(jnp.abs(y - ref)))
    print("KERNEL_OK")
</pallas_src>

<mosaic_0001>
module attributes {stable_mosaic.version = 11 : i64} {
  func.func @_fused_attention_pooling_kernel(%arg0: i32, %arg1: memref<1x4x73x32xf32, #tpu.memory_space<vmem>>, %arg2: memref<16x32x32xbf16, #tpu.memory_space<vmem>>, %arg3: memref<1x32xf32, #tpu.memory_space<vmem>>, %arg4: memref<3x32x2xbf16, #tpu.memory_space<vmem>>, %arg5: memref<3x1x2xf32, #tpu.memory_space<vmem>>, %arg6: memref<1x64xf32, #tpu.memory_space<vmem>>, %arg7: memref<64x1xf32, #tpu.memory_space<vmem>>, %arg8: memref<16x2x32xbf16, #tpu.memory_space<vmem>>, %arg9: memref<1x32xf32, #tpu.memory_space<vmem>>, %arg10: memref<1x4x64x32xf32, #tpu.memory_space<vmem>>, %arg11: memref<2x73x2xf32, #tpu.memory_space<vmem>>, %arg12: memref<80x2xf32, #tpu.memory_space<vmem>>) attributes {dimension_semantics = [#tpu.dimension_semantics<parallel>], iteration_bounds = array<i64: 2>, scalar_prefetch = 0 : i64, scratch_operands = 2 : i64, tpu.core_type = #tpu.core_type<tc>, window_params = [{transform_indices = @transform_0, window_bounds = array<i64: 1, 4, 73, 32>}, {pipeline_mode = #tpu.pipeline_mode<synchronous>, transform_indices = @transform_1, window_bounds = array<i64: 16, 32, 32>}, {pipeline_mode = #tpu.pipeline_mode<synchronous>, transform_indices = @transform_2, window_bounds = array<i64: 1, 32>}, {pipeline_mode = #tpu.pipeline_mode<synchronous>, transform_indices = @transform_3, window_bounds = array<i64: 3, 32, 2>}, {pipeline_mode = #tpu.pipeline_mode<synchronous>, transform_indices = @transform_4, window_bounds = array<i64: 3, 1, 2>}, {pipeline_mode = #tpu.pipeline_mode<synchronous>, transform_indices = @transform_5, window_bounds = array<i64: 1, 64>}, {pipeline_mode = #tpu.pipeline_mode<synchronous>, transform_indices = @transform_6, window_bounds = array<i64: 64, 1>}, {pipeline_mode = #tpu.pipeline_mode<synchronous>, transform_indices = @transform_7, window_bounds = array<i64: 16, 2, 32>}, {pipeline_mode = #tpu.pipeline_mode<synchronous>, transform_indices = @transform_8, window_bounds = array<i64: 1, 32>}, {transform_indices = @transform_9, window_bounds = array<i64: 1, 4, 64, 32>}]} {
    %cst = arith.constant 0.000000e+00 : f32
    %0 = vector.broadcast %cst : f32 to vector<2x73x2xf32>
    %c0 = arith.constant 0 : index
    %c0_0 = arith.constant 0 : index
    %c0_1 = arith.constant 0 : index
    %1 = vector.load %arg11[%c0, %c0_0, %c0_1] : memref<2x73x2xf32, #tpu.memory_space<vmem>>, vector<2x73x2xf32>
    tpu.vector_store %arg11[%c0, %c0_0, %c0_1], %0 {strides = array<i32>} : memref<2x73x2xf32, #tpu.memory_space<vmem>>, vector<2x73x2xf32>,
    %cst_2 = arith.constant 0.000000e+00 : f32
    %2 = vector.broadcast %cst_2 : f32 to vector<80x2xf32>
    %c0_3 = arith.constant 0 : index
    %c0_4 = arith.constant 0 : index
    %3 = vector.load %arg12[%c0_3, %c0_4] : memref<80x2xf32, #tpu.memory_space<vmem>>, vector<80x2xf32>
    tpu.vector_store %arg12[%c0_3, %c0_4], %2 {strides = array<i32>} : memref<80x2xf32, #tpu.memory_space<vmem>>, vector<80x2xf32>,
    %c0_5 = arith.constant 0 : index
    %c0_6 = arith.constant 0 : index
    %c0_7 = arith.constant 0 : index
    %c0_8 = arith.constant 0 : index
    %4 = vector.load %arg1[%c0_5, %c0_6, %c0_7, %c0_8] : memref<1x4x73x32xf32, #tpu.memory_space<vmem>>, vector<1x1x64x32xf32>
    %5 = vector.shape_cast %4 : vector<1x1x64x32xf32> to vector<64x32xf32>
    %6 = arith.truncf %5 : vector<64x32xf32> to vector<64x32xbf16>
    %c0_9 = arith.constant 0 : index
    %c0_10 = arith.constant 0 : index
    %c0_11 = arith.constant 0 : index
    %7 = vector.load %arg2[%c0_9, %c0_10, %c0_11] : memref<16x32x32xbf16, #tpu.memory_space<vmem>>, vector<1x32x32xbf16>
    %8 = vector.shape_cast %7 : vector<1x32x32xbf16> to vector<32x32xbf16>
    %cst_12 = arith.constant dense<0.000000e+00> : vector<64x32xf32>
    %9 = tpu.matmul %6, %8, %cst_12 {dimension_numbers = #tpu.dot_dimension_numbers<[1], [0], [0], [1], [0, 0, 1, 1], [], []>} : vector<64x32xbf16>, vector<32x32xbf16>, vector<64x32xf32> -> vector<64x32xf32>
    %c0_13 = arith.constant 0 : index
    %c1 = arith.constant 1 : index
    %c0_14 = arith.constant 0 : index
    %c0_15 = arith.constant 0 : index
    %10 = vector.load %arg1[%c0_13, %c1, %c0_14, %c0_15] : memref<1x4x73x32xf32, #tpu.memory_space<vmem>>, vector<1x1x64x32xf32>
    %11 = vector.shape_cast %10 : vector<1x1x64x32xf32> to vector<64x32xf32>
    %12 = arith.truncf %11 : vector<64x32xf32> to vector<64x32xbf16>
    %c1_16 = arith.constant 1 : index
    %c0_17 = arith.constant 0 : index
    %c0_18 = arith.constant 0 : index
    %13 = vector.load %arg2[%c1_16, %c0_17, %c0_18] : memref<16x32x32xbf16, #tpu.memory_space<vmem>>, vector<1x32x32xbf16>
    %14 = vector.shape_cast %13 : vector<1x32x32xbf16> to vector<32x32xbf16>
    %cst_19 = arith.constant dense<0.000000e+00> : vector<64x32xf32>
    %15 = tpu.matmul %12, %14, %cst_19 {dimension_numbers = #tpu.dot_dimension_numbers<[1], [0], [0], [1], [0, 0, 1, 1], [], []>} : vector<64x32xbf16>, vector<32x32xbf16>, vector<64x32xf32> -> vector<64x32xf32>
    %16 = arith.addf %9, %15 : vector<64x32xf32>
    %c0_20 = arith.constant 0 : index
    %c0_21 = arith.constant 0 : index
    %c1_22 = arith.constant 1 : index
    %c0_23 = arith.constant 0 : index
    %17 = vector.load %arg1[%c0_20, %c0_21, %c1_22, %c0_23] : memref<1x4x73x32xf32, #tpu.memory_space<vmem>>, vector<1x1x64x32xf32>
    %18 = vector.shape_cast %17 : vector<1x1x64x32xf32> to vector<64x32xf32>
    %19 = arith.truncf %18 : vector<64x32xf32> to vector<64x32xbf16>
    %c2 = arith.constant 2 : index
    %c0_24 = arith.constant 0 : index
    %c0_25 = arith.constant 0 : index
    %20 = vector.load %arg2[%c2, %c0_24, %c0_25] : memref<16x32x32xbf16, #tpu.memory_space<vmem>>, vector<1x32x32xbf16>
    %21 = vector.shape_cast %20 : vector<1x32x32xbf16> to vector<32x32xbf16>
    %cst_26 = arith.constant dense<0.000000e+00> : vector<64x32xf32>
    %22 = tpu.matmul %19, %21, %cst_26 {dimension_numbers = #tpu.dot_dimension_numbers<[1], [0], [0], [1], [0, 0, 1, 1], [], []>} : vector<64x32xbf16>, vector<32x32xbf16>, vector<64x32xf32> -> vector<64x32xf32>
    %23 = arith.addf %16, %22 : vector<64x32xf32>
    %c0_27 = arith.constant 0 : index
    %c1_28 = arith.constant 1 : index
    %c1_29 = arith.constant 1 : index
    %c0_30 = arith.constant 0 : index
    %24 = vector.load %arg1[%c0_27, %c1_28, %c1_29, %c0_30] : memref<1x4x73x32xf32, #tpu.memory_space<vmem>>, vector<1x1x64x32xf32>
    %25 = vector.shape_cast %24 : vector<1x1x64x32xf32> to vector<64x32xf32>
    %26 = arith.truncf %25 : vector<64x32xf32> to vector<64x32xbf16>
    %c3 = arith.constant 3 : index
    %c0_31 = arith.constant 0 : index
    %c0_32 = arith.constant 0 : index
    %27 = vector.load %arg2[%c3, %c0_31, %c0_32] : memref<16x32x32xbf16, #tpu.memory_space<vmem>>, vector<1x32x32xbf16>
    %28 = vector.shape_cast %27 : vector<1x32x32xbf16> to vector<32x32xbf16>
    %cst_33 = arith.constant dense<0.000000e+00> : vector<64x32xf32>
    %29 = tpu.matmul %26, %28, %cst_33 {dimension_numbers = #tpu.dot_dimension_numbers<[1], [0], [0], [1], [0, 0, 1, 1], [], []>} : vector<64x32xbf16>, vector<32x32xbf16>, vector<64x32xf32> -> vector<64x32xf32>
    %30 = arith.addf %23, %29 : vector<64x32xf32>
    %c0_34 = arith.constant 0 : index
    %c2_35 = arith.constant 2 : index
    %c0_36 = arith.constant 0 : index
    %c0_37 = arith.constant 0 : index
    %31 = vector.load %arg1[%c0_34, %c2_35, %c0_36, %c0_37] : memref<1x4x73x32xf32, #tpu.memory_space<vmem>>, vector<1x1x64x32xf32>
    %32 = vector.shape_cast %31 : vector<1x1x64x32xf32> to vector<64x32xf32>
    %33 = arith.truncf %32 : vector<64x32xf32> to vector<64x32xbf16>
    %c4 = arith.constant 4 : index
    %c0_38 = arith.constant 0 : index
    %c0_39 = arith.constant 0 : index
    %34 = vector.load %arg2[%c4, %c0_38, %c0_39] : memref<16x32x32xbf16, #tpu.memory_space<vmem>>, vector<1x32x32xbf16>
    %35 = vector.shape_cast %34 : vector<1x32x32xbf16> to vector<32x32xbf16>
    %cst_40 = arith.constant dense<0.000000e+00> : vector<64x32xf32>
    %36 = tpu.matmul %33, %35, %cst_40 {dimension_numbers = #tpu.dot_dimension_numbers<[1], [0], [0], [1], [0, 0, 1, 1], [], []>} : vector<64x32xbf16>, vector<32x32xbf16>, vector<64x32xf32> -> vector<64x32xf32>
    %37 = arith.addf %30, %36 : vector<64x32xf32>
    %c0_41 = arith.constant 0 : index
    %c3_42 = arith.constant 3 : index
    %c0_43 = arith.constant 0 : index
    %c0_44 = arith.constant 0 : index
    %38 = vector.load %arg1[%c0_41, %c3_42, %c0_43, %c0_44] : memref<1x4x73x32xf32, #tpu.memory_space<vmem>>, vector<1x1x64x32xf32>
    %39 = vector.shape_cast %38 : vector<1x1x64x32xf32> to vector<64x32xf32>
    %40 = arith.truncf %39 : vector<64x32xf32> to vector<64x32xbf16>
    %c5 = arith.constant 5 : index
    %c0_45 = arith.constant 0 : index
    %c0_46 = arith.constant 0 : index
    %41 = vector.load %arg2[%c5, %c0_45, %c0_46] : memref<16x32x32xbf16, #tpu.memory_space<vmem>>, vector<1x32x32xbf16>
    %42 = vector.shape_cast %41 : vector<1x32x32xbf16> to vector<32x32xbf16>
    %cst_47 = arith.constant dense<0.000000e+00> : vector<64x32xf32>
    %43 = tpu.matmul %40, %42, %cst_47 {dimension_numbers = #tpu.dot_dimension_numbers<[1], [0], [0], [1], [0, 0, 1, 1], [], []>} : vector<64x32xbf16>, vector<32x32xbf16>, vector<64x32xf32> -> vector<64x32xf32>
    %44 = arith.addf %37, %43 : vector<64x32xf32>
    %c0_48 = arith.constant 0 : index
    %c2_49 = arith.constant 2 : index
    %c1_50 = arith.constant 1 : index
    %c0_51 = arith.constant 0 : index
    %45 = vector.load %arg1[%c0_48, %c2_49, %c1_50, %c0_51] : memref<1x4x73x32xf32, #tpu.memory_space<vmem>>, vector<1x1x64x32xf32>
    %46 = vector.shape_cast %45 : vector<1x1x64x32xf32> to vector<64x32xf32>
    %47 = arith.truncf %46 : vector<64x32xf32> to vector<64x32xbf16>
    %c6 = arith.constant 6 : index
    %c0_52 = arith.constant 0 : index
    %c0_53 = arith.constant 0 : index
    %48 = vector.load %arg2[%c6, %c0_52, %c0_53] : memref<16x32x32xbf16, #tpu.memory_space<vmem>>, vector<1x32x32xbf16>
    %49 = vector.shape_cast %48 : vector<1x32x32xbf16> to vector<32x32xbf16>
    %cst_54 = arith.constant dense<0.000000e+00> : vector<64x32xf32>
    %50 = tpu.matmul %47, %49, %cst_54 {dimension_numbers = #tpu.dot_dimension_numbers<[1], [0], [0], [1], [0, 0, 1, 1], [], []>} : vector<64x32xbf16>, vector<32x32xbf16>, vector<64x32xf32> -> vector<64x32xf32>
    %51 = arith.addf %44, %50 : vector<64x32xf32>
    %c0_55 = arith.constant 0 : index
    %c3_56 = arith.constant 3 : index
    %c1_57 = arith.constant 1 : index
    %c0_58 = arith.constant 0 : index
    %52 = vector.load %arg1[%c0_55, %c3_56, %c1_57, %c0_58] : memref<1x4x73x32xf32, #tpu.memory_space<vmem>>, vector<1x1x64x32xf32>
    %53 = vector.shape_cast %52 : vector<1x1x64x32xf32> to vector<64x32xf32>
    %54 = arith.truncf %53 : vector<64x32xf32> to vector<64x32xbf16>
    %c7 = arith.constant 7 : index
    %c0_59 = arith.constant 0 : index
    %c0_60 = arith.constant 0 : index
    %55 = vector.load %arg2[%c7, %c0_59, %c0_60] : memref<16x32x32xbf16, #tpu.memory_space<vmem>>, vector<1x32x32xbf16>
    %56 = vector.shape_cast %55 : vector<1x32x32xbf16> to vector<32x32xbf16>
    %cst_61 = arith.constant dense<0.000000e+00> : vector<64x32xf32>
    %57 = tpu.matmul %54, %56, %cst_61 {dimension_numbers = #tpu.dot_dimension_numbers<[1], [0], [0], [1], [0, 0, 1, 1], [], []>} : vector<64x32xbf16>, vector<32x32xbf16>, vector<64x32xf32> -> vector<64x32xf32>
    %58 = arith.addf %51, %57 : vector<64x32xf32>
    %c0_62 = arith.constant 0 : index
    %c0_63 = arith.constant 0 : index
    %c8 = arith.constant 8 : index
    %c0_64 = arith.constant 0 : index
    %59 = vector.load %arg1[%c0_62, %c0_63, %c8, %c0_64] : memref<1x4x73x32xf32, #tpu.memory_space<vmem>>, vector<1x1x64x32xf32>
    %60 = vector.shape_cast %59 : vector<1x1x64x32xf32> to vector<64x32xf32>
    %61 = arith.truncf %60 : vector<64x32xf32> to vector<64x32xbf16>
    %c8_65 = arith.constant 8 : index
    %c0_66 = arith.constant 0 : index
    %c0_67 = arith.constant 0 : index
    %62 = vector.load %arg2[%c8_65, %c0_66, %c0_67] : memref<16x32x32xbf16, #tpu.memory_space<vmem>>, vector<1x32x32xbf16>
    %63 = vector.shape_cast %62 : vector<1x32x32xbf16> to vector<32x32xbf16>
    %cst_68 = arith.constant dense<0.000000e+00> : vector<64x32xf32>
    %64 = tpu.matmul %61, %63, %cst_68 {dimension_numbers = #tpu.dot_dimension_numbers<[1], [0], [0], [1], [0, 0, 1, 1], [], []>} : vector<64x32xbf16>, vector<32x32xbf16>, vector<64x32xf32> -> vector<64x32xf32>
    %65 = arith.addf %58, %64 : vector<64x32xf32>
    %c0_69 = arith.constant 0 : index
    %c1_70 = arith.constant 1 : index
    %c8_71 = arith.constant 8 : index
    %c0_72 = arith.constant 0 : index
    %66 = vector.load %arg1[%c0_69, %c1_70, %c8_71, %c0_72] : memref<1x4x73x32xf32, #tpu.memory_space<vmem>>, vector<1x1x64x32xf32>
    %67 = vector.shape_cast %66 : vector<1x1x64x32xf32> to vector<64x32xf32>
    %68 = arith.truncf %67 : vector<64x32xf32> to vector<64x32xbf16>
    %c9 = arith.constant 9 : index
    %c0_73 = arith.constant 0 : index
    %c0_74 = arith.constant 0 : index
    %69 = vector.load %arg2[%c9, %c0_73, %c0_74] : memref<16x32x32xbf16, #tpu.memory_space<vmem>>, vector<1x32x32xbf16>
    %70 = vector.shape_cast %69 : vector<1x32x32xbf16> to vector<32x32xbf16>
    %cst_75 = arith.constant dense<0.000000e+00> : vector<64x32xf32>
    %71 = tpu.matmul %68, %70, %cst_75 {dimension_numbers = #tpu.dot_dimension_numbers<[1], [0], [0], [1], [0, 0, 1, 1], [], []>} : vector<64x32xbf16>, vector<32x32xbf16>, vector<64x32xf32> -> vector<64x32xf32>
    %72 = arith.addf %65, %71 : vector<64x32xf32>
    %c0_76 = arith.constant 0 : index
    %c0_77 = arith.constant 0 : index
    %c9_78 = arith.constant 9 : index
    %c0_79 = arith.constant 0 : index
    %73 = vector.load %arg1[%c0_76, %c0_77, %c9_78, %c0_79] : memref<1x4x73x32xf32, #tpu.memory_space<vmem>>, vector<1x1x64x32xf32>
    %74 = vector.shape_cast %73 : vector<1x1x64x32xf32> to vector<64x32xf32>
    %75 = arith.truncf %74 : vector<64x32xf32> to vector<64x32xbf16>
    %c10 = arith.constant 10 : index
    %c0_80 = arith.constant 0 : index
    %c0_81 = arith.constant 0 : index
    %76 = vector.load %arg2[%c10, %c0_80, %c0_81] : memref<16x32x32xbf16, #tpu.memory_space<vmem>>, vector<1x32x32xbf16>
    %77 = vector.shape_cast %76 : vector<1x32x32xbf16> to vector<32x32xbf16>
    %cst_82 = arith.constant dense<0.000000e+00> : vector<64x32xf32>
    %78 = tpu.matmul %75, %77, %cst_82 {dimension_numbers = #tpu.dot_dimension_numbers<[1], [0], [0], [1], [0, 0, 1, 1], [], []>} : vector<64x32xbf16>, vector<32x32xbf16>, vector<64x32xf32> -> vector<64x32xf32>
    %79 = arith.addf %72, %78 : vector<64x32xf32>
    %c0_83 = arith.constant 0 : index
    %c1_84 = arith.constant 1 : index
    %c9_85 = arith.constant 9 : index
    %c0_86 = arith.constant 0 : index
    %80 = vector.load %arg1[%c0_83, %c1_84, %c9_85, %c0_86] : memref<1x4x73x32xf32, #tpu.memory_space<vmem>>, vector<1x1x64x32xf32>
    %81 = vector.shape_cast %80 : vector<1x1x64x32xf32> to vector<64x32xf32>
    %82 = arith.truncf %81 : vector<64x32xf32> to vector<64x32xbf16>
    %c11 = arith.constant 11 : index
    %c0_87 = arith.constant 0 : index
    %c0_88 = arith.constant 0 : index
    %83 = vector.load %arg2[%c11, %c0_87, %c0_88] : memref<16x32x32xbf16, #tpu.memory_space<vmem>>, vector<1x32x32xbf16>
    %84 = vector.shape_cast %83 : vector<1x32x32xbf16> to vector<32x32xbf16>
    %cst_89 = arith.constant dense<0.000000e+00> : vector<64x32xf32>
    %85 = tpu.matmul %82, %84, %cst_89 {dimension_numbers = #tpu.dot_dimension_numbers<[1], [0], [0], [1], [0, 0, 1, 1], [], []>} : vector<64x32xbf16>, vector<32x32xbf16>, vector<64x32xf32> -> vector<64x32xf32>
    %86 = arith.addf %79, %85 : vector<64x32xf32>
    %c0_90 = arith.constant 0 : index
    %c2_91 = arith.constant 2 : index
    %c8_92 = arith.constant 8 : index
    %c0_93 = arith.constant 0 : index
    %87 = vector.load %arg1[%c0_90, %c2_91, %c8_92, %c0_93] : memref<1x4x73x32xf32, #tpu.memory_space<vmem>>, vector<1x1x64x32xf32>
    %88 = vector.shape_cast %87 : vector<1x1x64x32xf32> to vector<64x32xf32>
    %89 = arith.truncf %88 : vector<64x32xf32> to vector<64x32xbf16>
    %c12 = arith.constant 12 : index
    %c0_94 = arith.constant 0 : index
    %c0_95 = arith.constant 0 : index
    %90 = vector.load %arg2[%c12, %c0_94, %c0_95] : memref<16x32x32xbf16, #tpu.memory_space<vmem>>, vector<1x32x32xbf16>
    %91 = vector.shape_cast %90 : vector<1x32x32xbf16> to vector<32x32xbf16>
    %cst_96 = arith.constant dense<0.000000e+00> : vector<64x32xf32>
    %92 = tpu.matmul %89, %91, %cst_96 {dimension_numbers = #tpu.dot_dimension_numbers<[1], [0], [0], [1], [0, 0, 1, 1], [], []>} : vector<64x32xbf16>, vector<32x32xbf16>, vector<64x32xf32> -> vector<64x32xf32>
    %93 = arith.addf %86, %92 : vector<64x32xf32>
    %c0_97 = arith.constant 0 : index
    %c3_98 = arith.constant 3 : index
    %c8_99 = arith.constant 8 : index
    %c0_100 = arith.constant 0 : index
    %94 = vector.load %arg1[%c0_97, %c3_98, %c8_99, %c0_100] : memref<1x4x73x32xf32, #tpu.memory_space<vmem>>, vector<1x1x64x32xf32>
    %95 = vector.shape_cast %94 : vector<1x1x64x32xf32> to vector<64x32xf32>
    %96 = arith.truncf %95 : vector<64x32xf32> to vector<64x32xbf16>
    %c13 = arith.constant 13 : index
    %c0_101 = arith.constant 0 : index
    %c0_102 = arith.constant 0 : index
    %97 = vector.load %arg2[%c13, %c0_101, %c0_102] : memref<16x32x32xbf16, #tpu.memory_space<vmem>>, vector<1x32x32xbf16>
    %98 = vector.shape_cast %97 : vector<1x32x32xbf16> to vector<32x32xbf16>
    %cst_103 = arith.constant dense<0.000000e+00> : vector<64x32xf32>
    %99 = tpu.matmul %96, %98, %cst_103 {dimension_numbers = #tpu.dot_dimension_numbers<[1], [0], [0], [1], [0, 0, 1, 1], [], []>} : vector<64x32xbf16>, vector<32x32xbf16>, vector<64x32xf32> -> vector<64x32xf32>
    %100 = arith.addf %93, %99 : vector<64x32xf32>
    %c0_104 = arith.constant 0 : index
    %c2_105 = arith.constant 2 : index
    %c9_106 = arith.constant 9 : index
    %c0_107 = arith.constant 0 : index
    %101 = vector.load %arg1[%c0_104, %c2_105, %c9_106, %c0_107] : memref<1x4x73x32xf32, #tpu.memory_space<vmem>>, vector<1x1x64x32xf32>
    %102 = vector.shape_cast %101 : vector<1x1x64x32xf32> to vector<64x32xf32>
    %103 = arith.truncf %102 : vector<64x32xf32> to vector<64x32xbf16>
    %c14 = arith.constant 14 : index
    %c0_108 = arith.constant 0 : index
    %c0_109 = arith.constant 0 : index
    %104 = vector.load %arg2[%c14, %c0_108, %c0_109] : memref<16x32x32xbf16, #tpu.memory_space<vmem>>, vector<1x32x32xbf16>
    %105 = vector.shape_cast %104 : vector<1x32x32xbf16> to vector<32x32xbf16>
    %cst_110 = arith.constant dense<0.000000e+00> : vector<64x32xf32>
    %106 = tpu.matmul %103, %105, %cst_110 {dimension_numbers = #tpu.dot_dimension_numbers<[1], [0], [0], [1], [0, 0, 1, 1], [], []>} : vector<64x32xbf16>, vector<32x32xbf16>, vector<64x32xf32> -> vector<64x32xf32>
    %107 = arith.addf %100, %106 : vector<64x32xf32>
    %c0_111 = arith.constant 0 : index
    %c3_112 = arith.constant 3 : index
    %c9_113 = arith.constant 9 : index
    %c0_114 = arith.constant 0 : index
    %108 = vector.load %arg1[%c0_111, %c3_112, %c9_113, %c0_114] : memref<1x4x73x32xf32, #tpu.memory_space<vmem>>, vector<1x1x64x32xf32>
    %109 = vector.shape_cast %108 : vector<1x1x64x32xf32> to vector<64x32xf32>
    %110 = arith.truncf %109 : vector<64x32xf32> to vector<64x32xbf16>
    %c15 = arith.constant 15 : index
    %c0_115 = arith.constant 0 : index
    %c0_116 = arith.constant 0 : index
    %111 = vector.load %arg2[%c15, %c0_115, %c0_116] : memref<16x32x32xbf16, #tpu.memory_space<vmem>>, vector<1x32x32xbf16>
    %112 = vector.shape_cast %111 : vector<1x32x32xbf16> to vector<32x32xbf16>
    %cst_117 = arith.constant dense<0.000000e+00> : vector<64x32xf32>
    %113 = tpu.matmul %110, %112, %cst_117 {dimension_numbers = #tpu.dot_dimension_numbers<[1], [0], [0], [1], [0, 0, 1, 1], [], []>} : vector<64x32xbf16>, vector<32x32xbf16>, vector<64x32xf32> -> vector<64x32xf32>
    %114 = arith.addf %107, %113 : vector<64x32xf32>
    %c0_118 = arith.constant 0 : index
    %c0_119 = arith.constant 0 : index
    %115 = vector.load %arg3[%c0_118, %c0_119] : memref<1x32xf32, #tpu.memory_space<vmem>>, vector<1x32xf32>
    %116 = vector.broadcast %115 : vector<1x32xf32> to vector<64x32xf32>
    %117 = arith.addf %114, %116 : vector<64x32xf32>
    %118 = arith.truncf %117 : vector<64x32xf32> to vector<64x32xbf16>
    %c0_120 = arith.constant 0 : index
    %c0_121 = arith.constant 0 : index
    %c0_122 = arith.constant 0 : index
    %119 = vector.load %arg4[%c0_120, %c0_121, %c0_122] : memref<3x32x2xbf16, #tpu.memory_space<vmem>>, vector<1x32x2xbf16>
    %120 = vector.shape_cast %119 : vector<1x32x2xbf16> to vector<32x2xbf16>
    %cst_123 = arith.constant dense<0.000000e+00> : vector<64x2xf32>
    %121 = tpu.matmul %118, %120, %cst_123 {dimension_numbers = #tpu.dot_dimension_numbers<[1], [0], [0], [1], [0, 0, 1, 1], [], []>} : vector<64x32xbf16>, vector<32x2xbf16>, vector<64x2xf32> -> vector<64x2xf32>
    %c0_124 = arith.constant 0 : index
    %c0_125 = arith.constant 0 : index
    %c0_126 = arith.constant 0 : index
    %122 = vector.load %arg5[%c0_124, %c0_125, %c0_126] : memref<3x1x2xf32, #tpu.memory_space<vmem>>, vector<1x1x2xf32>
    %123 = vector.shape_cast %122 : vector<1x1x2xf32> to vector<1x2xf32>
    %124 = vector.broadcast %123 : vector<1x2xf32> to vector<64x2xf32>
    %125 = arith.addf %121, %124 : vector<64x2xf32>
    %c1_127 = arith.constant 1 : index
    %c0_128 = arith.constant 0 : index
    %c0_129 = arith.constant 0 : index
    %126 = vector.load %arg4[%c1_127, %c0_128, %c0_129] : memref<3x32x2xbf16, #tpu.memory_space<vmem>>, vector<1x32x2xbf16>
    %127 = vector.shape_cast %126 : vector<1x32x2xbf16> to vector<32x2xbf16>
    %cst_130 = arith.constant dense<0.000000e+00> : vector<64x2xf32>
    %128 = tpu.matmul %118, %127, %cst_130 {dimension_numbers = #tpu.dot_dimension_numbers<[1], [0], [0], [1], [0, 0, 1, 1], [], []>} : vector<64x32xbf16>, vector<32x2xbf16>, vector<64x2xf32> -> vector<64x2xf32>
    %c1_131 = arith.constant 1 : index
    %c0_132 = arith.constant 0 : index
    %c0_133 = arith.constant 0 : index
    %129 = vector.load %arg5[%c1_131, %c0_132, %c0_133] : memref<3x1x2xf32, #tpu.memory_space<vmem>>, vector<1x1x2xf32>
    %130 = vector.shape_cast %129 : vector<1x1x2xf32> to vector<1x2xf32>
    %131 = vector.broadcast %130 : vector<1x2xf32> to vector<64x2xf32>
    %132 = arith.addf %128, %131 : vector<64x2xf32>
    %c2_134 = arith.constant 2 : index
    %c0_135 = arith.constant 0 : index
    %c0_136 = arith.constant 0 : index
    %133 = vector.load %arg4[%c2_134, %c0_135, %c0_136] : memref<3x32x2xbf16, #tpu.memory_space<vmem>>, vector<1x32x2xbf16>
    %134 = vector.shape_cast %133 : vector<1x32x2xbf16> to vector<32x2xbf16>
    %cst_137 = arith.constant dense<0.000000e+00> : vector<64x2xf32>
    %135 = tpu.matmul %118, %134, %cst_137 {dimension_numbers = #tpu.dot_dimension_numbers<[1], [0], [0], [1], [0, 0, 1, 1], [], []>} : vector<64x32xbf16>, vector<32x2xbf16>, vector<64x2xf32> -> vector<64x2xf32>
    %c2_138 = arith.constant 2 : index
    %c0_139 = arith.constant 0 : index
    %c0_140 = arith.constant 0 : index
    %136 = vector.load %arg5[%c2_138, %c0_139, %c0_140] : memref<3x1x2xf32, #tpu.memory_space<vmem>>, vector<1x1x2xf32>
    %137 = vector.shape_cast %136 : vector<1x1x2xf32> to vector<1x2xf32>
    %138 = vector.broadcast %137 : vector<1x2xf32> to vector<64x2xf32>
    %139 = arith.addf %135, %138 : vector<64x2xf32>
    %c0_141 = arith.constant 0 : index
    %c0_142 = arith.constant 0 : index
    %c0_143 = arith.constant 0 : index
    %140 = vector.load %arg11[%c0_141, %c0_142, %c0_143] : memref<2x73x2xf32, #tpu.memory_space<vmem>>, vector<1x64x2xf32>
    %141 = vector.shape_cast %140 : vector<1x64x2xf32> to vector<64x2xf32>
    %142 = vector.shape_cast %125 : vector<64x2xf32> to vector<1x64x2xf32>
    tpu.vector_store %arg11[%c0_141, %c0_142, %c0_143], %142 {strides = array<i32>} : memref<2x73x2xf32, #tpu.memory_space<vmem>>, vector<1x64x2xf32>,
    %c1_144 = arith.constant 1 : index
    %c0_145 = arith.constant 0 : index
    %c0_146 = arith.constant 0 : index
    %143 = vector.load %arg11[%c1_144, %c0_145, %c0_146] : memref<2x73x2xf32, #tpu.memory_space<vmem>>, vector<1x64x2xf32>
    %144 = vector.shape_cast %143 : vector<1x64x2xf32> to vector<64x2xf32>
    %145 = vector.shape_cast %139 : vector<64x2xf32> to vector<1x64x2xf32>
    tpu.vector_store %arg11[%c1_144, %c0_145, %c0_146], %145 {strides = array<i32>} : memref<2x73x2xf32, #tpu.memory_space<vmem>>, vector<1x64x2xf32>,
    %c0_147 = arith.constant 0 : index
    %c0_148 = arith.constant 0 : index
    %c0_149 = arith.constant 0 : index
    %146 = vector.load %arg11[%c0_147, %c0_148, %c0_149] : memref<2x73x2xf32, #tpu.memory_space<vmem>>, vector<1x64x2xf32>
    %147 = vector.shape_cast %146 : vector<1x64x2xf32> to vector<64x2xf32>
    %c0_150 = arith.constant 0 : index
    %c1_151 = arith.constant 1 : index
    %c0_152 = arith.constant 0 : index
    %148 = vector.load %arg11[%c0_150, %c1_151, %c0_152] : memref<2x73x2xf32, #tpu.memory_space<vmem>>, vector<1x64x2xf32>
    %149 = vector.shape_cast %148 : vector<1x64x2xf32> to vector<64x2xf32>
    %150 = arith.maximumf %147, %149 : vector<64x2xf32>
    %c0_153 = arith.constant 0 : index
    %c8_154 = arith.constant 8 : index
    %c0_155 = arith.constant 0 : index
    %151 = vector.load %arg11[%c0_153, %c8_154, %c0_155] : memref<2x73x2xf32, #tpu.memory_space<vmem>>, vector<1x64x2xf32>
    %152 = vector.shape_cast %151 : vector<1x64x2xf32> to vector<64x2xf32>
    %153 = arith.maximumf %150, %152 : vector<64x2xf32>
    %c0_156 = arith.constant 0 : index
    %c9_157 = arith.constant 9 : index
    %c0_158 = arith.constant 0 : index
    %154 = vector.load %arg11[%c0_156, %c9_157, %c0_158] : memref<2x73x2xf32, #tpu.memory_space<vmem>>, vector<1x64x2xf32>
    %155 = vector.shape_cast %154 : vector<1x64x2xf32> to vector<64x2xf32>
    %156 = arith.maximumf %153, %155 : vector<64x2xf32>
    %157 = arith.truncf %156 : vector<64x2xf32> to vector<64x2xbf16>
    %c1_159 = arith.constant 1 : index
    %c0_160 = arith.constant 0 : index
    %c0_161 = arith.constant 0 : index
    %158 = vector.load %arg11[%c1_159, %c0_160, %c0_161] : memref<2x73x2xf32, #tpu.memory_space<vmem>>, vector<1x64x2xf32>
    %159 = vector.shape_cast %158 : vector<1x64x2xf32> to vector<64x2xf32>
    %c1_162 = arith.constant 1 : index
    %c1_163 = arith.constant 1 : index
    %c0_164 = arith.constant 0 : index
    %160 = vector.load %arg11[%c1_162, %c1_163, %c0_164] : memref<2x73x2xf32, #tpu.memory_space<vmem>>, vector<1x64x2xf32>
    %161 = vector.shape_cast %160 : vector<1x64x2xf32> to vector<64x2xf32>
    %162 = arith.maximumf %159, %161 : vector<64x2xf32>
    %c1_165 = arith.constant 1 : index
    %c8_166 = arith.constant 8 : index
    %c0_167 = arith.constant 0 : index
    %163 = vector.load %arg11[%c1_165, %c8_166, %c0_167] : memref<2x73x2xf32, #tpu.memory_space<vmem>>, vector<1x64x2xf32>
    %164 = vector.shape_cast %163 : vector<1x64x2xf32> to vector<64x2xf32>
    %165 = arith.maximumf %162, %164 : vector<64x2xf32>
    %c1_168 = arith.constant 1 : index
    %c9_169 = arith.constant 9 : index
    %c0_170 = arith.constant 0 : index
    %166 = vector.load %arg11[%c1_168, %c9_169, %c0_170] : memref<2x73x2xf32, #tpu.memory_space<vmem>>, vector<1x64x2xf32>
    %167 = vector.shape_cast %166 : vector<1x64x2xf32> to vector<64x2xf32>
    %168 = arith.maximumf %165, %167 : vector<64x2xf32>
    %169 = arith.truncf %168 : vector<64x2xf32> to vector<64x2xbf16>
    %170 = arith.truncf %132 : vector<64x2xf32> to vector<64x2xbf16>
    %cst_171 = arith.constant dense<0.000000e+00> : vector<64x64xf32>
    %171 = tpu.matmul %170, %157, %cst_171 {dimension_numbers = #tpu.dot_dimension_numbers<[1], [1], [0], [0], [0, 0, 1, 0], [], []>} : vector<64x2xbf16>, vector<64x2xbf16>, vector<64x64xf32> -> vector<64x64xf32>
    %c0_172 = arith.constant 0 : index
    %c0_173 = arith.constant 0 : index
    %172 = vector.load %arg6[%c0_172, %c0_173] : memref<1x64xf32, #tpu.memory_space<vmem>>, vector<1x64xf32>
    %173 = vector.broadcast %172 : vector<1x64xf32> to vector<64x64xf32>
    %174 = arith.addf %171, %173 : vector<64x64xf32>
    %cst_174 = arith.constant dense<0xFF800000> : vector<64xf32>
    %175 = vector.multi_reduction <maximumf>, %174, %cst_174 [1] : vector<64x64xf32> to vector<64xf32>
    %176 = vector.shape_cast %175 : vector<64xf32> to vector<64x1xf32>
    %177 = vector.broadcast %176 : vector<64x1xf32> to vector<64x64xf32>
    %178 = arith.subf %174, %177 : vector<64x64xf32>
    %179 = math.exp %178 : vector<64x64xf32>
    %cst_175 = arith.constant dense<0.000000e+00> : vector<64xf32>
    %180 = vector.multi_reduction <add>, %179, %cst_175 [1] : vector<64x64xf32> to vector<64xf32>
    %181 = vector.shape_cast %180 : vector<64xf32> to vector<64x1xf32>
    %182 = tpu.reciprocal %181 {approx = true} : vector<64x1xf32> -> vector<64x1xf32>
    %183 = vector.broadcast %182 : vector<64x1xf32> to vector<64x64xf32>
    %184 = arith.mulf %179, %183 : vector<64x64xf32>
    %185 = arith.truncf %184 : vector<64x64xf32> to vector<64x64xbf16>
    %cst_176 = arith.constant dense<0.000000e+00> : vector<64x2xf32>
    %186 = tpu.matmul %185, %169, %cst_176 {dimension_numbers = #tpu.dot_dimension_numbers<[1], [0], [0], [1], [0, 0, 1, 1], [], []>} : vector<64x64xbf16>, vector<64x2xbf16>, vector<64x2xf32> -> vector<64x2xf32>
    %c0_177 = arith.constant 0 : index
    %c0_178 = arith.constant 0 : index
    %187 = vector.load %arg7[%c0_177, %c0_178] : memref<64x1xf32, #tpu.memory_space<vmem>>, vector<64x1xf32>
    %188 = vector.broadcast %187 : vector<64x1xf32> to vector<64x2xf32>
    %189 = arith.mulf %186, %188 : vector<64x2xf32>
    %c16 = arith.constant 16 : index
    %c0_179 = arith.constant 0 : index
    %190 = vector.load %arg12[%c16, %c0_179] : memref<80x2xf32, #tpu.memory_space<vmem>>, vector<64x2xf32>
    tpu.vector_store %arg12[%c16, %c0_179], %189 {strides = array<i32>} : memref<80x2xf32, #tpu.memory_space<vmem>>, vector<64x2xf32>,
    %c16_180 = arith.constant 16 : index
    %c0_181 = arith.constant 0 : index
    %191 = vector.load %arg12[%c16_180, %c0_181] : memref<80x2xf32, #tpu.memory_space<vmem>>, vector<64x2xf32>
    %192 = arith.truncf %191 : vector<64x2xf32> to vector<64x2xbf16>
    %c0_182 = arith.constant 0 : index
    %c0_183 = arith.constant 0 : index
    %c0_184 = arith.constant 0 : index
    %193 = vector.load %arg8[%c0_182, %c0_183, %c0_184] : memref<16x2x32xbf16, #tpu.memory_space<vmem>>, vector<1x2x32xbf16>
    %194 = vector.shape_cast %193 : vector<1x2x32xbf16> to vector<2x32xbf16>
    %cst_185 = arith.constant dense<0.000000e+00> : vector<64x32xf32>
    %195 = tpu.matmul %192, %194, %cst_185 {dimension_numbers = #tpu.dot_dimension_numbers<[1], [0], [0], [1], [0, 0, 1, 1], [], []>} : vector<64x2xbf16>, vector<2x32xbf16>, vector<64x32xf32> -> vector<64x32xf32>
    %c15_186 = arith.constant 15 : index
    %c0_187 = arith.constant 0 : index
    %196 = vector.load %arg12[%c15_186, %c0_187] : memref<80x2xf32, #tpu.memory_space<vmem>>, vector<64x2xf32>
    %197 = arith.truncf %196 : vector<64x2xf32> to vector<64x2xbf16>
    %c1_188 = arith.constant 1 : index
    %c0_189 = arith.constant 0 : index
    %c0_190 = arith.constant 0 : index
    %198 = vector.load %arg8[%c1_188, %c0_189, %c0_190] : memref<16x2x32xbf16, #tpu.memory_space<vmem>>, vector<1x2x32xbf16>
    %199 = vector.shape_cast %198 : vector<1x2x32xbf16> to vector<2x32xbf16>
    %cst_191 = arith.constant dense<0.000000e+00> : vector<64x32xf32>
    %200 = tpu.matmul %197, %199, %cst_191 {dimension_numbers = #tpu.dot_dimension_numbers<[1], [0], [0], [1], [0, 0, 1, 1], [], []>} : vector<64x2xbf16>, vector<2x32xbf16>, vector<64x32xf32> -> vector<64x32xf32>
    %201 = arith.addf %195, %200 : vector<64x32xf32>
    %c8_192 = arith.constant 8 : index
    %c0_193 = arith.constant 0 : index
    %202 = vector.load %arg12[%c8_192, %c0_193] : memref<80x2xf32, #tpu.memory_space<vmem>>, vector<64x2xf32>
    %203 = arith.truncf %202 : vector<64x2xf32> to vector<64x2xbf16>
    %c2_194 = arith.constant 2 : index
    %c0_195 = arith.constant 0 : index
    %c0_196 = arith.constant 0 : index
    %204 = vector.load %arg8[%c2_194, %c0_195, %c0_196] : memref<16x2x32xbf16, #tpu.memory_space<vmem>>, vector<1x2x32xbf16>
    %205 = vector.shape_cast %204 : vector<1x2x32xbf16> to vector<2x32xbf16>
    %cst_197 = arith.constant dense<0.000000e+00> : vector<64x32xf32>
    %206 = tpu.matmul %203, %205, %cst_197 {dimension_numbers = #tpu.dot_dimension_numbers<[1], [0], [0], [1], [0, 0, 1, 1], [], []>} : vector<64x2xbf16>, vector<2x32xbf16>, vector<64x32xf32> -> vector<64x32xf32>
    %207 = arith.addf %201, %206 : vector<64x32xf32>
    %c7_198 = arith.constant 7 : index
    %c0_199 = arith.constant 0 : index
    %208 = vector.load %arg12[%c7_198, %c0_199] : memref<80x2xf32, #tpu.memory_space<vmem>>, vector<64x2xf32>
    %209 = arith.truncf %208 : vector<64x2xf32> to vector<64x2xbf16>
    %c3_200 = arith.constant 3 : index
    %c0_201 = arith.constant 0 : index
    %c0_202 = arith.constant 0 : index
    %210 = vector.load %arg8[%c3_200, %c0_201, %c0_202] : memref<16x2x32xbf16, #tpu.memory_space<vmem>>, vector<1x2x32xbf16>
    %211 = vector.shape_cast %210 : vector<1x2x32xbf16> to vector<2x32xbf16>
    %cst_203 = arith.constant dense<0.000000e+00> : vector<64x32xf32>
    %212 = tpu.matmul %209, %211, %cst_203 {dimension_numbers = #tpu.dot_dimension_numbers<[1], [0], [0], [1], [0, 0, 1, 1], [], []>} : vector<64x2xbf16>, vector<2x32xbf16>, vector<64x32xf32> -> vector<64x32xf32>
    %213 = arith.addf %207, %212 : vector<64x32xf32>
    %c0_204 = arith.constant 0 : index
    %c0_205 = arith.constant 0 : index
    %214 = vector.load %arg9[%c0_204, %c0_205] : memref<1x32xf32, #tpu.memory_space<vmem>>, vector<1x32xf32>
    %215 = vector.broadcast %214 : vector<1x32xf32> to vector<64x32xf32>
    %216 = arith.addf %213, %215 : vector<64x32xf32>
    %c0_206 = arith.constant 0 : index
    %c0_207 = arith.constant 0 : index
    %c0_208 = arith.constant 0 : index
    %c0_209 = arith.constant 0 : index
    %217 = vector.load %arg1[%c0_206, %c0_207, %c0_208, %c0_209] : memref<1x4x73x32xf32, #tpu.memory_space<vmem>>, vector<1x1x64x32xf32>
    %218 = vector.shape_cast %217 : vector<1x1x64x32xf32> to vector<64x32xf32>
    %219 = arith.addf %216, %218 : vector<64x32xf32>
    %c0_210 = arith.constant 0 : index
    %c0_211 = arith.constant 0 : index
    %c0_212 = arith.constant 0 : index
    %c0_213 = arith.constant 0 : index
    %220 = vector.load %arg10[%c0_210, %c0_211, %c0_212, %c0_213] : memref<1x4x64x32xf32, #tpu.memory_space<vmem>>, vector<1x1x64x32xf32>
    %221 = vector.shape_cast %220 : vector<1x1x64x32xf32> to vector<64x32xf32>
    %222 = vector.shape_cast %219 : vector<64x32xf32> to vector<1x1x64x32xf32>
    tpu.vector_store %arg10[%c0_210, %c0_211, %c0_212, %c0_213], %222 {strides = array<i32>} : memref<1x4x64x32xf32, #tpu.memory_space<vmem>>, vector<1x1x64x32xf32>,
    %c16_214 = arith.constant 16 : index
    %c0_215 = arith.constant 0 : index
    %223 = vector.load %arg12[%c16_214, %c0_215] : memref<80x2xf32, #tpu.memory_space<vmem>>, vector<64x2xf32>
    %224 = arith.truncf %223 : vector<64x2xf32> to vector<64x2xbf16>
    %c4_216 = arith.constant 4 : index
    %c0_217 = arith.constant 0 : index
    %c0_218 = arith.constant 0 : index
    %225 = vector.load %arg8[%c4_216, %c0_217, %c0_218] : memref<16x2x32xbf16, #tpu.memory_space<vmem>>, vector<1x2x32xbf16>
    %226 = vector.shape_cast %225 : vector<1x2x32xbf16> to vector<2x32xbf16>
    %cst_219 = arith.constant dense<0.000000e+00> : vector<64x32xf32>
    %227 = tpu.matmul %224, %226, %cst_219 {dimension_numbers = #tpu.dot_dimension_numbers<[1], [0], [0], [1], [0, 0, 1, 1], [], []>} : vector<64x2xbf16>, vector<2x32xbf16>, vector<64x32xf32> -> vector<64x32xf32>
    %c15_220 = arith.constant 15 : index
    %c0_221 = arith.constant 0 : index
    %228 = vector.load %arg12[%c15_220, %c0_221] : memref<80x2xf32, #tpu.memory_space<vmem>>, vector<64x2xf32>
    %229 = arith.truncf %228 : vector<64x2xf32> to vector<64x2xbf16>
    %c5_222 = arith.constant 5 : index
    %c0_223 = arith.constant 0 : index
    %c0_224 = arith.constant 0 : index
    %230 = vector.load %arg8[%c5_222, %c0_223, %c0_224] : memref<16x2x32xbf16, #tpu.memory_space<vmem>>, vector<1x2x32xbf16>
    %231 = vector.shape_cast %230 : vector<1x2x32xbf16> to vector<2x32xbf16>
    %cst_225 = arith.constant dense<0.000000e+00> : vector<64x32xf32>
    %232 = tpu.matmul %229, %231, %cst_225 {dimension_numbers = #tpu.dot_dimension_numbers<[1], [0], [0], [1], [0, 0, 1, 1], [], []>} : vector<64x2xbf16>, vector<2x32xbf16>, vector<64x32xf32> -> vector<64x32xf32>
    %233 = arith.addf %227, %232 : vector<64x32xf32>
    %c8_226 = arith.constant 8 : index
    %c0_227 = arith.constant 0 : index
    %234 = vector.load %arg12[%c8_226, %c0_227] : memref<80x2xf32, #tpu.memory_space<vmem>>, vector<64x2xf32>
    %235 = arith.truncf %234 : vector<64x2xf32> to vector<64x2xbf16>
    %c6_228 = arith.constant 6 : index
    %c0_229 = arith.constant 0 : index
    %c0_230 = arith.constant 0 : index
    %236 = vector.load %arg8[%c6_228, %c0_229, %c0_230] : memref<16x2x32xbf16, #tpu.memory_space<vmem>>, vector<1x2x32xbf16>
    %237 = vector.shape_cast %236 : vector<1x2x32xbf16> to vector<2x32xbf16>
    %cst_231 = arith.constant dense<0.000000e+00> : vector<64x32xf32>
    %238 = tpu.matmul %235, %237, %cst_231 {dimension_numbers = #tpu.dot_dimension_numbers<[1], [0], [0], [1], [0, 0, 1, 1], [], []>} : vector<64x2xbf16>, vector<2x32xbf16>, vector<64x32xf32> -> vector<64x32xf32>
    %239 = arith.addf %233, %238 : vector<64x32xf32>
    %c7_232 = arith.constant 7 : index
    %c0_233 = arith.constant 0 : index
    %240 = vector.load %arg12[%c7_232, %c0_233] : memref<80x2xf32, #tpu.memory_space<vmem>>, vector<64x2xf32>
    %241 = arith.truncf %240 : vector<64x2xf32> to vector<64x2xbf16>
    %c7_234 = arith.constant 7 : index
    %c0_235 = arith.constant 0 : index
    %c0_236 = arith.constant 0 : index
    %242 = vector.load %arg8[%c7_234, %c0_235, %c0_236] : memref<16x2x32xbf16, #tpu.memory_space<vmem>>, vector<1x2x32xbf16>
    %243 = vector.shape_cast %242 : vector<1x2x32xbf16> to vector<2x32xbf16>
    %cst_237 = arith.constant dense<0.000000e+00> : vector<64x32xf32>
    %244 = tpu.matmul %241, %243, %cst_237 {dimension_numbers = #tpu.dot_dimension_numbers<[1], [0], [0], [1], [0, 0, 1, 1], [], []>} : vector<64x2xbf16>, vector<2x32xbf16>, vector<64x32xf32> -> vector<64x32xf32>
    %245 = arith.addf %239, %244 : vector<64x32xf32>
    %c0_238 = arith.constant 0 : index
    %c0_239 = arith.constant 0 : index
    %246 = vector.load %arg9[%c0_238, %c0_239] : memref<1x32xf32, #tpu.memory_space<vmem>>, vector<1x32xf32>
    %247 = vector.broadcast %246 : vector<1x32xf32> to vector<64x32xf32>
    %248 = arith.addf %245, %247 : vector<64x32xf32>
    %c0_240 = arith.constant 0 : index
    %c1_241 = arith.constant 1 : index
    %c0_242 = arith.constant 0 : index
    %c0_243 = arith.constant 0 : index
    %249 = vector.load %arg1[%c0_240, %c1_241, %c0_242, %c0_243] : memref<1x4x73x32xf32, #tpu.memory_space<vmem>>, vector<1x1x64x32xf32>
    %250 = vector.shape_cast %249 : vector<1x1x64x32xf32> to vector<64x32xf32>
    %251 = arith.addf %248, %250 : vector<64x32xf32>
    %c0_244 = arith.constant 0 : index
    %c1_245 = arith.constant 1 : index
    %c0_246 = arith.constant 0 : index
    %c0_247 = arith.constant 0 : index
    %252 = vector.load %arg10[%c0_244, %c1_245, %c0_246, %c0_247] : memref<1x4x64x32xf32, #tpu.memory_space<vmem>>, vector<1x1x64x32xf32>
    %253 = vector.shape_cast %252 : vector<1x1x64x32xf32> to vector<64x32xf32>
    %254 = vector.shape_cast %251 : vector<64x32xf32> to vector<1x1x64x32xf32>
    tpu.vector_store %arg10[%c0_244, %c1_245, %c0_246, %c0_247], %254 {strides = array<i32>} : memref<1x4x64x32xf32, #tpu.memory_space<vmem>>, vector<1x1x64x32xf32>,
    %c16_248 = arith.constant 16 : index
    %c0_249 = arith.constant 0 : index
    %255 = vector.load %arg12[%c16_248, %c0_249] : memref<80x2xf32, #tpu.memory_space<vmem>>, vector<64x2xf32>
    %256 = arith.truncf %255 : vector<64x2xf32> to vector<64x2xbf16>
    %c8_250 = arith.constant 8 : index
    %c0_251 = arith.constant 0 : index
    %c0_252 = arith.constant 0 : index
    %257 = vector.load %arg8[%c8_250, %c0_251, %c0_252] : memref<16x2x32xbf16, #tpu.memory_space<vmem>>, vector<1x2x32xbf16>
    %258 = vector.shape_cast %257 : vector<1x2x32xbf16> to vector<2x32xbf16>
    %cst_253 = arith.constant dense<0.000000e+00> : vector<64x32xf32>
    %259 = tpu.matmul %256, %258, %cst_253 {dimension_numbers = #tpu.dot_dimension_numbers<[1], [0], [0], [1], [0, 0, 1, 1], [], []>} : vector<64x2xbf16>, vector<2x32xbf16>, vector<64x32xf32> -> vector<64x32xf32>
    %c15_254 = arith.constant 15 : index
    %c0_255 = arith.constant 0 : index
    %260 = vector.load %arg12[%c15_254, %c0_255] : memref<80x2xf32, #tpu.memory_space<vmem>>, vector<64x2xf32>
    %261 = arith.truncf %260 : vector<64x2xf32> to vector<64x2xbf16>
    %c9_256 = arith.constant 9 : index
    %c0_257 = arith.constant 0 : index
    %c0_258 = arith.constant 0 : index
    %262 = vector.load %arg8[%c9_256, %c0_257, %c0_258] : memref<16x2x32xbf16, #tpu.memory_space<vmem>>, vector<1x2x32xbf16>
    %263 = vector.shape_cast %262 : vector<1x2x32xbf16> to vector<2x32xbf16>
    %cst_259 = arith.constant dense<0.000000e+00> : vector<64x32xf32>
    %264 = tpu.matmul %261, %263, %cst_259 {dimension_numbers = #tpu.dot_dimension_numbers<[1], [0], [0], [1], [0, 0, 1, 1], [], []>} : vector<64x2xbf16>, vector<2x32xbf16>, vector<64x32xf32> -> vector<64x32xf32>
    %265 = arith.addf %259, %264 : vector<64x32xf32>
    %c8_260 = arith.constant 8 : index
    %c0_261 = arith.constant 0 : index
    %266 = vector.load %arg12[%c8_260, %c0_261] : memref<80x2xf32, #tpu.memory_space<vmem>>, vector<64x2xf32>
    %267 = arith.truncf %266 : vector<64x2xf32> to vector<64x2xbf16>
    %c10_262 = arith.constant 10 : index
    %c0_263 = arith.constant 0 : index
    %c0_264 = arith.constant 0 : index
    %268 = vector.load %arg8[%c10_262, %c0_263, %c0_264] : memref<16x2x32xbf16, #tpu.memory_space<vmem>>, vector<1x2x32xbf16>
    %269 = vector.shape_cast %268 : vector<1x2x32xbf16> to vector<2x32xbf16>
    %cst_265 = arith.constant dense<0.000000e+00> : vector<64x32xf32>
    %270 = tpu.matmul %267, %269, %cst_265 {dimension_numbers = #tpu.dot_dimension_numbers<[1], [0], [0], [1], [0, 0, 1, 1], [], []>} : vector<64x2xbf16>, vector<2x32xbf16>, vector<64x32xf32> -> vector<64x32xf32>
    %271 = arith.addf %265, %270 : vector<64x32xf32>
    %c7_266 = arith.constant 7 : index
    %c0_267 = arith.constant 0 : index
    %272 = vector.load %arg12[%c7_266, %c0_267] : memref<80x2xf32, #tpu.memory_space<vmem>>, vector<64x2xf32>
    %273 = arith.truncf %272 : vector<64x2xf32> to vector<64x2xbf16>
    %c11_268 = arith.constant 11 : index
    %c0_269 = arith.constant 0 : index
    %c0_270 = arith.constant 0 : index
    %274 = vector.load %arg8[%c11_268, %c0_269, %c0_270] : memref<16x2x32xbf16, #tpu.memory_space<vmem>>, vector<1x2x32xbf16>
    %275 = vector.shape_cast %274 : vector<1x2x32xbf16> to vector<2x32xbf16>
    %cst_271 = arith.constant dense<0.000000e+00> : vector<64x32xf32>
    %276 = tpu.matmul %273, %275, %cst_271 {dimension_numbers = #tpu.dot_dimension_numbers<[1], [0], [0], [1], [0, 0, 1, 1], [], []>} : vector<64x2xbf16>, vector<2x32xbf16>, vector<64x32xf32> -> vector<64x32xf32>
    %277 = arith.addf %271, %276 : vector<64x32xf32>
    %c0_272 = arith.constant 0 : index
    %c0_273 = arith.constant 0 : index
    %278 = vector.load %arg9[%c0_272, %c0_273] : memref<1x32xf32, #tpu.memory_space<vmem>>, vector<1x32xf32>
    %279 = vector.broadcast %278 : vector<1x32xf32> to vector<64x32xf32>
    %280 = arith.addf %277, %279 : vector<64x32xf32>
    %c0_274 = arith.constant 0 : index
    %c2_275 = arith.constant 2 : index
    %c0_276 = arith.constant 0 : index
    %c0_277 = arith.constant 0 : index
    %281 = vector.load %arg1[%c0_274, %c2_275, %c0_276, %c0_277] : memref<1x4x73x32xf32, #tpu.memory_space<vmem>>, vector<1x1x64x32xf32>
    %282 = vector.shape_cast %281 : vector<1x1x64x32xf32> to vector<64x32xf32>
    %283 = arith.addf %280, %282 : vector<64x32xf32>
    %c0_278 = arith.constant 0 : index
    %c2_279 = arith.constant 2 : index
    %c0_280 = arith.constant 0 : index
    %c0_281 = arith.constant 0 : index
    %284 = vector.load %arg10[%c0_278, %c2_279, %c0_280, %c0_281] : memref<1x4x64x32xf32, #tpu.memory_space<vmem>>, vector<1x1x64x32xf32>
    %285 = vector.shape_cast %284 : vector<1x1x64x32xf32> to vector<64x32xf32>
    %286 = vector.shape_cast %283 : vector<64x32xf32> to vector<1x1x64x32xf32>
    tpu.vector_store %arg10[%c0_278, %c2_279, %c0_280, %c0_281], %286 {strides = array<i32>} : memref<1x4x64x32xf32, #tpu.memory_space<vmem>>, vector<1x1x64x32xf32>,
    %c16_282 = arith.constant 16 : index
    %c0_283 = arith.constant 0 : index
    %287 = vector.load %arg12[%c16_282, %c0_283] : memref<80x2xf32, #tpu.memory_space<vmem>>, vector<64x2xf32>
    %288 = arith.truncf %287 : vector<64x2xf32> to vector<64x2xbf16>
    %c12_284 = arith.constant 12 : index
    %c0_285 = arith.constant 0 : index
    %c0_286 = arith.constant 0 : index
    %289 = vector.load %arg8[%c12_284, %c0_285, %c0_286] : memref<16x2x32xbf16, #tpu.memory_space<vmem>>, vector<1x2x32xbf16>
    %290 = vector.shape_cast %289 : vector<1x2x32xbf16> to vector<2x32xbf16>
    %cst_287 = arith.constant dense<0.000000e+00> : vector<64x32xf32>
    %291 = tpu.matmul %288, %290, %cst_287 {dimension_numbers = #tpu.dot_dimension_numbers<[1], [0], [0], [1], [0, 0, 1, 1], [], []>} : vector<64x2xbf16>, vector<2x32xbf16>, vector<64x32xf32> -> vector<64x32xf32>
    %c15_288 = arith.constant 15 : index
    %c0_289 = arith.constant 0 : index
    %292 = vector.load %arg12[%c15_288, %c0_289] : memref<80x2xf32, #tpu.memory_space<vmem>>, vector<64x2xf32>
    %293 = arith.truncf %292 : vector<64x2xf32> to vector<64x2xbf16>
    %c13_290 = arith.constant 13 : index
    %c0_291 = arith.constant 0 : index
    %c0_292 = arith.constant 0 : index
    %294 = vector.load %arg8[%c13_290, %c0_291, %c0_292] : memref<16x2x32xbf16, #tpu.memory_space<vmem>>, vector<1x2x32xbf16>
    %295 = vector.shape_cast %294 : vector<1x2x32xbf16> to vector<2x32xbf16>
    %cst_293 = arith.constant dense<0.000000e+00> : vector<64x32xf32>
    %296 = tpu.matmul %293, %295, %cst_293 {dimension_numbers = #tpu.dot_dimension_numbers<[1], [0], [0], [1], [0, 0, 1, 1], [], []>} : vector<64x2xbf16>, vector<2x32xbf16>, vector<64x32xf32> -> vector<64x32xf32>
    %297 = arith.addf %291, %296 : vector<64x32xf32>
    %c8_294 = arith.constant 8 : index
    %c0_295 = arith.constant 0 : index
    %298 = vector.load %arg12[%c8_294, %c0_295] : memref<80x2xf32, #tpu.memory_space<vmem>>, vector<64x2xf32>
    %299 = arith.truncf %298 : vector<64x2xf32> to vector<64x2xbf16>
    %c14_296 = arith.constant 14 : index
    %c0_297 = arith.constant 0 : index
    %c0_298 = arith.constant 0 : index
    %300 = vector.load %arg8[%c14_296, %c0_297, %c0_298] : memref<16x2x32xbf16, #tpu.memory_space<vmem>>, vector<1x2x32xbf16>
    %301 = vector.shape_cast %300 : vector<1x2x32xbf16> to vector<2x32xbf16>
    %cst_299 = arith.constant dense<0.000000e+00> : vector<64x32xf32>
    %302 = tpu.matmul %299, %301, %cst_299 {dimension_numbers = #tpu.dot_dimension_numbers<[1], [0], [0], [1], [0, 0, 1, 1], [], []>} : vector<64x2xbf16>, vector<2x32xbf16>, vector<64x32xf32> -> vector<64x32xf32>
    %303 = arith.addf %297, %302 : vector<64x32xf32>
    %c7_300 = arith.constant 7 : index
    %c0_301 = arith.constant 0 : index
    %304 = vector.load %arg12[%c7_300, %c0_301] : memref<80x2xf32, #tpu.memory_space<vmem>>, vector<64x2xf32>
    %305 = arith.truncf %304 : vector<64x2xf32> to vector<64x2xbf16>
    %c15_302 = arith.constant 15 : index
    %c0_303 = arith.constant 0 : index
    %c0_304 = arith.constant 0 : index
    %306 = vector.load %arg8[%c15_302, %c0_303, %c0_304] : memref<16x2x32xbf16, #tpu.memory_space<vmem>>, vector<1x2x32xbf16>
    %307 = vector.shape_cast %306 : vector<1x2x32xbf16> to vector<2x32xbf16>
    %cst_305 = arith.constant dense<0.000000e+00> : vector<64x32xf32>
    %308 = tpu.matmul %305, %307, %cst_305 {dimension_numbers = #tpu.dot_dimension_numbers<[1], [0], [0], [1], [0, 0, 1, 1], [], []>} : vector<64x2xbf16>, vector<2x32xbf16>, vector<64x32xf32> -> vector<64x32xf32>
    %309 = arith.addf %303, %308 : vector<64x32xf32>
    %c0_306 = arith.constant 0 : index
    %c0_307 = arith.constant 0 : index
    %310 = vector.load %arg9[%c0_306, %c0_307] : memref<1x32xf32, #tpu.memory_space<vmem>>, vector<1x32xf32>
    %311 = vector.broadcast %310 : vector<1x32xf32> to vector<64x32xf32>
    %312 = arith.addf %309, %311 : vector<64x32xf32>
    %c0_308 = arith.constant 0 : index
    %c3_309 = arith.constant 3 : index
    %c0_310 = arith.constant 0 : index
    %c0_311 = arith.constant 0 : index
    %313 = vector.load %arg1[%c0_308, %c3_309, %c0_310, %c0_311] : memref<1x4x73x32xf32, #tpu.memory_space<vmem>>, vector<1x1x64x32xf32>
    %314 = vector.shape_cast %313 : vector<1x1x64x32xf32> to vector<64x32xf32>
    %315 = arith.addf %312, %314 : vector<64x32xf32>
    %c0_312 = arith.constant 0 : index
    %c3_313 = arith.constant 3 : index
    %c0_314 = arith.constant 0 : index
    %c0_315 = arith.constant 0 : index
    %316 = vector.load %arg10[%c0_312, %c3_313, %c0_314, %c0_315] : memref<1x4x64x32xf32, #tpu.memory_space<vmem>>, vector<1x1x64x32xf32>
    %317 = vector.shape_cast %316 : vector<1x1x64x32xf32> to vector<64x32xf32>
    %318 = vector.shape_cast %315 : vector<64x32xf32> to vector<1x1x64x32xf32>
    tpu.vector_store %arg10[%c0_312, %c3_313, %c0_314, %c0_315], %318 {strides = array<i32>} : memref<1x4x64x32xf32, #tpu.memory_space<vmem>>, vector<1x1x64x32xf32>,
    return
  }
  func.func @transform_0(%arg0: i32) -> (i32, i32, i32, i32) {
    %c0_i32 = arith.constant 0 : i32
    %c0_i32_0 = arith.constant 0 : i32
    %c0_i32_1 = arith.constant 0 : i32
    %c0_i32_2 = arith.constant 0 : i32
    return %arg0, %c0_i32, %c0_i32_0, %c0_i32_1 : i32, i32, i32, i32
  }
  func.func @transform_1(%arg0: i32) -> (i32, i32, i32) {
    %c0_i32 = arith.constant 0 : i32
    %c0_i32_0 = arith.constant 0 : i32
    %c0_i32_1 = arith.constant 0 : i32
    %c0_i32_2 = arith.constant 0 : i32
    return %c0_i32, %c0_i32_0, %c0_i32_1 : i32, i32, i32
  }
  func.func @transform_2(%arg0: i32) -> (i32, i32) {
    %c0_i32 = arith.constant 0 : i32
    %c0_i32_0 = arith.constant 0 : i32
    %c0_i32_1 = arith.constant 0 : i32
    return %c0_i32, %c0_i32_0 : i32, i32
  }
  func.func @transform_3(%arg0: i32) -> (i32, i32, i32) {
    %c0_i32 = arith.constant 0 : i32
    %c0_i32_0 = arith.constant 0 : i32
    %c0_i32_1 = arith.constant 0 : i32
    %c0_i32_2 = arith.constant 0 : i32
    return %c0_i32, %c0_i32_0, %c0_i32_1 : i32, i32, i32
  }
  func.func @transform_4(%arg0: i32) -> (i32, i32, i32) {
    %c0_i32 = arith.constant 0 : i32
    %c0_i32_0 = arith.constant 0 : i32
    %c0_i32_1 = arith.constant 0 : i32
    %c0_i32_2 = arith.constant 0 : i32
    return %c0_i32, %c0_i32_0, %c0_i32_1 : i32, i32, i32
  }
  func.func @transform_5(%arg0: i32) -> (i32, i32) {
    %c0_i32 = arith.constant 0 : i32
    %c0_i32_0 = arith.constant 0 : i32
    %c0_i32_1 = arith.constant 0 : i32
    return %c0_i32, %c0_i32_0 : i32, i32
  }
  func.func @transform_6(%arg0: i32) -> (i32, i32) {
    %c0_i32 = arith.constant 0 : i32
    %c0_i32_0 = arith.constant 0 : i32
    %c0_i32_1 = arith.constant 0 : i32
    return %c0_i32, %c0_i32_0 : i32, i32
  }
  func.func @transform_7(%arg0: i32) -> (i32, i32, i32) {
    %c0_i32 = arith.constant 0 : i32
    %c0_i32_0 = arith.constant 0 : i32
    %c0_i32_1 = arith.constant 0 : i32
    %c0_i32_2 = arith.constant 0 : i32
    return %c0_i32, %c0_i32_0, %c0_i32_1 : i32, i32, i32
  }
  func.func @transform_8(%arg0: i32) -> (i32, i32) {
    %c0_i32 = arith.constant 0 : i32
    %c0_i32_0 = arith.constant 0 : i32
    %c0_i32_1 = arith.constant 0 : i32
    return %c0_i32, %c0_i32_0 : i32, i32
  }
  func.func @transform_9(%arg0: i32) -> (i32, i32, i32, i32) {
    %c0_i32 = arith.constant 0 : i32
    %c0_i32_0 = arith.constant 0 : i32
    %c0_i32_1 = arith.constant 0 : i32
    %c0_i32_2 = arith.constant 0 : i32
    return %arg0, %c0_i32, %c0_i32_0, %c0_i32_1 : i32, i32, i32, i32
  }
}

</mosaic_0001>

<bundles_post_ra>
// kernel: attention_with_pooling_forward.1
= control target key start
LH: loop header
LB: loop body
LE: loop exit
PB: predicated region body
PF: predicated region fallthrough
CT: control target
= control target key end

     0   :  { %s5929_s30 = smov 0   ;;  %s7173_s0 = inlined_call_operand.vmem [shape: f32[2,4,73,32], index: 0, kind: input, shape index: {}]   ;;  %s7174_s1 = inlined_call_operand.vmem [shape: bf16[16,32,32], index: 1, kind: input, shape index: {}]   ;;  %s7175_s2 = inlined_call_operand.vmem [shape: f32[1,32], index: 2, kind: input, shape index: {}]   ;;  %s7176_s3 = inlined_call_operand.vmem [shape: bf16[3,32,2], index: 3, kind: input, shape index: {}]   ;;  %s7177_s4 = inlined_call_operand.vmem [shape: f32[3,1,2], index: 4, kind: input, shape index: {}]   ;;  %s7178_s5 = inlined_call_operand.vmem [shape: f32[1,64], index: 5, kind: input, shape index: {}]   ;;  %s7179_s6 = inlined_call_operand.vmem [shape: f32[64,1], index: 6, kind: input, shape index: {}]   ;;  %s7180_s7 = inlined_call_operand.vmem [shape: bf16[16,2,32], index: 7, kind: input, shape index: {}]   ;;  %s7181_s8 = inlined_call_operand.vmem [shape: f32[1,32], index: 8, kind: input, shape index: {}]   ;;  %s7182_s9 = inlined_call_operand.vmem [shape: f32[2,4,64,32], index: 9, kind: output, shape index: {}]  }
   0x1 LB: > { %s4701_s10 = sadd.s32 4294967295, %s5875_s30   ;;  %p4705_p0 = scmp.ge.s32.totalorder %s5875_s30, 1  ;;  %s5875_s30 = sphi %s5929_s30, %s19_s30  }
   0x2   : > { %p287_p1 = scmp.lt.s32.totalorder %s5875_s30, 3 }
   0x4   : > { %p288_p2 = pnand %p4705_p0, %p287_p1 }
   0x6   : > { %291 = sbr.rel (%p288_p2) target bundleno = 1657 (0x679), region = 56 }
   0xb   : > { %v5799_v0 = vld [vmem:[%s7174_s1 + $0x18] sm:$0xff]   ;;  %p323_p3 = scmp.lt.s32.totalorder %s4701_s10, 1  ;;  %v5800_v1 = vld [vmem:[%s7174_s1 + $0x8] sm:$0xff]   ;;  %v5801_v2 = vld [vmem:[%s7174_s1 + $0x10] sm:$0xff]   ;;  %vm412_vm0 = vcmask 261120   ;;  %vm334_vm1 = vcmask 15360  }
   0xc   : > { %5346 = vmatprep.subr.bf16.mxu0 %v5799_v0  ;;  %5358 = vmatprep.subr.bf16.mxu1 %v5800_v1  ;;  %v5802_v3 = vld [vmem:[%s7174_s1] sm:$0xff]   ;;  %v5803_v4 = vld [vmem:[%s7174_s1 + $0x28] sm:$0xff]   ;;  %v5804_v5 = vld [vmem:[%s7174_s1 + $0x38] sm:$0xff]   ;;  %vm344_vm2 = vcmask 8192   ;;  %vm2685_vm3 = vcmask 523264   ;;  %vm2958_vm4 = vcmask 1040384  }
   0xd   : > { %s7205_s10 = smov (!%p323_p3, %s4701_s10), 1  ;;  %5347 = vmatpush3.bf16.msra.mxu0 %v5799_v0  ;;  %5359 = vmatpush3.bf16.msra.mxu1 %v5800_v1  ;;  %v5805_v13 = vld [vmem:[%s7174_s1 + $0x20] sm:$0xff]   ;;  %v5806_v29 = vld [vmem:[%s7174_s1 + $0x30] sm:$0xff]   ;;  %v5807_v37 = vld [vmem:[%s7174_s1 + $0x48] sm:$0xff]  }
   0xe   : > { %5348 = vmatprep.subr.bf16.mxu0 %v5801_v2  ;;  %s5786_s19 = smul.u32 320, %s7205_s10  ;;  %5360 = vmatprep.subr.bf16.mxu1 %v5802_v3  ;;  %v5808_v39 = vld [vmem:[%s7174_s1 + $0x58] sm:$0xff]   ;;  %v5809_v53 = vld [vmem:[%s7174_s1 + $0x40] sm:$0xff]   ;;  %v5810_v56 = vld [vmem:[%s7174_s1 + $0x50] sm:$0xff]   ;;  %s5135_s24 = sshll.u32 %s7205_s10, 8 }
   0xf   : > { %v5811_v62 = vld [vmem:[%s7174_s1 + $0x68] sm:$0xff]   ;;  %v5812_v63 = vld [vmem:[%s7174_s1 + $0x78] sm:$0xff]   ;;  %s7042_s28 = scalar_lea.vmem %s7182_s9, %s5135_s24 }
  0x10   : > { %s5961_s26 = scalar_lea.vmem %s7173_s0, %s5786_s19 }
  0x11   : > { %5349 = vmatpush3.bf16.msra.mxu0 %v5801_v2  ;;  %v4709_v6 = vld [vmem:[%s5961_s26 + $0x50] sm:$0xff]  ;;  %v5965_v7 = vld [vmem:[%s5961_s26 + $0x58] sm:$0xff]  ;;  %v366_v8 = vld [vmem:[%s5961_s26] sm:$0xff]  ;;  %5361 = vmatpush3.bf16.msra.mxu1 %v5802_v3 }
  0x12   : > { %v391_v9 = vpack.c.bf16 %v5965_v7, %v4709_v6  ;;  %v5970_v10 = vld [vmem:[%s5961_s26 + $0x8] sm:$0xff]  ;;  %v5973_v11 = vld [vmem:[%s5961_s26 + $0x60] sm:$0xff]  ;;  %5370 = vmatprep.subr.bf16.mxu0 %v5803_v4  ;;  %v5985_v16 = vld [vmem:[%s5961_s26 + $0x10] sm:$0xff]  ;;  %5382 = vmatprep.subr.bf16.mxu1 %v5804_v5 }
  0x13   : > { %v5976_v12 = vld [vmem:[%s5961_s26 + $0x68] sm:$0xff]  ;;  %v374_v14 = vpack.c.bf16 %v5970_v10, %v366_v8  ;;  %v5988_v17 = vld [vmem:[%s5961_s26 + $0x18] sm:$0xff]  ;;  %v5991_v18 = vld [vmem:[%s5961_s26 + $0x70] sm:$0xff] }
  0x14   : > { %v392_v15 = vpack.c.bf16 %v5976_v12, %v5973_v11  ;;  %5350 = vmatprep.mubr.msk.bf16.mxu0 %vm412_vm0, %v391_v9  ;;  %v375_v19 = vpack.c.bf16 %v5988_v17, %v5985_v16  ;;  %v5997_v20 = vld [vmem:[%s5961_s26 + $0x78] sm:$0xff]  ;;  %v6000_v21 = vld [vmem:[%s5961_s26 + $0x20] sm:$0xff]  ;;  %v6003_v22 = vld [vmem:[%s5961_s26 + $0x28] sm:$0xff] }
  0x15   : > { %5362 = vmatprep.mubr.msk.bf16.mxu1 %vm412_vm0, %v374_v14  ;;  %v393_v23 = vpack.c.bf16 %v5997_v20, %v5991_v18  ;;  %v376_v24 = vpack.c.bf16 %v6003_v22, %v6000_v21  ;;  %v6012_v25 = vld [vmem:[%s5961_s26 + $0x80] sm:$0xff]  ;;  %v6015_v26 = vld [vmem:[%s5961_s26 + $0x88] sm:$0xff]  ;;  %v6018_v27 = vld [vmem:[%s5961_s26 + $0x30] sm:$0xff] }
  0x16   : > { %5351 = vmatmul.mubr.msk.bf16.vlgmr.msra.gmra.mxu0 %vm412_vm0, %v392_v15  ;;  %5363 = vmatmul.mubr.msk.bf16.vlgmr.msra.gmra.mxu1 %vm412_vm0, %v375_v19  ;;  %v6022_v28 = vld [vmem:[%s5961_s26 + $0x38] sm:$0xff]  ;;  %v579_v30 = vld [vmem:[%s5961_s26 + $0x1] sm:$0xff]  ;;  %v6030_v31 = vld [vmem:[%s5961_s26 + $0x9] sm:$0xff]  ;;  %v394_v34 = vpack.c.bf16 %v6015_v26, %v6012_v25 }
  0x17   : > { %5371 = vmatpush3.bf16.msra.mxu0 %v5803_v4  ;;  %5383 = vmatpush3.bf16.msra.mxu1 %v5804_v5  ;;  %v4743_v32 = vld [vmem:[%s5961_s26 + $0x51] sm:$0xff]  ;;  %v6035_v33 = vld [vmem:[%s5961_s26 + $0x59] sm:$0xff]  ;;  %v377_v35 = vpack.c.bf16 %v6022_v28, %v6018_v27  ;;  %v587_v36 = vpack.c.bf16 %v6030_v31, %v579_v30  ;;  %v6059_v42 = vld [vmem:[%s5961_s26 + $0x61] sm:$0xff] }
  0x18   : > { %5354 = vmatprep.mubr.msk.bf16.mxu0 %vm412_vm0, %v393_v23  ;;  %5366 = vmatprep.mubr.msk.bf16.mxu1 %vm412_vm0, %v376_v24  ;;  %v701_v38 = vpack.c.bf16 %v6035_v33, %v4743_v32  ;;  %v6051_v40 = vld [vmem:[%s5961_s26 + $0x11] sm:$0xff]  ;;  %v6056_v41 = vld [vmem:[%s5961_s26 + $0x19] sm:$0xff]  ;;  %v6063_v43 = vld [vmem:[%s5961_s26 + $0x69] sm:$0xff] }
  0x19   : > { %5372 = vmatprep.subr.bf16.mxu0 %v5805_v13  ;;  %5384 = vmatprep.subr.bf16.mxu1 %v5806_v29  ;;  %v6066_v44 = vld [vmem:[%s5961_s26 + $0x21] sm:$0xff]  ;;  %v6069_v45 = vld [vmem:[%s5961_s26 + $0x29] sm:$0xff]  ;;  %v588_v46 = vpack.c.bf16 %v6056_v41, %v6051_v40  ;;  %v6074_v47 = vld [vmem:[%s5961_s26 + $0x71] sm:$0xff]  ;;  %v702_v49 = vpack.c.bf16 %v6063_v43, %v6059_v42 }
  0x1a   : > { %v6077_v48 = vld [vmem:[%s5961_s26 + $0x79] sm:$0xff]  ;;  %v589_v50 = vpack.c.bf16 %v6069_v45, %v6066_v44  ;;  %v6086_v52 = vld [vmem:[%s5961_s26 + $0x31] sm:$0xff]  ;;  %v6096_v55 = vld [vmem:[%s5961_s26 + $0x81] sm:$0xff] }
  0x1b   : > { %5373 = vmatpush3.bf16.msra.mxu0 %v5805_v13  ;;  %5385 = vmatpush3.bf16.msra.mxu1 %v5806_v29  ;;  %v703_v51 = vpack.c.bf16 %v6077_v48, %v6074_v47  ;;  %v6093_v54 = vld [vmem:[%s5961_s26 + $0x39] sm:$0xff]  ;;  %v6103_v57 = vld [vmem:[%s5961_s26 + $0x89] sm:$0xff] }
  0x1c   : > { %5394 = vmatprep.subr.bf16.mxu0 %v5807_v37  ;;  %5406 = vmatprep.subr.bf16.mxu1 %v5808_v39  ;;  %v4761_v58 = vld [vmem:[%s5961_s26 + $0xa0] sm:$0xff]  ;;  %v6107_v59 = vld [vmem:[%s5961_s26 + $0xa8] sm:$0xff]  ;;  %v4779_v60 = vld [vmem:[%s5961_s26 + $0xf0] sm:$0xff]  ;;  %v590_v0 = vpack.c.bf16 %v6093_v54, %v6086_v52  ;;  %v704_v1 = vpack.c.bf16 %v6103_v57, %v6096_v55 }
  0x1d   : > { %v6112_v61 = vld [vmem:[%s5961_s26 + $0xf8] sm:$0xff]  ;;  %v816_v2 = vpack.c.bf16 %v6107_v59, %v4761_v58  ;;  %v6131_v4 = vld [vmem:[%s5961_s26 + $0xb0] sm:$0xff]  ;;  %v6138_v6 = vld [vmem:[%s5961_s26 + $0x100] sm:$0xff] }
  0x1e   : > { %5355 = vmatmul.mubr.msk.bf16.gmra.mxu0 %vm412_vm0, %v394_v34  ;;  %5367 = vmatmul.mubr.msk.bf16.gmra.mxu1 %vm412_vm0, %v377_v35  ;;  %v931_v3 = vpack.c.bf16 %v6112_v61, %v4779_v60  ;;  %v6134_v5 = vld [vmem:[%s5961_s26 + $0xb8] sm:$0xff]  ;;  %v6141_v8 = vld [vmem:[%s5961_s26 + $0x108] sm:$0xff]  ;;  %v6144_v9 = vld [vmem:[%s5961_s26 + $0xc0] sm:$0xff] }
  0x1f   : > { %5374 = vmatprep.mubr.msk.bf16.mxu0 %vm412_vm0, %v587_v36  ;;  %5386 = vmatprep.mubr.msk.bf16.mxu1 %vm412_vm0, %v701_v38  ;;  %v6147_v13 = vld [vmem:[%s5961_s26 + $0xc8] sm:$0xff]  ;;  %v6150_v14 = vld [vmem:[%s5961_s26 + $0x110] sm:$0xff]  ;;  %v817_v15 = vpack.c.bf16 %v6134_v5, %v6131_v4  ;;  %v6155_v19 = vld [vmem:[%s5961_s26 + $0x118] sm:$0xff]  ;;  %v932_v23 = vpack.c.bf16 %v6141_v8, %v6138_v6 }
  0x20   : > { %v818_v24 = vpack.c.bf16 %v6147_v13, %v6144_v9  ;;  %v933_v29 = vpack.c.bf16 %v6155_v19, %v6150_v14  ;;  %v6164_v30 = vld [vmem:[%s5961_s26 + $0xd0] sm:$0xff]  ;;  %v6167_v32 = vld [vmem:[%s5961_s26 + $0xd8] sm:$0xff]  ;;  %v5813_v34 = vld [vmem:[%s7174_s1 + $0x60] sm:$0xff]  }
  0x21   : > { %v6174_v35 = vld [vmem:[%s5961_s26 + $0x120] sm:$0xff]  ;;  %v6177_v36 = vld [vmem:[%s5961_s26 + $0x128] sm:$0xff] }
  0x22   : > { %v4797_v38 = vld [vmem:[%s5961_s26 + $0xa1] sm:$0xff] }
  0x26   : > { %5375 = vmatmul.mubr.msk.bf16.vlgmr.msra.gmra.mxu0 %vm412_vm0, %v588_v46  ;;  %5387 = vmatmul.mubr.msk.bf16.vlgmr.msra.gmra.mxu1 %vm412_vm0, %v702_v49  ;;  %v4815_v46 = vld [vmem:[%s5961_s26 + $0xf1] sm:$0xff]  ;;  %v6189_v49 = vld [vmem:[%s5961_s26 + $0xf9] sm:$0xff] }
  0x27   : > { %5395 = vmatpush3.bf16.msra.mxu0 %v5807_v37  ;;  %5407 = vmatpush3.bf16.msra.mxu1 %v5808_v39  ;;  %v5814_v37 = vld [vmem:[%s7174_s1 + $0x70] sm:$0xff]   ;;  %v1159_v60 = vpack.c.bf16 %v6189_v49, %v4815_v46 }
  0x28   : > { %5378 = vmatprep.mubr.msk.bf16.mxu0 %vm412_vm0, %v589_v50  ;;  %5390 = vmatprep.mubr.msk.bf16.mxu1 %vm412_vm0, %v703_v51  ;;  %v6184_v39 = vld [vmem:[%s5961_s26 + $0xa9] sm:$0xff]  ;;  %v5816_v51 = vld [vmem:[%s7174_s1 + $0x98] sm:$0xff]  }
  0x29   : > { %5396 = vmatprep.subr.bf16.mxu0 %v5809_v53  ;;  %5408 = vmatprep.subr.bf16.mxu1 %v5810_v56  ;;  %v5815_v50 = vld [vmem:[%s7174_s1 + $0x88] sm:$0xff]   ;;  %v1045_v58 = vpack.c.bf16 %v6184_v39, %v4797_v38  ;;  %v5818_v38 = vld [vmem:[%s7174_s1 + $0x90] sm:$0xff]  }
  0x2b   : > { %5397 = vmatpush3.bf16.msra.mxu0 %v5809_v53  ;;  %5409 = vmatpush3.bf16.msra.mxu1 %v5810_v56  ;;  %v819_v53 = vpack.c.bf16 %v6167_v32, %v6164_v30  ;;  %v934_v56 = vpack.c.bf16 %v6177_v36, %v6174_v35 }
  0x2c   : > { %5418 = vmatprep.subr.bf16.mxu0 %v5811_v62  ;;  %5430 = vmatprep.subr.bf16.mxu1 %v5812_v63 }
  0x2e   : > { %5379 = vmatmul.mubr.msk.bf16.gmra.mxu0 %vm412_vm0, %v590_v0  ;;  %5391 = vmatmul.mubr.msk.bf16.gmra.mxu1 %vm412_vm0, %v704_v1  ;;  %v6215_v0 = vld [vmem:[%s5961_s26 + $0x101] sm:$0xff]  ;;  %v6218_v1 = vld [vmem:[%s5961_s26 + $0x109] sm:$0xff] }
  0x2f   : > { %5398 = vmatprep.mubr.msk.bf16.mxu0 %vm412_vm0, %v816_v2  ;;  %5410 = vmatprep.mubr.msk.bf16.mxu1 %vm412_vm0, %v931_v3  ;;  %v6222_v2 = vld [vmem:[%s5961_s26 + $0xc1] sm:$0xff]  ;;  %v6225_v3 = vld [vmem:[%s5961_s26 + $0xc9] sm:$0xff] }
  0x36   : > { %5399 = vmatmul.mubr.msk.bf16.vlgmr.msra.gmra.mxu0 %vm412_vm0, %v817_v15  ;;  %5411 = vmatmul.mubr.msk.bf16.vlgmr.msra.gmra.mxu1 %vm412_vm0, %v932_v23  ;;  %v6230_v23 = vld [vmem:[%s5961_s26 + $0x111] sm:$0xff] }
  0x37   : > { %5419 = vmatpush3.bf16.msra.mxu0 %v5811_v62  ;;  %5431 = vmatpush3.bf16.msra.mxu1 %v5812_v63  ;;  %v6206_v62 = vld [vmem:[%s5961_s26 + $0xb1] sm:$0xff]  ;;  %v6210_v63 = vld [vmem:[%s5961_s26 + $0xb9] sm:$0xff] }
  0x38   : > { %5402 = vmatprep.mubr.msk.bf16.mxu0 %vm412_vm0, %v818_v24  ;;  %5414 = vmatprep.mubr.msk.bf16.mxu1 %vm412_vm0, %v933_v29  ;;  %v1046_v15 = vpack.c.bf16 %v6210_v63, %v6206_v62  ;;  %v6233_v24 = vld [vmem:[%s5961_s26 + $0x119] sm:$0xff]  ;;  %v1160_v29 = vpack.c.bf16 %v6218_v1, %v6215_v0 }
  0x39   : > { %5420 = vmatprep.subr.bf16.mxu0 %v5813_v34  ;;  %5432 = vmatprep.subr.bf16.mxu1 %v5814_v37  ;;  %7187 = vst [vmem:[#allocation4_spill] sm:$0xff] %v6233_v24  ;;  %v1161_v46 = vpack.c.bf16 %v6233_v24, %v6230_v23  ;;  %v5819_v24 = vld [vmem:[%s7174_s1 + $0xa8] sm:$0xff]  }
  0x3b   : > { %5421 = vmatpush3.bf16.msra.mxu0 %v5813_v34  ;;  %5433 = vmatpush3.bf16.msra.mxu1 %v5814_v37  ;;  %v5817_v34 = vld [vmem:[%s7174_s1 + $0x80] sm:$0xff]   ;;  %v1047_v37 = vpack.c.bf16 %v6225_v3, %v6222_v2 }
  0x3c   : > { %5442 = vmatprep.subr.bf16.mxu0 %v5815_v50  ;;  %5454 = vmatprep.subr.bf16.mxu1 %v5816_v51 }
  0x3e   : > { %5403 = vmatmul.mubr.msk.bf16.gmra.mxu0 %vm412_vm0, %v819_v53  ;;  %5415 = vmatmul.mubr.msk.bf16.gmra.mxu1 %vm412_vm0, %v934_v56  ;;  %v6250_v53 = vld [vmem:[%s5961_s26 + $0xd1] sm:$0xff]  ;;  %v6253_v56 = vld [vmem:[%s5961_s26 + $0xd9] sm:$0xff] }
  0x3f   : > { %5422 = vmatprep.mubr.msk.bf16.mxu0 %vm412_vm0, %v1045_v58  ;;  %5434 = vmatprep.mubr.msk.bf16.mxu1 %vm412_vm0, %v1159_v60  ;;  %v6257_v58 = vld [vmem:[%s5961_s26 + $0x121] sm:$0xff]  ;;  %v6260_v60 = vld [vmem:[%s5961_s26 + $0x129] sm:$0xff] }
  0x46   : > { %5423 = vmatmul.mubr.msk.bf16.vlgmr.msra.gmra.mxu0 %vm412_vm0, %v1046_v15  ;;  %5435 = vmatmul.mubr.msk.bf16.vlgmr.msra.gmra.mxu1 %vm412_vm0, %v1160_v29  ;;  %v1162_v15 = vpack.c.bf16 %v6260_v60, %v6257_v58  ;;  %v1273_v29 = vpack.c.bf16 %v5985_v16, %v5970_v10  ;;  %v1388_v10 = vpack.c.bf16 %v5991_v18, %v5976_v12  ;;  %v5821_v16 = vld [vmem:[%s7174_s1 + $0xa0] sm:$0xff]   ;;  %v5823_v18 = vld [vmem:[%s7174_s1 + $0xc8] sm:$0xff]  }
  0x47   : > { %5443 = vmatpush3.bf16.msra.mxu0 %v5815_v50  ;;  %5455 = vmatpush3.bf16.msra.mxu1 %v5816_v51  ;;  %v5820_v50 = vld [vmem:[%s7174_s1 + $0xb8] sm:$0xff]   ;;  %v1048_v51 = vpack.c.bf16 %v6253_v56, %v6250_v53  ;;  %v1272_v12 = vld [vmem:[%s5961_s26 + $0x40] sm:$0xff] }
  0x48   : > { %5426 = vmatprep.mubr.msk.bf16.mxu0 %vm412_vm0, %v1047_v37  ;;  %5438 = vmatprep.mubr.msk.bf16.mxu1 %vm412_vm0, %v1161_v46  ;;  %v1387_v37 = vpack.c.bf16 %v5973_v11, %v5965_v7  ;;  %v1275_v7 = vpack.c.bf16 %v6018_v27, %v6003_v22  ;;  %v1389_v11 = vpack.c.bf16 %v6012_v25, %v5997_v20  ;;  %v5824_v20 = vld [vmem:[%s7174_s1 + $0xd8] sm:$0xff]  }
  0x49   : > { %5444 = vmatprep.subr.bf16.mxu0 %v5817_v34  ;;  %5456 = vmatprep.subr.bf16.mxu1 %v5818_v38  ;;  %v1501_v25 = vpack.c.bf16 %v6051_v40, %v6030_v31  ;;  %v1615_v27 = vpack.c.bf16 %v6059_v42, %v6035_v33  ;;  %v1503_v31 = vpack.c.bf16 %v6086_v52, %v6069_v45  ;;  %v5825_v40 = vld [vmem:[%s7174_s1 + $0xc0] sm:$0xff]   ;;  %v5826_v42 = vld [vmem:[%s7174_s1 + $0xd0] sm:$0xff]   ;;  %v5828_v45 = vld [vmem:[%s7174_s1 + $0xf8] sm:$0xff]  }
  0x4a   : > { %v1617_v33 = vpack.c.bf16 %v6096_v55, %v6077_v48  ;;  %v1729_v52 = vpack.c.bf16 %v6131_v4, %v6107_v59  ;;  %v1843_v55 = vpack.c.bf16 %v6138_v6, %v6112_v61  ;;  %v1731_v59 = vpack.c.bf16 %v6164_v30, %v6147_v13  ;;  %v5829_v4 = vld [vmem:[%s7174_s1 + $0xe0] sm:$0xff]   ;;  %v5830_v6 = vld [vmem:[%s7174_s1 + $0xf0] sm:$0xff]  }
  0x4b   : > { %5445 = vmatpush3.bf16.msra.mxu0 %v5817_v34  ;;  %5457 = vmatpush3.bf16.msra.mxu1 %v5818_v38  ;;  %v1274_v34 = vpack.c.bf16 %v6000_v21, %v5988_v17  ;;  %v5822_v38 = vld [vmem:[%s7174_s1 + $0xb0] sm:$0xff]   ;;  %v1276_v21 = vpack.c.bf16 %v1272_v12, %v6022_v28  ;;  %v1616_v28 = vpack.c.bf16 %v6074_v47, %v6063_v43 }
  0x4c   : > { %5466 = vmatprep.subr.bf16.mxu0 %v5819_v24  ;;  %5478 = vmatprep.subr.bf16.mxu1 %v5820_v50  ;;  %v4850_v17 = vld [vmem:[%s5961_s26 + $0x90] sm:$0xff]  ;;  %v1845_v61 = vpack.c.bf16 %v6174_v35, %v6155_v19  ;;  %v2071_v19 = vpack.c.bf16 %v6215_v0, %v6189_v49  ;;  %v1958_v30 = vpack.c.bf16 %v6222_v2, %v6210_v63  ;;  %v4932_v49 = vld [vmem:[%s5961_s26 + $0xe1] sm:$0xff]  ;;  %v5833_v2 = vld [vmem:[%s7176_s3 + $0x18] sm:$0xff]  }
  0x4d   : > { %v1390_v22 = vpack.c.bf16 %v4850_v17, %v6015_v26  ;;  %v1502_v26 = vpack.c.bf16 %v6066_v44, %v6056_v41  ;;  %v1500_v41 = vld [vmem:[%s5961_s26 + $0x41] sm:$0xff]  ;;  %v4878_v43 = vld [vmem:[%s5961_s26 + $0x91] sm:$0xff]  ;;  %v1959_v35 = vpack.c.bf16 %v6250_v53, %v6225_v3  ;;  %v1960_v63 = vpack.c.bf16 %v4932_v49, %v6253_v56 }
  0x4e   : > { %5427 = vmatmul.mubr.msk.bf16.gmra.mxu0 %vm412_vm0, %v1048_v51  ;;  %5439 = vmatmul.mubr.msk.bf16.gmra.mxu1 %vm412_vm0, %v1162_v15  ;;  %v5827_v44 = vld [vmem:[%s7174_s1 + $0xe8] sm:$0xff]   ;;  %v1504_v47 = vpack.c.bf16 %v1500_v41, %v6093_v54  ;;  %v1618_v48 = vpack.c.bf16 %v4878_v43, %v6103_v57  ;;  %v1730_v54 = vpack.c.bf16 %v6144_v9, %v6134_v5  ;;  %v4896_v5 = vld [vmem:[%s5961_s26 + $0xe0] sm:$0xff] }
  0x4f   : > { %5446 = vmatprep.mubr.msk.bf16.mxu0 %vm412_vm0, %v1273_v29  ;;  %5458 = vmatprep.mubr.msk.bf16.mxu1 %vm412_vm0, %v1387_v37  ;;  %v1844_v57 = vpack.c.bf16 %v6150_v14, %v6141_v8  ;;  %v4914_v8 = vld [vmem:[%s5961_s26 + $0x130] sm:$0xff]  ;;  %v1732_v9 = vpack.c.bf16 %v4896_v5, %v6167_v32  ;;  %v1957_v14 = vpack.c.bf16 %v6206_v62, %v6184_v39  ;;  %v5832_v3 = vld [vmem:[%s7176_s3] sm:$0xff]  }
  0x50   : > { %v1846_v13 = vpack.c.bf16 %v4914_v8, %v6177_v36  ;;  %v2072_v32 = vpack.c.bf16 %v6230_v23, %v6218_v1  ;;  %v7188_v36 = vld [vmem:[#allocation4_spill] sm:$0xff]  ;;  %v5831_v1 = vld [vmem:[%s7176_s3 + $0x8] sm:$0xff]  }
  0x51   : > { %v2073_v39 = vpack.c.bf16 %v6257_v58, %v7188_v36  ;;  %v4950_v62 = vld [vmem:[%s5961_s26 + $0x131] sm:$0xff] }
  0x52   : > { %v2074_v0 = vpack.c.bf16 %v4950_v62, %v6260_v60  ;;  %v5834_v23 = vld [vmem:[%s7176_s3 + $0x10] sm:$0xff]  }
  0x56   : > { %5447 = vmatmul.mubr.msk.bf16.vlgmr.msra.gmra.mxu0 %vm412_vm0, %v1274_v34  ;;  %5459 = vmatmul.mubr.msk.bf16.vlgmr.msra.gmra.mxu1 %vm412_vm0, %v1388_v10  ;;  %v6420_v34 = vld [vmem:[%s7176_s3 + $0x28] sm:$0xff]  }
  0x57   : > { %5467 = vmatpush3.bf16.msra.mxu0 %v5819_v24  ;;  %5479 = vmatpush3.bf16.msra.mxu1 %v5820_v50  ;;  %7189 = vst [vmem:[#allocation4_spill] sm:$0xff] %v6420_v34 }
  0x58   : > { %5450 = vmatprep.mubr.msk.bf16.mxu0 %vm412_vm0, %v1275_v7  ;;  %5462 = vmatprep.mubr.msk.bf16.mxu1 %vm412_vm0, %v1389_v11 }
  0x59   : > { %5468 = vmatprep.subr.bf16.mxu0 %v5821_v16  ;;  %5480 = vmatprep.subr.bf16.mxu1 %v5822_v38 }
  0x5b   : > { %5469 = vmatpush3.bf16.msra.mxu0 %v5821_v16  ;;  %5481 = vmatpush3.bf16.msra.mxu1 %v5822_v38 }
  0x5c   : > { %5490 = vmatprep.subr.bf16.mxu0 %v5823_v18  ;;  %5502 = vmatprep.subr.bf16.mxu1 %v5824_v20 }
  0x5e   : > { %5451 = vmatmul.mubr.msk.bf16.gmra.mxu0 %vm412_vm0, %v1276_v21  ;;  %5463 = vmatmul.mubr.msk.bf16.gmra.mxu1 %vm412_vm0, %v1390_v22 }
  0x5f   : > { %5470 = vmatprep.mubr.msk.bf16.mxu0 %vm412_vm0, %v1501_v25  ;;  %5482 = vmatprep.mubr.msk.bf16.mxu1 %vm412_vm0, %v1615_v27 }
  0x66   : > { %5471 = vmatmul.mubr.msk.bf16.vlgmr.msra.gmra.mxu0 %vm412_vm0, %v1502_v26  ;;  %5483 = vmatmul.mubr.msk.bf16.vlgmr.msra.gmra.mxu1 %vm412_vm0, %v1616_v28 }
  0x67   : > { %5491 = vmatpush3.bf16.msra.mxu0 %v5823_v18  ;;  %5503 = vmatpush3.bf16.msra.mxu1 %v5824_v20 }
  0x68   : > { %5474 = vmatprep.mubr.msk.bf16.mxu0 %vm412_vm0, %v1503_v31  ;;  %5486 = vmatprep.mubr.msk.bf16.mxu1 %vm412_vm0, %v1617_v33 }
  0x69   : > { %5492 = vmatprep.subr.bf16.mxu0 %v5825_v40  ;;  %5504 = vmatprep.subr.bf16.mxu1 %v5826_v42 }
  0x6b   : > { %5493 = vmatpush3.bf16.msra.mxu0 %v5825_v40  ;;  %5505 = vmatpush3.bf16.msra.mxu1 %v5826_v42 }
  0x6c   : > { %5514 = vmatprep.subr.bf16.mxu0 %v5827_v44  ;;  %5526 = vmatprep.subr.bf16.mxu1 %v5828_v45 }
  0x6e   : > { %5475 = vmatmul.mubr.msk.bf16.gmra.mxu0 %vm412_vm0, %v1504_v47  ;;  %5487 = vmatmul.mubr.msk.bf16.gmra.mxu1 %vm412_vm0, %v1618_v48 }
  0x6f   : > { %5494 = vmatprep.mubr.msk.bf16.mxu0 %vm412_vm0, %v1729_v52  ;;  %5506 = vmatprep.mubr.msk.bf16.mxu1 %vm412_vm0, %v1843_v55 }
  0x76   : > { %5495 = vmatmul.mubr.msk.bf16.vlgmr.msra.gmra.mxu0 %vm412_vm0, %v1730_v54  ;;  %5507 = vmatmul.mubr.msk.bf16.vlgmr.msra.gmra.mxu1 %vm412_vm0, %v1844_v57  ;;  %v7184_v57 = vmov 0.0  }
  0x77   : > { %5515 = vmatpush3.bf16.msra.mxu0 %v5827_v44  ;;  %5527 = vmatpush3.bf16.msra.mxu1 %v5828_v45  ;;  %337 = vst.msk [vmem:[#allocation2 + $0x10] sm:$0xff] %vm334_vm1, %v7184_v57  ;;  %335 = vst.msk [vmem:[#allocation2] sm:$0xff] %vm334_vm1, %v7184_v57 }
  0x78   : > { %5498 = vmatprep.mubr.msk.bf16.mxu0 %vm412_vm0, %v1731_v59  ;;  %5510 = vmatprep.mubr.msk.bf16.mxu1 %vm412_vm0, %v1845_v61  ;;  %336 = vst.msk [vmem:[#allocation2 + $0x8] sm:$0xff] %vm334_vm1, %v7184_v57  ;;  %338 = vst.msk [vmem:[#allocation2 + $0x18] sm:$0xff] %vm334_vm1, %v7184_v57 }
  0x79   : > { %5516 = vmatprep.subr.bf16.mxu0 %v5829_v4  ;;  %5528 = vmatprep.subr.bf16.mxu1 %v5830_v6  ;;  %339 = vst.msk [vmem:[#allocation2 + $0x20] sm:$0xff] %vm334_vm1, %v7184_v57  ;;  %340 = vst.msk [vmem:[#allocation2 + $0x28] sm:$0xff] %vm334_vm1, %v7184_v57 }
  0x7a   : > { %341 = vst.msk [vmem:[#allocation2 + $0x30] sm:$0xff] %vm334_vm1, %v7184_v57  ;;  %342 = vst.msk [vmem:[#allocation2 + $0x38] sm:$0xff] %vm334_vm1, %v7184_v57 }
  0x7b   : > { %5517 = vmatpush3.bf16.msra.mxu0 %v5829_v4  ;;  %5529 = vmatpush3.bf16.msra.mxu1 %v5830_v6  ;;  %343 = vst.msk [vmem:[#allocation2 + $0x40] sm:$0xff] %vm334_vm1, %v7184_v57  ;;  %346 = vst.msk [vmem:[#allocation2 + $0x50] sm:$0xff] %vm334_vm1, %v7184_v57 }
  0x7c   : > { %5538 = vmatprep.subr.bf16.mxu0 %v5831_v1  ;;  %5550 = vmatprep.subr.bf16.mxu1 %v5833_v2  ;;  %347 = vst.msk [vmem:[#allocation2 + $0x58] sm:$0xff] %vm334_vm1, %v7184_v57  ;;  %348 = vst.msk [vmem:[#allocation2 + $0x60] sm:$0xff] %vm334_vm1, %v7184_v57 }
  0x7d   : > { %349 = vst.msk [vmem:[#allocation2 + $0x68] sm:$0xff] %vm334_vm1, %v7184_v57  ;;  %350 = vst.msk [vmem:[#allocation2 + $0x70] sm:$0xff] %vm334_vm1, %v7184_v57 }
  0x7e   : > { %5499 = vmatmul.mubr.msk.bf16.gmra.mxu0 %vm412_vm0, %v1732_v9  ;;  %5511 = vmatmul.mubr.msk.bf16.gmra.mxu1 %vm412_vm0, %v1846_v13  ;;  %351 = vst.msk [vmem:[#allocation2 + $0x78] sm:$0xff] %vm334_vm1, %v7184_v57  ;;  %352 = vst.msk [vmem:[#allocation2 + $0x80] sm:$0xff] %vm334_vm1, %v7184_v57 }
  0x7f   : > { %5518 = vmatprep.mubr.msk.bf16.mxu0 %vm412_vm0, %v1957_v14  ;;  %5530 = vmatprep.mubr.msk.bf16.mxu1 %vm412_vm0, %v2071_v19  ;;  %353 = vst.msk [vmem:[#allocation2 + $0x88] sm:$0xff] %vm334_vm1, %v7184_v57  ;;  %354 = vst.msk [vmem:[#allocation2 + $0x90] sm:$0xff] %vm334_vm1, %v7184_v57 }
  0x80   : > { %356 = vst.msk [vmem:[#allocation3] sm:$0xff] %vm334_vm1, %v7184_v57  ;;  %357 = vst.msk [vmem:[#allocation3 + $0x8] sm:$0xff] %vm334_vm1, %v7184_v57 }
  0x81   : > { %358 = vst.msk [vmem:[#allocation3 + $0x10] sm:$0xff] %vm334_vm1, %v7184_v57  ;;  %359 = vst.msk [vmem:[#allocation3 + $0x18] sm:$0xff] %vm334_vm1, %v7184_v57 }
  0x82   : > { %360 = vst.msk [vmem:[#allocation3 + $0x20] sm:$0xff] %vm334_vm1, %v7184_v57  ;;  %361 = vst.msk [vmem:[#allocation3 + $0x28] sm:$0xff] %vm334_vm1, %v7184_v57 }
  0x83   : > { %362 = vst.msk [vmem:[#allocation3 + $0x30] sm:$0xff] %vm334_vm1, %v7184_v57  ;;  %363 = vst.msk [vmem:[#allocation3 + $0x38] sm:$0xff] %vm334_vm1, %v7184_v57 }
  0x84   : > { %364 = vst.msk [vmem:[#allocation3 + $0x40] sm:$0xff] %vm334_vm1, %v7184_v57  ;;  %365 = vst.msk [vmem:[#allocation3 + $0x48] sm:$0xff] %vm334_vm1, %v7184_v57 }
  0x86   : > { %5519 = vmatmul.mubr.msk.bf16.vlgmr.msra.gmra.mxu0 %vm412_vm0, %v1958_v30  ;;  %5531 = vmatmul.mubr.msk.bf16.vlgmr.msra.gmra.mxu1 %vm412_vm0, %v2072_v32 }
  0x87   : > { %5522 = vmatprep.mubr.msk.bf16.mxu0 %vm412_vm0, %v1959_v35  ;;  %5534 = vmatprep.mubr.msk.bf16.mxu1 %vm412_vm0, %v2073_v39 }
  0x88   : > { %5539 = vmatpush3.bf16.msra.mxu0 %v5831_v1  ;;  %5551 = vmatpush3.bf16.msra.mxu1 %v5833_v2 }
  0x89   : > { %5540 = vmatprep.subr.bf16.mxu0 %v5832_v3  ;;  %5552 = vmatprep.subr.bf16.mxu1 %v5834_v23 }
  0x8c   : > { %5541 = vmatpush3.bf16.msra.mxu0 %v5832_v3  ;;  %5553 = vmatpush3.bf16.msra.mxu1 %v5834_v23 }
  0x8d   : > { %5562 = vmatprep.subr.bf16.mxu0 %v6420_v34 }
  0x8e   : > { %5523 = vmatmul.mubr.msk.bf16.gmra.mxu0 %vm412_vm0, %v1960_v63  ;;  %5535 = vmatmul.mubr.msk.bf16.gmra.mxu1 %vm412_vm0, %v2074_v0 }
  0xd6   : > { %v5352_v24 = vpop.f32.mrf.mxu0  ;;  %v5364_v46 = vpop.f32.mrf.mxu1 }
  0xd7   : > { %v557_v53 = vadd.f32 %v5364_v46, %v5352_v24 }
  0xd8   : > { %v459_v56 = vpop.f32.mrf.mxu0  ;;  %v548_v58 = vpop.f32.mrf.mxu1 }
  0xd9   : > { %v549_v60 = vadd.f32 %v548_v58, %v459_v56 }
  0xda   : > { %v5353_v50 = vpop.f32.mrf.mxu0  ;;  %v5365_v51 = vpop.f32.mrf.mxu1 }
  0xdb   : > { %v560_v15 = vadd.f32 %v5365_v51, %v5353_v50 }
  0xdc   : > { %v6413_v29 = vpop.f32.mrf.mxu0  ;;  %v6415_v37 = vpop.f32.mrf.mxu1 }
  0xde   : > { %v5356_v10 = vpop.f32.mrf.mxu0  ;;  %v5368_v7 = vpop.f32.mrf.mxu1 }
  0xdf   : > { %v573_v11 = vadd.f32 %v5368_v7, %v5356_v10 }
  0xe0   : > { %v475_v16 = vpop.f32.mrf.mxu0  ;;  %v564_v38 = vpop.f32.mrf.mxu1 }
  0xe1   : > { %v565_v12 = vadd.f32 %v564_v38, %v475_v16 }
  0xe2   : > { %v5357_v17 = vpop.f32.mrf.mxu0  ;;  %v5369_v18 = vpop.f32.mrf.mxu1 }
  0xe3   : > { %v576_v20 = vadd.f32 %v5369_v18, %v5357_v17 }
  0xe4   : > { %v6423_v21 = vpop.f32.mrf.mxu0  ;;  %v6425_v22 = vpop.f32.mrf.mxu1 }
  0xe6   : > { %v5376_v25 = vpop.f32.mrf.mxu0  ;;  %v5388_v26 = vpop.f32.mrf.mxu1 }
  0xe7   : > { %v687_v27 = vadd.f32 %v5376_v25, %v557_v53 }
  0xe8   : > { %v654_v28 = vpop.f32.mrf.mxu0  ;;  %v768_v40 = vpop.f32.mrf.mxu1 }
  0xe9   : > { %v801_v31 = vadd.f32 %v5388_v26, %v687_v27  ;;  %v685_v33 = vadd.f32 %v654_v28, %v549_v60 }
  0xea   : > { %v5377_v42 = vpop.f32.mrf.mxu0  ;;  %v5389_v44 = vpop.f32.mrf.mxu1 }
  0xeb   : > { %v799_v41 = vadd.f32 %v768_v40, %v685_v33  ;;  %v688_v43 = vadd.f32 %v5377_v42, %v560_v15 }
  0xec   : > { %v6427_v45 = vpop.f32.mrf.mxu0  ;;  %v6431_v48 = vpop.f32.mrf.mxu1 }
  0xed   : > { %v6429_v47 = vadd.f32 %v5389_v44, %v688_v43 }
  0xee   : > { %v5380_v52 = vpop.f32.mrf.mxu0  ;;  %v5392_v54 = vpop.f32.mrf.mxu1 }
  0xef   : > { %v691_v55 = vadd.f32 %v5380_v52, %v573_v11 }
  0xf0   : > { %v670_v59 = vpop.f32.mrf.mxu0  ;;  %v784_v6 = vpop.f32.mrf.mxu1 }
  0xf1   : > { %v805_v61 = vadd.f32 %v5392_v54, %v691_v55  ;;  %v689_v4 = vadd.f32 %v670_v59, %v565_v12 }
  0xf2   : > { %v5381_v5 = vpop.f32.mrf.mxu0  ;;  %v5393_v13 = vpop.f32.mrf.mxu1 }
  0xf3   : > { %v803_v8 = vadd.f32 %v784_v6, %v689_v4  ;;  %v692_v9 = vadd.f32 %v5381_v5, %v576_v20 }
  0xf4   : > { %v6489_v14 = vpop.f32.mrf.mxu0  ;;  %v6493_v30 = vpop.f32.mrf.mxu1 }
  0xf5   : > { %v6491_v19 = vadd.f32 %v5393_v13, %v692_v9 }
  0xf6   : > { %v5400_v32 = vpop.f32.mrf.mxu0  ;;  %v5412_v36 = vpop.f32.mrf.mxu1 }
  0xf7   : > { %v916_v35 = vadd.f32 %v5400_v32, %v801_v31 }
  0xf8   : > { %v883_v39 = vpop.f32.mrf.mxu0  ;;  %v998_v63 = vpop.f32.mrf.mxu1 }
  0xf9   : > { %v6495_v49 = vadd.f32 %v5412_v36, %v916_v35  ;;  %v914_v62 = vadd.f32 %v883_v39, %v799_v41 }
  0xfa   : > { %v5401_v0 = vpop.f32.mrf.mxu0  ;;  %v6499_v2 = vpop.f32.mrf.mxu1 }
  0xfb   : > { %v6497_v1 = vadd.f32 %v998_v63, %v914_v62  ;;  %v552_v63 = vadd.f32 %v6415_v37, %v6413_v29  ;;  %v568_v29 = vadd.f32 %v6425_v22, %v6423_v21 }
  0xfc   : > { %v886_v3 = vpop.f32.mrf.mxu0  ;;  %v6501_v23 = vpop.f32.mrf.mxu1 }
  0xfe   : > { %v5404_v24 = vpop.f32.mrf.mxu0  ;;  %v5416_v53 = vpop.f32.mrf.mxu1 }
  0xff   : > { %v920_v46 = vadd.f32 %v5404_v24, %v805_v61 }
 0x100   : > { %v899_v56 = vpop.f32.mrf.mxu0  ;;  %v1014_v50 = vpop.f32.mrf.mxu1 }
 0x101   : > { %v6503_v58 = vadd.f32 %v5416_v53, %v920_v46  ;;  %v918_v60 = vadd.f32 %v899_v56, %v803_v8  ;;  %v686_v53 = vadd.f32 %v6427_v45, %v552_v63 }
 0x102   : > { %v6505_v51 = vpop.f32.mrf.mxu0  ;;  %v6509_v10 = vpop.f32.mrf.mxu1 }
 0x103   : > { %v6507_v15 = vadd.f32 %v1014_v50, %v918_v60  ;;  %v800_v34 = vadd.f32 %v6431_v48, %v686_v53 }
 0x104   : > { %v6511_v7 = vpop.f32.mrf.mxu0  ;;  %v6513_v11 = vpop.f32.mrf.mxu1 }
 0x106   : > { %v5424_v16 = vpop.f32.mrf.mxu0  ;;  %v5436_v38 = vpop.f32.mrf.mxu1 }
 0x107   : > { %v1145_v45 = vadd.f32 %v5424_v16, %v6495_v49 }
 0x108   : > { %v1112_v12 = vpop.f32.mrf.mxu0  ;;  %v1226_v17 = vpop.f32.mrf.mxu1 }
 0x109   : > { %v1259_v22 = vadd.f32 %v5436_v38, %v1145_v45 }
 0x10a   : > { %v5425_v18 = vpop.f32.mrf.mxu0  ;;  %v6515_v20 = vpop.f32.mrf.mxu1 }
 0x10c   : > { %v1115_v25 = vpop.f32.mrf.mxu0  ;;  %v6517_v27 = vpop.f32.mrf.mxu1 }
 0x10e   : > { %v5428_v26 = vpop.f32.mrf.mxu0  ;;  %v6519_v28 = vpop.f32.mrf.mxu1 }
 0x10f   : > { %v1149_v38 = vadd.f32 %v5428_v26, %v6503_v58 }
 0x110   : > { %v6521_v31 = vpop.f32.mrf.mxu0  ;;  %v6523_v33 = vpop.f32.mrf.mxu1 }
 0x111   : > { %v1263_v58 = vadd.f32 %v6519_v28, %v1149_v38 }
 0x112   : > { %v6525_v40 = vpop.f32.mrf.mxu0  ;;  %v6527_v42 = vpop.f32.mrf.mxu1 }
 0x114   : > { %v6529_v41 = vpop.f32.mrf.mxu0  ;;  %v6531_v43 = vpop.f32.mrf.mxu1 }
 0x116   : > { %v5448_v44 = vpop.f32.mrf.mxu0  ;;  %v5460_v52 = vpop.f32.mrf.mxu1 }
 0x118   : > { %v1340_v55 = vpop.f32.mrf.mxu0  ;;  %v6533_v54 = vpop.f32.mrf.mxu1 }
 0x11a   : > { %v5449_v59 = vpop.f32.mrf.mxu0  ;;  %v6535_v61 = vpop.f32.mrf.mxu1 }
 0x11c   : > { %v1343_v4 = vpop.f32.mrf.mxu0  ;;  %v6537_v6 = vpop.f32.mrf.mxu1 }
 0x11e   : > { %v6539_v5 = vpop.f32.mrf.mxu0  ;;  %v6541_v8 = vpop.f32.mrf.mxu1 }
 0x120   : > { %v6543_v9 = vpop.f32.mrf.mxu0  ;;  %v6545_v13 = vpop.f32.mrf.mxu1 }
 0x121   : > { %7190 = vst [vmem:[#allocation5_spill] sm:$0xff] %v6545_v13 }
 0x122   : > { %v6547_v32 = vpop.f32.mrf.mxu0  ;;  %v6549_v35 = vpop.f32.mrf.mxu1 }
 0x123   : > { %7191 = vst [vmem:[#allocation6_spill] sm:$0xff] %v6549_v35 }
 0x124   : > { %v6551_v36 = vpop.f32.mrf.mxu0  ;;  %v6553_v39 = vpop.f32.mrf.mxu1 }
 0x125   : > { %7192 = vst [vmem:[#allocation7_spill] sm:$0xff] %v6551_v36  ;;  %7193 = vst [vmem:[#allocation8_spill] sm:$0xff] %v6553_v39  ;;  %v917_v39 = vadd.f32 %v5401_v0, %v6429_v47  ;;  %v915_v36 = vadd.f32 %v886_v3, %v800_v34  ;;  %v1143_v47 = vadd.f32 %v1112_v12, %v6497_v1 }
 0x126   : > { %v5472_v62 = vpop.f32.mrf.mxu0  ;;  %v6557_v24 = vpop.f32.mrf.mxu1  ;;  %v1373_v1 = vadd.f32 %v5448_v44, %v1259_v22 }
 0x127   : > { %v1032_v48 = vadd.f32 %v6499_v2, %v917_v39  ;;  %v1030_v21 = vadd.f32 %v6501_v23, %v915_v36  ;;  %v1257_v2 = vadd.f32 %v1226_v17, %v1143_v47 }
 0x128   : > { %v1568_v46 = vpop.f32.mrf.mxu0  ;;  %v6560_v56 = vpop.f32.mrf.mxu1 }
 0x129   : > { %v1146_v34 = vadd.f32 %v5425_v18, %v1032_v48  ;;  %v1144_v39 = vadd.f32 %v1115_v25, %v1030_v21  ;;  %v1371_v18 = vadd.f32 %v1340_v55, %v1257_v2  ;;  %v1487_v25 = vadd.f32 %v5460_v52, %v1373_v1 }
 0x12a   : > { %v5473_v60 = vpop.f32.mrf.mxu0  ;;  %v6562_v50 = vpop.f32.mrf.mxu1 }
 0x12b   : > { %7194 = vst [vmem:[#allocation9_spill] sm:$0xff] %v6562_v50  ;;  %v690_v50 = vadd.f32 %v6489_v14, %v568_v29  ;;  %v921_v14 = vadd.f32 %v6505_v51, %v6491_v19  ;;  %v1260_v23 = vadd.f32 %v6515_v20, %v1146_v34  ;;  %v1147_v19 = vadd.f32 %v6521_v31, %v6507_v15 }
 0x12c   : > { %v6564_v57 = vpop.f32.mrf.mxu0  ;;  %v6568_v35 = vpop.f32.mrf.mxu1  ;;  %v1258_v17 = vadd.f32 %v6517_v27, %v1144_v39  ;;  %v1485_v26 = vadd.f32 %v6533_v54, %v1371_v18 }
 0x12d   : > { %v804_v49 = vadd.f32 %v6493_v30, %v690_v50  ;;  %v1036_v30 = vadd.f32 %v6509_v10, %v921_v14  ;;  %v1374_v44 = vadd.f32 %v5449_v59, %v1260_v23  ;;  %v1601_v10 = vadd.f32 %v5472_v62, %v1487_v25 }
 0x12e   : > { %v6572_v37 = vpop.f32.mrf.mxu0  ;;  %v6575_v63 = vpop.f32.mrf.mxu1  ;;  %v1372_v55 = vadd.f32 %v1343_v4, %v1258_v17  ;;  %v1261_v15 = vadd.f32 %v6523_v33, %v1147_v19  ;;  %v1377_v59 = vadd.f32 %v6539_v5, %v1263_v58 }
 0x12f   : > { %v919_v29 = vadd.f32 %v6511_v7, %v804_v49  ;;  %v1150_v45 = vadd.f32 %v6525_v40, %v1036_v30  ;;  %v1488_v52 = vadd.f32 %v6535_v61, %v1374_v44  ;;  %v1715_v4 = vadd.f32 %v6557_v24, %v1601_v10  ;;  %v7196_v49 = vld [vmem:[#allocation5_spill] sm:$0xff]  ;;  %v7200_v30 = vld [vmem:[#allocation8_spill] sm:$0xff] }
 0x130   : > { %v6578_v13 = vpop.f32.mrf.mxu0  ;;  %v6582_v0 = vpop.f32.mrf.mxu1  ;;  %v1375_v28 = vadd.f32 %v6543_v9, %v1261_v15  ;;  %v1486_v54 = vadd.f32 %v6537_v6, %v1372_v55  ;;  %v1491_v5 = vadd.f32 %v6541_v8, %v1377_v59  ;;  %v7197_v6 = vld [vmem:[#allocation7_spill] sm:$0xff] }
 0x131   : > { %7195 = vst [vmem:[#allocation10_spill] sm:$0xff] %v6582_v0  ;;  %v1034_v7 = vadd.f32 %v6513_v11, %v919_v29  ;;  %v1599_v11 = vadd.f32 %v1568_v46, %v1485_v26  ;;  %v1264_v40 = vadd.f32 %v6527_v42, %v1150_v45  ;;  %v1602_v62 = vadd.f32 %v5473_v60, %v1488_v52  ;;  %v7199_v29 = vld [vmem:[#allocation6_spill] sm:$0xff] }
 0x132   : > { %v6584_v53 = vpop.f32.mrf.mxu0  ;;  %v6587_v3 = vpop.f32.mrf.mxu1  ;;  %v1600_v42 = vadd.f32 %v6564_v57, %v1486_v54  ;;  %v1489_v14 = vadd.f32 %v7196_v49, %v1375_v28  ;;  %v7198_v60 = vld [vmem:[#allocation9_spill] sm:$0xff] }
 0x133   : > { %v1148_v31 = vadd.f32 %v6529_v41, %v1034_v7  ;;  %v1378_v22 = vadd.f32 %v6547_v32, %v1264_v40  ;;  %v1713_v46 = vadd.f32 %v6560_v56, %v1599_v11  ;;  %v1716_v39 = vadd.f32 %v7198_v60, %v1602_v62 }
 0x134   : > { %v6592_v16 = vpop.f32.mrf.mxu0  ;;  %v6594_v12 = vpop.f32.mrf.mxu1  ;;  %v1603_v8 = vadd.f32 %v6578_v13, %v1489_v14  ;;  %v1714_v57 = vadd.f32 %v6568_v35, %v1600_v42 }
 0x135   : > { %v1262_v41 = vadd.f32 %v6531_v43, %v1148_v31  ;;  %v1605_v43 = vadd.f32 %v6572_v37, %v1491_v5  ;;  %v1492_v23 = vadd.f32 %v7199_v29, %v1378_v22  ;;  %v5836_v29 = vld [vmem:[%s7176_s3 + $0x20] sm:$0xff]  }
 0x136   : > { %v5496_v0 = vpop.f32.mrf.mxu0  ;;  %v5508_v36 = vpop.f32.mrf.mxu1 }
 0x137   : > { %v1829_v34 = vadd.f32 %v5496_v0, %v1715_v4  ;;  %v1376_v2 = vadd.f32 %v7197_v6, %v1262_v41  ;;  %v1606_v17 = vadd.f32 %v6584_v53, %v1492_v23  ;;  %v1719_v44 = vadd.f32 %v6575_v63, %v1605_v43 }
 0x138   : > { %v1796_v51 = vpop.f32.mrf.mxu0  ;;  %v1910_v50 = vpop.f32.mrf.mxu1  ;;  %v7201_v58 = vld [vmem:[#allocation10_spill] sm:$0xff] }
 0x139   : > { %v1827_v1 = vadd.f32 %v1796_v51, %v1713_v46  ;;  %v1943_v0 = vadd.f32 %v5508_v36, %v1829_v34  ;;  %v1490_v19 = vadd.f32 %v7200_v30, %v1376_v2  ;;  %v1717_v26 = vadd.f32 %v7201_v58, %v1603_v8 }
 0x13a   : > { %v5497_v20 = vpop.f32.mrf.mxu0  ;;  %v5509_v48 = vpop.f32.mrf.mxu1  ;;  %v1720_v15 = vadd.f32 %v6587_v3, %v1606_v17 }
 0x13b   : > { %v1830_v38 = vadd.f32 %v5497_v20, %v1716_v39  ;;  %v1941_v37 = vadd.f32 %v1910_v50, %v1827_v1  ;;  %v1604_v13 = vadd.f32 %v6592_v16, %v1490_v19  ;;  %v4961_v16 = vld [vmem:[%s7175_s2] ss:$0 sm:$0xff] }
 0x13c   : > { %v1799_v27 = vpop.f32.mrf.mxu0  ;;  %v1913_v47 = vpop.f32.mrf.mxu1 }
 0x13d   : > { %v1828_v51 = vadd.f32 %v1799_v27, %v1714_v57  ;;  %v1944_v35 = vadd.f32 %v5509_v48, %v1830_v38  ;;  %v1718_v27 = vadd.f32 %v6594_v12, %v1604_v13 }
 0x13e   : > { %v5500_v21 = vpop.f32.mrf.mxu0  ;;  %v5512_v33 = vpop.f32.mrf.mxu1 }
 0x13f   : > { %v1833_v36 = vadd.f32 %v5500_v21, %v1719_v44  ;;  %v1942_v52 = vadd.f32 %v1913_v47, %v1828_v51  ;;  %v7203_v44 = vmov 0.0  }
 0x140   : > { %v1812_v61 = vpop.f32.mrf.mxu0  ;;  %v1926_v9 = vpop.f32.mrf.mxu1  ;;  %345 = vst.msk [vmem:[#allocation2 + $0x48] sm:$0x1] %vm344_vm2, %v7203_v44  ;;  %355 = vst.msk [vmem:[#allocation2 + $0x98] sm:$0x1] %vm344_vm2, %v7203_v44 }
 0x141   : > { %v1831_v31 = vadd.f32 %v1812_v61, %v1717_v26  ;;  %v1947_v48 = vadd.f32 %v5512_v33, %v1833_v36 }
 0x142   : > { %v5501_v24 = vpop.f32.mrf.mxu0  ;;  %v5513_v32 = vpop.f32.mrf.mxu1 }
 0x143   : > { %v1834_v11 = vadd.f32 %v5501_v24, %v1720_v15  ;;  %v1945_v3 = vadd.f32 %v1926_v9, %v1831_v31 }
 0x144   : > { %v1815_v56 = vpop.f32.mrf.mxu0  ;;  %v1929_v18 = vpop.f32.mrf.mxu1 }
 0x145   : > { %v1832_v62 = vadd.f32 %v1815_v56, %v1718_v27  ;;  %v1948_v12 = vadd.f32 %v5513_v32, %v1834_v11 }
 0x146   : > { %v5520_v25 = vpop.f32.mrf.mxu0  ;;  %v5532_v45 = vpop.f32.mrf.mxu1 }
 0x147   : > { %v2057_v7 = vadd.f32 %v5520_v25, %v1943_v0  ;;  %v1946_v24 = vadd.f32 %v1929_v18, %v1832_v62  ;;  %v7202_v18 = vld [vmem:[#allocation4_spill] sm:$0xff] }
 0x148   : > { %v2024_v55 = vpop.f32.mrf.mxu0  ;;  %v2138_v10 = vpop.f32.mrf.mxu1 }
 0x149   : > { %v2055_v20 = vadd.f32 %v2024_v55, %v1941_v37  ;;  %v2171_v59 = vadd.f32 %v5532_v45, %v2057_v7  ;;  %v4962_v37 = vld [vmem:[%s7177_s4] ss:$0 sm:$0xff] }
 0x14a   : > { %v5521_v53 = vpop.f32.mrf.mxu0  ;;  %v5533_v50 = vpop.f32.mrf.mxu1 }
 0x14b   : > { %v2058_v63 = vadd.f32 %v5521_v53, %v1944_v35  ;;  %v2169_v28 = vadd.f32 %v2138_v10, %v2055_v20  ;;  %v2186_v47 = vadd.f32 %v4961_v16, %v2171_v59  ;;  %v6667_v20 = vld [vmem:[%s7177_s4 + $0x1] ss:$0 sm:$0xff] }
 0x14c   : > { %v2027_v40 = vpop.f32.mrf.mxu0  ;;  %v2141_v4 = vpop.f32.mrf.mxu1 }
 0x14d   : > { %v2172_v21 = vadd.f32 %v5533_v50, %v2058_v63  ;;  %v2056_v54 = vadd.f32 %v2027_v40, %v1942_v52  ;;  %v2184_v34 = vadd.f32 %v4961_v16, %v2169_v28  ;;  %v4986_v28 = vld [vmem:[%s7177_s4 + $0x2] ss:$0 sm:$0xff] }
 0x14e   : > { %v5524_v41 = vpop.f32.mrf.mxu0  ;;  %v5536_v46 = vpop.f32.mrf.mxu1 }
 0x14f   : > { %v2187_v22 = vadd.f32 %v4961_v16, %v2172_v21  ;;  %v2170_v61 = vadd.f32 %v2141_v4, %v2056_v54  ;;  %v2061_v5 = vadd.f32 %v5524_v41, %v1947_v48 }
 0x150   : > { %v2040_v42 = vpop.f32.mrf.mxu0  ;;  %v2154_v2 = vpop.f32.mrf.mxu1 }
 0x151   : > { %v2193_v49 = vpack.c.bf16 %v2187_v22, %v2186_v47  ;;  %v2185_v14 = vadd.f32 %v4961_v16, %v2170_v61  ;;  %v2059_v6 = vadd.f32 %v2040_v42, %v1945_v3  ;;  %v2175_v39 = vadd.f32 %v5536_v46, %v2061_v5  ;;  %v2517_v61 = vld [vmem:[#allocation2 + $0x40] sm:$0xff] }
 0x152   : > { %v5525_v33 = vpop.f32.mrf.mxu0  ;;  %v5537_v9 = vpop.f32.mrf.mxu1 }
 0x153   : > { %v2192_v60 = vpack.c.bf16 %v2185_v14, %v2184_v34  ;;  %v2062_v43 = vadd.f32 %v5525_v33, %v1948_v12  ;;  %v2173_v23 = vadd.f32 %v2154_v2, %v2059_v6  ;;  %v2190_v57 = vadd.f32 %v4961_v16, %v2175_v39  ;;  %v2526_v6 = vld [vmem:[#allocation2 + $0x41] sm:$0xff] }
 0x154   : > { %v2043_v1 = vpop.f32.mrf.mxu0  ;;  %v2157_v56 = vpop.f32.mrf.mxu1 }
 0x155   : > { %v2176_v8 = vadd.f32 %v5537_v9, %v2062_v43  ;;  %v2060_v32 = vadd.f32 %v2043_v1, %v1946_v24  ;;  %5542 = vmatprep.mubr.msk.bf16.mxu0 %vm412_vm0, %v2192_v60  ;;  %5554 = vmatprep.mubr.msk.bf16.mxu1 %vm412_vm0, %v2192_v60  ;;  %v2188_v30 = vadd.f32 %v4961_v16, %v2173_v23 }
 0x156   : > { %5543 = vmatmul.mubr.msk.bf16.vlgmr.msra.gmra.mxu0 %vm412_vm0, %v2193_v49  ;;  %5555 = vmatmul.mubr.msk.bf16.vlgmr.msra.gmra.mxu1 %vm412_vm0, %v2193_v49 }
 0x157   : > { %v2191_v0 = vadd.f32 %v4961_v16, %v2176_v8  ;;  %v2174_v38 = vadd.f32 %v2157_v56, %v2060_v32  ;;  %5563 = vmatpush3.bf16.msra.mxu0 %v7202_v18 }
 0x158   : > { %5564 = vmatprep.subr.bf16.mxu0 %v5836_v29 }
 0x159   : > { %v2195_v19 = vpack.c.bf16 %v2191_v0, %v2190_v57  ;;  %v2189_v17 = vadd.f32 %v4961_v16, %v2174_v38 }
 0x15b   : > { %v2194_v25 = vpack.c.bf16 %v2189_v17, %v2188_v30  ;;  %5565 = vmatpush3.bf16.msra.mxu0 %v5836_v29 }
 0x15d   : > { %5546 = vmatprep.mubr.msk.bf16.mxu0 %vm412_vm0, %v2194_v25  ;;  %5558 = vmatprep.mubr.msk.bf16.mxu1 %vm412_vm0, %v2194_v25 }
 0x15e   : > { %5547 = vmatmul.mubr.msk.bf16.gmra.mxu0 %vm412_vm0, %v2195_v19  ;;  %5559 = vmatmul.mubr.msk.bf16.gmra.mxu1 %vm412_vm0, %v2195_v19 }
 0x15f   : > { %5566 = vmatprep.mubr.msk.bf16.mxu0 %vm412_vm0, %v2192_v60 }
 0x166   : > { %5567 = vmatmul.mubr.msk.bf16.vlgmr.msra.gmra.mxu0 %vm412_vm0, %v2193_v49 }
 0x167   : > { %5570 = vmatprep.mubr.msk.bf16.mxu0 %vm412_vm0, %v2194_v25 }
 0x16e   : > { %5571 = vmatmul.mubr.msk.bf16.gmra.mxu0 %vm412_vm0, %v2195_v19 }
 0x216   : > { %v5544_v51 = vpop.f32.mrf.mxu0  ;;  %v6658_v7 = vpop.f32.mrf.mxu1 }
 0x217   : > { %v2274_v45 = vadd.f32 %v5544_v51, %v4962_v37 }
 0x218   : > { %v2265_v58 = vpop.f32.mrf.mxu0  ;;  %v2355_v26 = vpop.f32.mrf.mxu1 }
 0x219   : > { %2478 = vst.msk [vmem:[#allocation2 + $0x10] sm:$0xff] %vm334_vm1, %v2274_v45  ;;  %v2266_v13 = vadd.f32 %v4962_v37, %v2265_v58  ;;  %v2356_v31 = vadd.f32 %v6667_v20, %v2355_v26 }
 0x21a   : > { %v5545_v55 = vpop.f32.mrf.mxu0  ;;  %v6661_v35 = vpop.f32.mrf.mxu1 }
 0x21b   : > { %2476 = vst.msk [vmem:[#allocation2] sm:$0xff] %vm334_vm1, %v2266_v13  ;;  %v2277_v36 = vadd.f32 %v5545_v55, %v4962_v37 }
 0x21c   : > { %v2268_v10 = vpop.f32.mrf.mxu0  ;;  %v2358_v15 = vpop.f32.mrf.mxu1 }
 0x21d   : > { %2479 = vst.msk [vmem:[#allocation2 + $0x18] sm:$0xff] %vm334_vm1, %v2277_v36  ;;  %v2269_v53 = vadd.f32 %v4962_v37, %v2268_v10  ;;  %v2359_v52 = vadd.f32 %v6667_v20, %v2358_v15 }
 0x21e   : > { %v5548_v59 = vpop.f32.mrf.mxu0 }
 0x21f   : > { %2477 = vst.msk [vmem:[#allocation2 + $0x8] sm:$0xff] %vm334_vm1, %v2269_v53  ;;  %v2585_v63 = vpack.c.bf16 %v2359_v52, %v2356_v31  ;;  %v2290_v50 = vadd.f32 %v5548_v59, %v4962_v37 }
 0x220   : > { %v2281_v27 = vpop.f32.mrf.mxu0  ;;  %v2495_v36 = vld [vmem:[#allocation2 + $0x10] sm:$0xff] }
 0x221   : > { %2482 = vst.msk [vmem:[#allocation2 + $0x30] sm:$0xff] %vm334_vm1, %v2290_v50  ;;  %v2282_v11 = vadd.f32 %v4962_v37, %v2281_v27  ;;  %5582 = vmatprep.mubr.msk.bf16.mxu1 %vm334_vm1, %v2585_v63 }
 0x222   : > { %v5549_v16 = vpop.f32.mrf.mxu0  ;;  %v2493_v52 = vld [vmem:[#allocation2] sm:$0xff] }
 0x223   : > { %2480 = vst.msk [vmem:[#allocation2 + $0x20] sm:$0xff] %vm334_vm1, %v2282_v11  ;;  %v2293_v40 = vadd.f32 %v5549_v16, %v4962_v37  ;;  %v2563_v16 = vld [vmem:[#allocation2 + $0x90] sm:$0xff] }
 0x224   : > { %v2284_v48 = vpop.f32.mrf.mxu0  ;;  %v2496_v8 = vld [vmem:[#allocation2 + $0x18] sm:$0xff] }
 0x225   : > { %2483 = vst.msk [vmem:[#allocation2 + $0x38] sm:$0xff] %vm334_vm1, %v2293_v40  ;;  %v2285_v21 = vadd.f32 %v4962_v37, %v2284_v48  ;;  %v6689_v25 = vld [vmem:[#allocation2 + $0x11] sm:$0xff] }
 0x226   : > { %v5568_v54 = vpop.f32.mrf.mxu0  ;;  %v2494_v45 = vld [vmem:[#allocation2 + $0x8] sm:$0xff]  ;;  %v2511_v31 = vmax.f32 %v2495_v36, %v6689_v25 }
 0x227   : > { %2481 = vst.msk [vmem:[#allocation2 + $0x28] sm:$0xff] %vm334_vm1, %v2285_v21  ;;  %v2454_v4 = vadd.f32 %v5568_v54, %v4986_v28  ;;  %v2501_v58 = vld [vmem:[#allocation2 + $0x1] sm:$0xff]  ;;  %v6692_v26 = vld [vmem:[#allocation2 + $0x9] sm:$0xff] }
 0x228   : > { %v2445_v3 = vpop.f32.mrf.mxu0  ;;  %v2499_v22 = vld [vmem:[#allocation2 + $0x30] sm:$0xff]  ;;  %v2509_v63 = vmax.f32 %v2493_v52, %v2501_v58  ;;  %v2510_v50 = vmax.f32 %v2494_v45, %v6692_v26  ;;  %v2520_v27 = vmax.f32 %v2511_v31, %v2496_v8 }
 0x229   : > { %2487 = vst.msk [vmem:[#allocation2 + $0x60] sm:$0xff] %vm334_vm1, %v2454_v4  ;;  %v2446_v62 = vadd.f32 %v4986_v28, %v2445_v3 }
 0x22a   : > { %v5569_v41 = vpop.f32.mrf.mxu0  ;;  %v2497_v2 = vld [vmem:[#allocation2 + $0x20] sm:$0xff]  ;;  %v2518_v40 = vmax.f32 %v2509_v63, %v2494_v45  ;;  %v2519_v48 = vmax.f32 %v2510_v50, %v2495_v36 }
 0x22b   : > { %2485 = vst.msk [vmem:[#allocation2 + $0x50] sm:$0xff] %vm334_vm1, %v2446_v62  ;;  %v2457_v47 = vadd.f32 %v5569_v41, %v4986_v28  ;;  %v6684_v33 = vld [vmem:[#allocation2 + $0x19] sm:$0xff] }
 0x22c   : > { %v2448_v5 = vpop.f32.mrf.mxu0  ;;  %v2500_v46 = vld [vmem:[#allocation2 + $0x38] sm:$0xff]  ;;  %v2512_v57 = vmax.f32 %v2496_v8, %v6684_v33  ;;  %v2529_v54 = vmax.f32 %v2520_v27, %v6684_v33  ;;  %v2528_v33 = vmax.f32 %v2519_v48, %v6689_v25 }
 0x22d   : > { %v2507_v12 = vld [vmem:[#allocation2 + $0x31] sm:$0xff]  ;;  %v2508_v42 = vld [vmem:[#allocation2 + $0x39] sm:$0xff]  ;;  %2488 = vst.msk [vmem:[#allocation2 + $0x68] sm:$0xff] %vm334_vm1, %v2457_v47  ;;  %v2449_v34 = vadd.f32 %v4986_v28, %v2448_v5 }
 0x22e   : > { %v2515_v49 = vmax.f32 %v2499_v22, %v2507_v12  ;;  %v2516_v14 = vmax.f32 %v2500_v46, %v2508_v42  ;;  %v5572_v24 = vpop.f32.mrf.mxu0  ;;  %v2498_v60 = vld [vmem:[#allocation2 + $0x28] sm:$0xff]  ;;  %v2521_v53 = vmax.f32 %v2512_v57, %v2497_v2 }
 0x22f   : > { %v2505_v39 = vld [vmem:[#allocation2 + $0x21] sm:$0xff]  ;;  %v2506_v43 = vld [vmem:[#allocation2 + $0x29] sm:$0xff]  ;;  %2486 = vst.msk [vmem:[#allocation2 + $0x58] sm:$0xff] %vm334_vm1, %v2449_v34  ;;  %v2470_v9 = vadd.f32 %v5572_v24, %v4986_v28 }
 0x230   : > { %v2524_v1 = vmax.f32 %v2515_v49, %v2500_v46  ;;  %v2525_v29 = vmax.f32 %v2516_v14, %v2517_v61  ;;  %v2513_v23 = vmax.f32 %v2497_v2, %v2505_v39  ;;  %v2461_v32 = vpop.f32.mrf.mxu0  ;;  %v2514_v56 = vmax.f32 %v2498_v60, %v2506_v43  ;;  %v2572_v61 = vld [vmem:[#allocation2 + $0x91] sm:$0xff] }
 0x231   : > { %2491 = vst.msk [vmem:[#allocation2 + $0x80] sm:$0xff] %vm334_vm1, %v2470_v9  ;;  %v2462_v0 = vadd.f32 %v4986_v28, %v2461_v32  ;;  %v2530_v11 = vmax.f32 %v2521_v53, %v2505_v39  ;;  %v2527_v2 = vmax.f32 %v2518_v40, %v6692_v26  ;;  %v2364_v40 = vadd.f32 %v6658_v7, %v6667_v20  ;;  %v4993_v7 = vld [vmem:[%s7178_s5] ss:$0 sm:$0xff] }
 0x232   : > { %v2533_v38 = vmax.f32 %v2524_v1, %v2508_v42  ;;  %v2534_v18 = vmax.f32 %v2525_v29, %v2526_v6  ;;  %v2522_v30 = vmax.f32 %v2513_v23, %v2498_v60  ;;  %v5573_v19 = vpop.f32.mrf.mxu0  ;;  %v2523_v17 = vmax.f32 %v2514_v56, %v2499_v22  ;;  %v2541_v23 = vld [vmem:[#allocation2 + $0x60] sm:$0xff]  ;;  %v2539_v8 = vld [vmem:[#allocation2 + $0x50] sm:$0xff] }
 0x233   : > { %2489 = vst.msk [vmem:[#allocation2 + $0x70] sm:$0xff] %vm334_vm1, %v2462_v0  ;;  %v2473_v44 = vadd.f32 %v5573_v19, %v4986_v28  ;;  %v2535_v45 = vpack.c.bf16 %v2528_v33, %v2527_v2 }
 0x234   : > { %v2538_v37 = vpack.c.bf16 %v2534_v18, %v2533_v38  ;;  %v2531_v51 = vmax.f32 %v2522_v30, %v2506_v43  ;;  %v2464_v13 = vpop.f32.mrf.mxu0  ;;  %v2532_v55 = vmax.f32 %v2523_v17, %v2507_v12  ;;  %v2549_v3 = vld [vmem:[#allocation2 + $0x61] sm:$0xff]  ;;  %v2536_v12 = vpack.c.bf16 %v2530_v11, %v2529_v54  ;;  %v5560_v38 = vpop.f32.mrf.mxu1 }
 0x235   : > { %2492 = vst.msk [vmem:[#allocation2 + $0x88] sm:$0xff] %vm334_vm1, %v2473_v44  ;;  %v2465_v10 = vadd.f32 %v4986_v28, %v2464_v13  ;;  %v2542_v28 = vld [vmem:[#allocation2 + $0x68] sm:$0xff]  ;;  %v2557_v32 = vmax.f32 %v2541_v23, %v2549_v3  ;;  %v2609_v50 = vsel %vm334_vm1, %v2535_v45, 0  ;;  %v2367_v11 = vadd.f32 %v6661_v35, %v6667_v20 }
 0x236   : > { %5766 = vmatprep.subr.msk.bf16.mxu1 %vm334_vm1, %v2538_v37  ;;  %v2618_v15 = vsel %vm334_vm1, %v2538_v37, 0  ;;  %v2537_v59 = vpack.c.bf16 %v2532_v55, %v2531_v51  ;;  %v2540_v62 = vld [vmem:[#allocation2 + $0x58] sm:$0xff]  ;;  %v2612_v51 = vsel %vm334_vm1, %v2536_v12, 0  ;;  %v2371_v26 = vpop.f32.mrf.mxu1 }
 0x237   : > { %5575 = vmatpush3.bf16.xpose.msra.mxu1 %v2618_v15  ;;  %2490 = vst.msk [vmem:[#allocation2 + $0x78] sm:$0xff] %vm334_vm1, %v2465_v10  ;;  %v2547_v14 = vld [vmem:[#allocation2 + $0x51] sm:$0xff]  ;;  %v2548_v6 = vld [vmem:[#allocation2 + $0x59] sm:$0xff]  ;;  %v2566_v58 = vmax.f32 %v2557_v32, %v2542_v28  ;;  %v2372_v48 = vadd.f32 %v6667_v20, %v2371_v26 }
 0x238   : > { %5767 = vmatprep.subr.msk.bf16.mxu1 %vm334_vm1, %v2537_v59  ;;  %v2545_v4 = vld [vmem:[#allocation2 + $0x80] sm:$0xff]  ;;  %v2615_v46 = vsel %vm334_vm1, %v2537_v59, 0  ;;  %v2555_v57 = vmax.f32 %v2539_v8, %v2547_v14  ;;  %v2556_v0 = vmax.f32 %v2540_v62, %v2548_v6  ;;  %v5561_v31 = vpop.f32.mrf.mxu1 }
 0x239   : > { %v2383_v54 = vadd.f32 %v5561_v31, %v6667_v20 }
 0x23a   : > { %v2550_v21 = vld [vmem:[#allocation2 + $0x69] sm:$0xff]  ;;  %v2564_v36 = vmax.f32 %v2555_v57, %v2540_v62  ;;  %v2565_v10 = vmax.f32 %v2556_v0, %v2541_v23  ;;  %v2374_v63 = vpop.f32.mrf.mxu1 }
 0x23b   : > { %v2558_v5 = vmax.f32 %v2542_v28, %v2550_v21  ;;  %v2543_v49 = vld [vmem:[#allocation2 + $0x70] sm:$0xff]  ;;  %v2575_v15 = vmax.f32 %v2566_v58, %v2550_v21  ;;  %v2586_v28 = vpack.c.bf16 %v2367_v11, %v2364_v40 }
 0x23c   : > { %v2546_v41 = vld [vmem:[#allocation2 + $0x88] sm:$0xff]  ;;  %v2573_v52 = vmax.f32 %v2564_v36, %v2548_v6  ;;  %v2574_v59 = vmax.f32 %v2565_v10, %v2549_v3 }
 0x23d   : > { %v2553_v47 = vld [vmem:[#allocation2 + $0x81] sm:$0xff]  ;;  %v2554_v22 = vld [vmem:[#allocation2 + $0x89] sm:$0xff]  ;;  %v2567_v56 = vmax.f32 %v2558_v5, %v2543_v49 }
 0x23e   : > { %v2561_v42 = vmax.f32 %v2545_v4, %v2553_v47  ;;  %v2562_v34 = vmax.f32 %v2546_v41, %v2554_v22  ;;  %v2544_v24 = vld [vmem:[#allocation2 + $0x78] sm:$0xff]  ;;  %v2581_v27 = vpack.c.bf16 %v2574_v59, %v2573_v52 }
 0x23f   : > { %5577 = vmatpush3.bf16.xpose.msra.mxu1 %v2615_v46  ;;  %v2551_v60 = vld [vmem:[#allocation2 + $0x71] sm:$0xff]  ;;  %v2552_v39 = vld [vmem:[#allocation2 + $0x79] sm:$0xff] }
 0x240   : > { %5768 = vmatprep.subr.msk.bf16.mxu1 %vm334_vm1, %v2536_v12  ;;  %v2570_v43 = vmax.f32 %v2561_v42, %v2546_v41  ;;  %v2571_v9 = vmax.f32 %v2562_v34, %v2563_v16  ;;  %v2559_v1 = vmax.f32 %v2543_v49, %v2551_v60  ;;  %v2560_v29 = vmax.f32 %v2544_v24, %v2552_v39 }
 0x241   : > { %v2576_v55 = vmax.f32 %v2567_v56, %v2551_v60  ;;  %v2375_v16 = vadd.f32 %v6667_v20, %v2374_v63 }
 0x242   : > { %v2579_v18 = vmax.f32 %v2570_v43, %v2554_v22  ;;  %v2580_v30 = vmax.f32 %v2571_v9, %v2572_v61  ;;  %v2568_v19 = vmax.f32 %v2559_v1, %v2544_v24  ;;  %v2569_v17 = vmax.f32 %v2560_v29, %v2545_v4 }
 0x243   : > { %v2582_v53 = vpack.c.bf16 %v2576_v55, %v2575_v15  ;;  %v2587_v21 = vpack.c.bf16 %v2375_v16, %v2372_v48  ;;  %v2380_v4 = vadd.f32 %v5560_v38, %v6667_v20 }
 0x244   : > { %v2584_v25 = vpack.c.bf16 %v2580_v30, %v2579_v18  ;;  %v2577_v44 = vmax.f32 %v2568_v19, %v2552_v39  ;;  %v2578_v37 = vmax.f32 %v2569_v17, %v2553_v47 }
 0x245   : > { %v2588_v35 = vpack.c.bf16 %v2383_v54, %v2380_v4 }
 0x246   : > { %5590 = vmatprep.subr.bf16.mxu0 %v2584_v25  ;;  %v2583_v13 = vpack.c.bf16 %v2578_v37, %v2577_v44 }
 0x247   : > { %5579 = vmatpush3.bf16.xpose.msra.mxu1 %v2612_v51  ;;  %5591 = vmatpush3.bf16.msra.mxu0 %v2584_v25 }
 0x248   : > { %5769 = vmatprep.subr.msk.bf16.mxu1 %vm334_vm1, %v2535_v45  ;;  %5592 = vmatprep.subr.bf16.mxu0 %v2583_v13 }
 0x24b   : > { %5593 = vmatpush3.bf16.msra.mxu0 %v2583_v13 }
 0x24c   : > { %5594 = vmatprep.subr.bf16.mxu0 %v2582_v53 }
 0x24f   : > { %5581 = vmatpush3.bf16.xpose.msra.mxu1 %v2609_v50  ;;  %5595 = vmatpush3.bf16.msra.mxu0 %v2582_v53 }
 0x250   : > { %5596 = vmatprep.subr.bf16.mxu0 %v2581_v27 }
 0x253   : > { %5597 = vmatpush3.bf16.msra.mxu0 %v2581_v27 }
 0x256   : > { %5583 = vmatmul.mubr.msk.bf16.vlgmr.msra.gmra.mxu1 %vm334_vm1, %v2586_v28 }
 0x257   : > { %5586 = vmatprep.mubr.msk.bf16.mxu1 %vm334_vm1, %v2587_v21 }
 0x25e   : > { %5587 = vmatmul.mubr.msk.bf16.gmra.mxu1 %vm334_vm1, %v2588_v35 }
 0x316   : > { %v5584_v3 = vpop.f32.mrf.mxu1 }
 0x317   : > { %v2663_v62 = vadd.f32 %v5584_v3, %v4993_v7  ;;  %v2856_v3 = vld [vmem:[%s7179_s6 + $0x8] sm:$0xff] }
 0x318   : > { %v2654_v41 = vpop.f32.mrf.mxu1 }
 0x319   : > { %v2655_v47 = vadd.f32 %v4993_v7, %v2654_v41  ;;  %v2692_v22 = vsel %vm2685_vm3, %v2663_v62, -inf  ;;  %v2855_v41 = vld [vmem:[%s7179_s6] sm:$0xff] }
 0x31a   : > { %2693 = vmax.xlane.f32.xlu1 %v2692_v22  ;;  %v5585_v61 = vpop.f32.mrf.mxu1  ;;  %v2858_v22 = vld [vmem:[%s7179_s6 + $0x18] sm:$0xff] }
 0x31b   : > { %v2666_v5 = vadd.f32 %v5585_v61, %v4993_v7  ;;  %v2686_v46 = vsel %vm2685_vm3, %v2655_v47, -inf  ;;  %v2859_v61 = vld [vmem:[%s7179_s6 + $0x20] sm:$0xff] }
 0x31c   : > { %v2657_v20 = vpop.f32.mrf.mxu1  ;;  %2687 = vmax.xlane.f32.xlu0 %v2686_v46  ;;  %v2861_v46 = vld [vmem:[%s7179_s6 + $0x30] sm:$0xff] }
 0x31d   : > { %v2658_v12 = vadd.f32 %v4993_v7, %v2657_v20  ;;  %v2695_v42 = vsel %vm2685_vm3, %v2666_v5, -inf  ;;  %v2862_v20 = vld [vmem:[%s7179_s6 + $0x38] sm:$0xff] }
 0x31e   : > { %2696 = vmax.xlane.f32.xlu1 %v2695_v42  ;;  %v5588_v34 = vpop.f32.mrf.mxu1 }
 0x31f   : > { %v2689_v49 = vsel %vm2685_vm3, %v2658_v12, -inf  ;;  %v2679_v33 = vadd.f32 %v5588_v34, %v4993_v7 }
 0x320   : > { %v2670_v14 = vpop.f32.mrf.mxu1  ;;  %2690 = vmax.xlane.f32.xlu0 %v2689_v49 }
 0x321   : > { %v2671_v6 = vadd.f32 %v4993_v7, %v2670_v14  ;;  %v2704_v1 = vsel %vm2685_vm3, %v2679_v33, -inf }
 0x322   : > { %v5589_v2 = vpop.f32.mrf.mxu1 }
 0x323   : > { %v2698_v24 = vsel %vm2685_vm3, %v2671_v6, -inf  ;;  %v2682_v43 = vadd.f32 %v5589_v2, %v4993_v7 }
 0x324   : > { %v2673_v60 = vpop.f32.mrf.mxu1  ;;  %2699 = vmax.xlane.f32.xlu0 %v2698_v24 }
 0x325   : > { %v2674_v39 = vadd.f32 %v4993_v7, %v2673_v60  ;;  %v2707_v29 = vsel %vm2685_vm3, %v2682_v43, -inf }
 0x327   : > { %v2701_v9 = vsel %vm2685_vm3, %v2674_v39, -inf }
 0x328   : > { %2702 = vmax.xlane.f32.xlu1 %v2701_v9  ;;  %2705 = vmax.xlane.f32.xlu0 %v2704_v1 }
 0x32c   : > { %2708 = vmax.xlane.f32.xlu1 %v2707_v29 }
 0x3a3   : > { %v2694_v23 = vpop.xlane.xlu1 %2693 }
 0x3a4   : > { %v2712_v8 = vsub.f32 %v2663_v62, %v2694_v23  ;;  %v5878_v62 = vmov 0  }
 0x3a5   : > { %v2688_v32 = vpop.xlane.xlu0 %2687  ;;  %5798 = vset.pattern.permute.xlu1 %v5878_v62  ;;  %5797 = vset.pattern.permute.xlu0 %v5878_v62 }
 0x3a6   : > { %v2710_v56 = vsub.f32 %v2655_v47, %v2688_v32  ;;  %v2722_v0 = vmul.f32 1.442695, %v2712_v8  ;;  %v2857_v47 = vld [vmem:[%s7179_s6 + $0x10] sm:$0xff] }
 0x3a7   : > { %v2697_v57 = vpop.xlane.xlu1 %2696 }
 0x3a8   : > { %v2718_v38 = vmul.f32 1.442695, %v2710_v56  ;;  %v2713_v18 = vsub.f32 %v2666_v5, %v2697_v57  ;;  %v2860_v5 = vld [vmem:[%s7179_s6 + $0x28] sm:$0xff] }
 0x3a9   : > { %v2691_v30 = vpop.xlane.xlu0 %2690 }
 0x3aa   : > { %5837 = vpow2.f32 %v2718_v38  ;;  %v2711_v19 = vsub.f32 %v2658_v12, %v2691_v30  ;;  %v2724_v17 = vmul.f32 1.442695, %v2713_v18 }
 0x3ab   : > { %5839 = vpow2.f32 %v2722_v0 }
 0x3ac   : > { %v2720_v25 = vmul.f32 1.442695, %v2711_v19 }
 0x3ad   : > { %v2700_v44 = vpop.xlane.xlu0 %2699 }
 0x3ae   : > { %5841 = vpow2.f32 %v2720_v25  ;;  %v2714_v37 = vsub.f32 %v2671_v6, %v2700_v44 }
 0x3af   : > { %5843 = vpow2.f32 %v2724_v17 }
 0x3b0   : > { %v2726_v51 = vmul.f32 1.442695, %v2714_v37  ;;  %v5002_v37 = vld [vmem:[%s7180_s7 + $0x1] sm:$0x1] }
 0x3b1   : > { %v2703_v45 = vpop.xlane.xlu1 %2702  ;;  %v2706_v58 = vpop.xlane.xlu0 %2705  ;;  %5770 = vmatprep.subr.msk.bf16.mxu0 %vm2958_vm4, %v5002_v37 }
 0x3b2   : > { %5845 = vpow2.f32 %v2726_v51  ;;  %v2715_v26 = vsub.f32 %v2674_v39, %v2703_v45  ;;  %v2716_v13 = vsub.f32 %v2679_v33, %v2706_v58  ;;  %v2960_v51 = vsel %vm2958_vm4, %v5002_v37, 0  ;;  %v2931_v45 = vld [vmem:[%s7180_s7] sm:$0x1] }
 0x3b3   : > { %5771 = vmatprep.subr.msk.bf16.mxu1 %vm2958_vm4, %v2931_v45  ;;  %v3040_v58 = vsel %vm2958_vm4, %v2931_v45, 0 }
 0x3b4   : > { %v2728_v55 = vmul.f32 1.442695, %v2715_v26  ;;  %v2730_v36 = vmul.f32 1.442695, %v2716_v13  ;;  %5617 = vmatpush3.bf16.msra.mxu1 %v3040_v58  ;;  %v5011_v26 = vld [vmem:[%s7180_s7 + $0x2] sm:$0x1] }
 0x3b5   : > { %v2709_v10 = vpop.xlane.xlu1 %2708  ;;  %v5016_v13 = vld [vmem:[%s7180_s7 + $0x3] sm:$0x1] }
 0x3b6   : > { %5847 = vpow2.f32 %v2728_v55  ;;  %v2717_v15 = vsub.f32 %v2682_v43, %v2709_v10  ;;  %5773 = vmatprep.subr.msk.bf16.mxu1 %vm2958_vm4, %v5016_v13 }
 0x3b7   : > { %v6731_v31 = vpop.eup %5837  ;;  %5849 = vpow2.f32 %v2730_v36 }
 0x3b8   : > { %v2732_v53 = vmul.f32 1.442695, %v2717_v15  ;;  %v2734_v52 = vsel %vm2685_vm3, %v6731_v31, 0.0  ;;  %v6735_v59 = vpop.eup %5839 }
 0x3b9   : > { %2735 = vadd.xlane.f32.xlu0 %v2734_v52  ;;  %v2740_v50 = vsel %vm2685_vm3, %v6735_v59, 0.0 }
 0x3ba   : > { %5851 = vpow2.f32 %v2732_v53 }
 0x3bb   : > { %v5842_v63 = vpop.eup %5841 }
 0x3bc   : > { %v2737_v27 = vsel %vm2685_vm3, %v5842_v63, 0.0  ;;  %v5844_v11 = vpop.eup %5843 }
 0x3bd   : > { %2741 = vadd.xlane.f32.xlu0 %v2740_v50  ;;  %2738 = vadd.xlane.f32.xlu1 %v2737_v27  ;;  %v2743_v40 = vsel %vm2685_vm3, %v5844_v11, 0.0 }
 0x3bf   : > { %v6740_v16 = vpop.eup %5845 }
 0x3c0   : > { %v2746_v48 = vsel %vm2685_vm3, %v6740_v16, 0.0 }
 0x3c1   : > { %2744 = vadd.xlane.f32.xlu1 %v2743_v40  ;;  %2747 = vadd.xlane.f32.xlu0 %v2746_v48 }
 0x3c3   : > { %v5848_v28 = vpop.eup %5847 }
 0x3c4   : > { %v6745_v21 = vpop.eup %5849  ;;  %v2749_v54 = vsel %vm2685_vm3, %v5848_v28, 0.0 }
 0x3c5   : > { %2750 = vadd.xlane.f32.xlu1 %v2749_v54  ;;  %v2752_v4 = vsel %vm2685_vm3, %v6745_v21, 0.0 }
 0x3c6   : > { %2753 = vadd.xlane.f32.xlu0 %v2752_v4 }
 0x3c7   : > { %v5852_v35 = vpop.eup %5851 }
 0x3c8   : > { %v2755_v7 = vsel %vm2685_vm3, %v5852_v35, 0.0 }
 0x3c9   : > { %2756 = vadd.xlane.f32.xlu1 %v2755_v7 }
 0x3da   : > { %2870 = vperm.xlu1 %5798, %v2856_v3  }
 0x3dc   : > { %2865 = vperm.xlu0 %5797, %v2855_v41  }
 0x3de   : > { %2875 = vperm.xlu1 %5798, %v2857_v47  }
 0x3e2   : > { %2880 = vperm.xlu1 %5798, %v2858_v22  }
 0x3e6   : > { %2885 = vperm.xlu1 %5798, %v2859_v61  }
 0x3ea   : > { %2890 = vperm.xlu1 %5798, %v2860_v5  }
 0x3ee   : > { %2895 = vperm.xlu1 %5798, %v2861_v46  }
 0x3f2   : > { %2900 = vperm.xlu1 %5798, %v2862_v20  }
 0x442   : > { %v2736_v12 = vpop.xlane.xlu0 %2735 }
 0x443   : > { %5853 = vrcp.f32 %v2736_v12 }
 0x446   : > { %v2739_v42 = vpop.xlane.xlu1 %2738  ;;  %v2742_v34 = vpop.xlane.xlu0 %2741 }
 0x447   : > { %5855 = vrcp.f32 %v2739_v42 }
 0x448   : > { %5857 = vrcp.f32 %v2742_v34 }
 0x44a   : > { %v2745_v49 = vpop.xlane.xlu1 %2744  ;;  %v2748_v14 = vpop.xlane.xlu0 %2747 }
 0x44b   : > { %5859 = vrcp.f32 %v2745_v49 }
 0x44c   : > { %5861 = vrcp.f32 %v2748_v14 }
 0x44e   : > { %v2751_v6 = vpop.xlane.xlu1 %2750 }
 0x44f   : > { %5863 = vrcp.f32 %v2751_v6  ;;  %v2754_v2 = vpop.xlane.xlu0 %2753 }
 0x450   : > { %5865 = vrcp.f32 %v2754_v2  ;;  %v5854_v33 = vpop.eup %5853  ;;  %v3134_v2 = vsel %vm2958_vm4, %v5011_v26, 0 }
 0x451   : > { %v2766_v39 = vmul.f32 %v5854_v33, %v6731_v31  ;;  %v3236_v33 = vsel %vm2958_vm4, %v5016_v13, 0  ;;  %v5037_v13 = vld [vmem:[%s7180_s7 + $0x7] sm:$0x1] }
 0x452   : > { %v2757_v24 = vpop.xlane.xlu1 %2756 }
 0x453   : > { %5867 = vrcp.f32 %v2757_v24  ;;  %v5023_v24 = vld [vmem:[%s7180_s7 + $0x5] sm:$0x1] }
 0x454   : > { %v5856_v60 = vpop.eup %5855  ;;  %v3391_v45 = vsel %vm2958_vm4, %v5023_v24, 0 }
 0x455   : > { %v2767_v43 = vmul.f32 %v5856_v60, %v5842_v63  ;;  %v5858_v9 = vpop.eup %5857  ;;  %v5022_v60 = vld [vmem:[%s7180_s7 + $0x4] sm:$0x1] }
 0x456   : > { %v2768_v23 = vmul.f32 %v5858_v9, %v6735_v59  ;;  %v2871_v55 = vpop.permute.xlu1 %2870  ;;  %v3209_v9 = vld [vmem:[#allocation3 + $0x7] sm:$0xff]  ;;  %v3471_v58 = vsel %vm2958_vm4, %v5022_v60, 0 }
 0x457   : > { %v2774_v1 = vpack.c.bf16 %v2767_v43, %v2766_v39  ;;  %v2866_v52 = vpop.permute.xlu0 %2865  ;;  %v3107_v43 = vld [vmem:[#allocation3 + $0x8] sm:$0xff] }
 0x458   : > { %v5860_v29 = vpop.eup %5859 }
 0x459   : > { %v2769_v8 = vmul.f32 %v5860_v29, %v5844_v11  ;;  %5598 = vmatprep.mubr.msk.bf16.mxu0 %vm2685_vm3, %v2774_v1  ;;  %v5862_v32 = vpop.eup %5861 }
 0x45a   : > { %v2770_v0 = vmul.f32 %v5862_v32, %v6740_v16  ;;  %v2876_v36 = vpop.permute.xlu1 %2875 }
 0x45b   : > { %v2775_v56 = vpack.c.bf16 %v2769_v8, %v2768_v23 }
 0x45c   : > { %v5864_v57 = vpop.eup %5863 }
 0x45d   : > { %5599 = vmatmul.mubr.msk.bf16.vlgmr.msra.gmra.mxu0 %vm2685_vm3, %v2775_v56  ;;  %v2771_v38 = vmul.f32 %v5864_v57, %v5848_v28  ;;  %v5866_v18 = vpop.eup %5865 }
 0x45e   : > { %v2772_v17 = vmul.f32 %v5866_v18, %v6745_v21  ;;  %5607 = vmatpush3.bf16.msra.mxu0 %v2960_v51  ;;  %v2881_v10 = vpop.permute.xlu1 %2880 }
 0x45f   : > { %v2776_v30 = vpack.c.bf16 %v2771_v38, %v2770_v0  ;;  %5772 = vmatprep.subr.msk.bf16.mxu0 %vm2958_vm4, %v5011_v26  ;;  %v5032_v26 = vld [vmem:[%s7180_s7 + $0x6] sm:$0x1] }
 0x460   : > { %v5868_v19 = vpop.eup %5867 }
 0x461   : > { %5602 = vmatprep.mubr.msk.bf16.mxu0 %vm2685_vm3, %v2776_v30  ;;  %v2773_v25 = vmul.f32 %v5868_v19, %v5852_v35 }
 0x462   : > { %v2886_v15 = vpop.permute.xlu1 %2885 }
 0x463   : > { %v2777_v44 = vpack.c.bf16 %v2773_v25, %v2772_v17 }
 0x465   : > { %5603 = vmatmul.mubr.msk.bf16.gmra.mxu0 %vm2685_vm3, %v2777_v44 }
 0x466   : > { %v2891_v31 = vpop.permute.xlu1 %2890 }
 0x46a   : > { %v2896_v16 = vpop.permute.xlu1 %2895 }
 0x46e   : > { %v2901_v35 = vpop.permute.xlu1 %2900 }
 0x51d   : > { %v5600_v53 = vpop.f32.mrf.mxu0 }
 0x51e   : > { %v2905_v59 = vmul.f32 %v5600_v53, %v2876_v36  ;;  %v5059_v53 = vld [vmem:[%s7180_s7 + $0x8] sm:$0x1] }
 0x51f   : > { %v2824_v63 = vpop.f32.mrf.mxu0 }
 0x520   : > { %2913 = vst.msk [vmem:[#allocation3 + $0x20] sm:$0xff] %vm334_vm1, %v2905_v59  ;;  %v2903_v50 = vmul.f32 %v2866_v52, %v2824_v63  ;;  %v3903_v59 = vsel %vm2958_vm4, %v5059_v53, 0  ;;  %v5069_v63 = vld [vmem:[%s7180_s7 + $0xa] sm:$0x1] }
 0x521   : > { %v5601_v27 = vpop.f32.mrf.mxu0 }
 0x522   : > { %2911 = vst.msk [vmem:[#allocation3 + $0x10] sm:$0xff] %vm334_vm1, %v2903_v50  ;;  %v2906_v11 = vmul.f32 %v5601_v27, %v2881_v10  ;;  %v3565_v10 = vsel %vm2958_vm4, %v5032_v26, 0  ;;  %v5074_v50 = vld [vmem:[%s7180_s7 + $0xb] sm:$0x1]  ;;  %v3997_v27 = vsel %vm2958_vm4, %v5069_v63, 0 }
 0x523   : > { %v2827_v40 = vpop.f32.mrf.mxu0 }
 0x524   : > { %2914 = vst.msk [vmem:[#allocation3 + $0x28] sm:$0xff] %vm334_vm1, %v2906_v11  ;;  %v2904_v48 = vmul.f32 %v2871_v55, %v2827_v40  ;;  %v4099_v11 = vsel %vm2958_vm4, %v5074_v50, 0  ;;  %v5096_v40 = vld [vmem:[%s7180_s7 + $0xc] sm:$0x1] }
 0x525   : > { %v5604_v28 = vpop.f32.mrf.mxu0 }
 0x526   : > { %2912 = vst.msk [vmem:[#allocation3 + $0x18] sm:$0xff] %vm334_vm1, %v2904_v48  ;;  %v2909_v21 = vmul.f32 %v5604_v28, %v2896_v16  ;;  %v5097_v16 = vld [vmem:[%s7180_s7 + $0xd] sm:$0x1]  ;;  %v4335_v28 = vsel %vm2958_vm4, %v5096_v40, 0 }
 0x527   : > { %v2840_v54 = vpop.f32.mrf.mxu0  ;;  %v2921_v14 = vld [vmem:[#allocation3 + $0x20] sm:$0xff]  ;;  %v4255_v48 = vsel %vm2958_vm4, %v5097_v16, 0 }
 0x528   : > { %2917 = vst.msk [vmem:[#allocation3 + $0x40] sm:$0xff] %vm334_vm1, %v2909_v21  ;;  %v2907_v4 = vmul.f32 %v2886_v15, %v2840_v54  ;;  %v3667_v15 = vsel %vm2958_vm4, %v5037_v13, 0  ;;  %v5106_v21 = vld [vmem:[%s7180_s7 + $0xe] sm:$0x1]  ;;  %v5111_v54 = vld [vmem:[%s7180_s7 + $0xf] sm:$0x1] }
 0x529   : > { %v5605_v7 = vpop.f32.mrf.mxu0  ;;  %v2932_v41 = vld [vmem:[#allocation3 + $0xf] sm:$0xff] }
 0x52a   : > { %2915 = vst.msk [vmem:[#allocation3 + $0x30] sm:$0xff] %vm334_vm1, %v2907_v4  ;;  %v2910_v3 = vmul.f32 %v5605_v7, %v2901_v35  ;;  %v2919_v22 = vld [vmem:[#allocation3 + $0x10] sm:$0xff]  ;;  %v6849_v17 = vpack.c.bf16 %v2932_v41, %v3209_v9  ;;  %v4429_v4 = vsel %vm2958_vm4, %v5106_v21, 0  ;;  %v4531_v35 = vsel %vm2958_vm4, %v5111_v54, 0 }
 0x52b   : > { %v2843_v62 = vpop.f32.mrf.mxu0  ;;  %v2935_v61 = vld [vmem:[#allocation3 + $0x27] sm:$0xff]  ;;  %v6847_v19 = vpack.c.bf16 %v2919_v22, %v3107_v43  ;;  %v7034_v43 = vld [vmem:[%s7181_s8] ss:$0 sm:$0xff] }
 0x52c   : > { %2918 = vst.msk [vmem:[#allocation3 + $0x48] sm:$0xff] %vm334_vm1, %v2910_v3  ;;  %v2908_v47 = vmul.f32 %v2891_v31, %v2843_v62  ;;  %v2922_v5 = vld [vmem:[#allocation3 + $0x28] sm:$0xff] }
 0x52d   : > { %v2933_v46 = vld [vmem:[#allocation3 + $0x17] sm:$0xff]  ;;  %v2934_v12 = vld [vmem:[#allocation3 + $0x1f] sm:$0xff]  ;;  %v6815_v6 = vpack.c.bf16 %v2922_v5, %v2921_v14  ;;  %v5060_v31 = vld [vmem:[%s7180_s7 + $0x9] sm:$0x1] }
 0x52e   : > { %v2920_v20 = vld [vmem:[#allocation3 + $0x18] sm:$0xff]  ;;  %2916 = vst.msk [vmem:[#allocation3 + $0x38] sm:$0xff] %vm334_vm1, %v2908_v47  ;;  %v6809_v42 = vpack.c.bf16 %v2933_v46, %v2932_v41  ;;  %v6813_v49 = vpack.c.bf16 %v2935_v61, %v2934_v12  ;;  %v6861_v44 = vpack.c.bf16 %v2934_v12, %v2933_v46  ;;  %v3823_v52 = vsel %vm2958_vm4, %v5060_v31, 0 }
 0x52f   : > { %v6811_v34 = vpack.c.bf16 %v2920_v20, %v2919_v22  ;;  %v2925_v18 = vld [vmem:[#allocation3 + $0x40] sm:$0xff]  ;;  %v6859_v25 = vpack.c.bf16 %v2921_v14, %v2920_v20 }
 0x530   : > { %5608 = vmatprep.mubr.msk.bf16.mxu0 %vm334_vm1, %v6809_v42 }
 0x531   : > { %5618 = vmatprep.mubr.msk.bf16.mxu1 %vm334_vm1, %v6811_v34  ;;  %5609 = vmatmul.mubr.msk.bf16.vlgmr.msra.gmra.mxu0 %vm334_vm1, %v6813_v49  ;;  %v2936_v39 = vld [vmem:[#allocation3 + $0x2f] sm:$0xff] }
 0x532   : > { %5619 = vmatmul.mubr.msk.bf16.vlgmr.msra.gmra.mxu1 %vm334_vm1, %v6815_v6  ;;  %5627 = vmatpush3.bf16.msra.mxu0 %v3134_v2  ;;  %v2923_v1 = vld [vmem:[#allocation3 + $0x30] sm:$0xff]  ;;  %v6865_v51 = vpack.c.bf16 %v2936_v39, %v2935_v61 }
 0x533   : > { %5637 = vmatpush3.bf16.msra.mxu1 %v3236_v33  ;;  %5774 = vmatprep.subr.msk.bf16.mxu0 %vm2958_vm4, %v5023_v24  ;;  %v2939_v29 = vld [vmem:[#allocation3 + $0x47] sm:$0xff]  ;;  %v6863_v37 = vpack.c.bf16 %v2923_v1, %v2922_v5 }
 0x534   : > { %5775 = vmatprep.subr.msk.bf16.mxu1 %vm2958_vm4, %v5022_v60  ;;  %v2926_v23 = vld [vmem:[#allocation3 + $0x48] sm:$0xff] }
 0x535   : > { %v2937_v8 = vld [vmem:[#allocation3 + $0x37] sm:$0xff]  ;;  %v2938_v56 = vld [vmem:[#allocation3 + $0x3f] sm:$0xff]  ;;  %v6841_v30 = vpack.c.bf16 %v2926_v23, %v2925_v18 }
 0x536   : > { %v2924_v32 = vld [vmem:[#allocation3 + $0x38] sm:$0xff]  ;;  %v6835_v57 = vpack.c.bf16 %v2937_v8, %v2936_v39  ;;  %v6839_v38 = vpack.c.bf16 %v2939_v29, %v2938_v56  ;;  %v6887_v36 = vpack.c.bf16 %v2938_v56, %v2937_v8 }
 0x537   : > { %v6837_v0 = vpack.c.bf16 %v2924_v32, %v2923_v1  ;;  %v6885_v55 = vpack.c.bf16 %v2925_v18, %v2924_v32  ;;  %v3328_v32 = vld [vmem:[%s5961_s26 + $0x10] sm:$0xff] }
 0x538   : > { %5612 = vmatprep.mubr.msk.bf16.mxu0 %vm334_vm1, %v6835_v57 }
 0x539   : > { %5622 = vmatprep.mubr.msk.bf16.mxu1 %vm334_vm1, %v6837_v0  ;;  %5613 = vmatmul.mubr.msk.bf16.gmra.mxu0 %vm334_vm1, %v6839_v38 }
 0x53a   : > { %5623 = vmatmul.mubr.msk.bf16.gmra.mxu1 %vm334_vm1, %v6841_v30  ;;  %5628 = vmatprep.mubr.msk.bf16.mxu0 %vm334_vm1, %v6847_v19 }
 0x53b   : > { %5638 = vmatprep.mubr.msk.bf16.mxu1 %vm334_vm1, %v6849_v17 }
 0x541   : > { %5629 = vmatmul.mubr.msk.bf16.vlgmr.msra.gmra.mxu0 %vm334_vm1, %v6859_v25 }
 0x542   : > { %5639 = vmatmul.mubr.msk.bf16.vlgmr.msra.gmra.mxu1 %vm334_vm1, %v6861_v44  ;;  %5632 = vmatprep.mubr.msk.bf16.mxu0 %vm334_vm1, %v6863_v37 }
 0x543   : > { %5642 = vmatprep.mubr.msk.bf16.mxu1 %vm334_vm1, %v6865_v51  ;;  %5647 = vmatpush3.bf16.msra.mxu0 %v3391_v45 }
 0x544   : > { %5657 = vmatpush3.bf16.msra.mxu1 %v3471_v58  ;;  %5776 = vmatprep.subr.msk.bf16.mxu0 %vm2958_vm4, %v5032_v26 }
 0x545   : > { %5777 = vmatprep.subr.msk.bf16.mxu1 %vm2958_vm4, %v5037_v13  ;;  %v3329_v13 = vld [vmem:[%s5961_s26 + $0x18] sm:$0xff] }
 0x549   : > { %5633 = vmatmul.mubr.msk.bf16.gmra.mxu0 %vm334_vm1, %v6885_v55 }
 0x54a   : > { %5643 = vmatmul.mubr.msk.bf16.gmra.mxu1 %vm334_vm1, %v6887_v36  ;;  %5648 = vmatprep.mubr.msk.bf16.mxu0 %vm334_vm1, %v6809_v42 }
 0x54b   : > { %5658 = vmatprep.mubr.msk.bf16.mxu1 %vm334_vm1, %v6811_v34 }
 0x551   : > { %5649 = vmatmul.mubr.msk.bf16.vlgmr.msra.gmra.mxu0 %vm334_vm1, %v6813_v49 }
 0x552   : > { %5659 = vmatmul.mubr.msk.bf16.vlgmr.msra.gmra.mxu1 %vm334_vm1, %v6815_v6  ;;  %5652 = vmatprep.mubr.msk.bf16.mxu0 %vm334_vm1, %v6835_v57 }
 0x553   : > { %5662 = vmatprep.mubr.msk.bf16.mxu1 %vm334_vm1, %v6837_v0  ;;  %5667 = vmatpush3.bf16.msra.mxu0 %v3565_v10 }
 0x554   : > { %5677 = vmatpush3.bf16.msra.mxu1 %v3667_v15  ;;  %5778 = vmatprep.subr.msk.bf16.mxu0 %vm2958_vm4, %v5060_v31 }
 0x555   : > { %5779 = vmatprep.subr.msk.bf16.mxu1 %vm2958_vm4, %v5059_v53 }
 0x559   : > { %5653 = vmatmul.mubr.msk.bf16.gmra.mxu0 %vm334_vm1, %v6839_v38 }
 0x55a   : > { %5663 = vmatmul.mubr.msk.bf16.gmra.mxu1 %vm334_vm1, %v6841_v30  ;;  %5668 = vmatprep.mubr.msk.bf16.mxu0 %vm334_vm1, %v6847_v19 }
 0x55b   : > { %5678 = vmatprep.mubr.msk.bf16.mxu1 %vm334_vm1, %v6849_v17 }
 0x561   : > { %5669 = vmatmul.mubr.msk.bf16.vlgmr.msra.gmra.mxu0 %vm334_vm1, %v6859_v25 }
 0x562   : > { %5679 = vmatmul.mubr.msk.bf16.vlgmr.msra.gmra.mxu1 %vm334_vm1, %v6861_v44  ;;  %5672 = vmatprep.mubr.msk.bf16.mxu0 %vm334_vm1, %v6863_v37 }
 0x563   : > { %5682 = vmatprep.mubr.msk.bf16.mxu1 %vm334_vm1, %v6865_v51  ;;  %5687 = vmatpush3.bf16.msra.mxu0 %v3823_v52 }
 0x564   : > { %5697 = vmatpush3.bf16.msra.mxu1 %v3903_v59  ;;  %5780 = vmatprep.subr.msk.bf16.mxu0 %vm2958_vm4, %v5069_v63  ;;  %v3327_v59 = vld [vmem:[%s5961_s26 + $0x8] sm:$0xff] }
 0x565   : > { %5781 = vmatprep.subr.msk.bf16.mxu1 %vm2958_vm4, %v5074_v50 }
 0x569   : > { %5673 = vmatmul.mubr.msk.bf16.gmra.mxu0 %vm334_vm1, %v6885_v55 }
 0x56a   : > { %5683 = vmatmul.mubr.msk.bf16.gmra.mxu1 %vm334_vm1, %v6887_v36  ;;  %5688 = vmatprep.mubr.msk.bf16.mxu0 %vm334_vm1, %v6809_v42 }
 0x56b   : > { %5698 = vmatprep.mubr.msk.bf16.mxu1 %vm334_vm1, %v6811_v34 }
 0x571   : > { %5689 = vmatmul.mubr.msk.bf16.vlgmr.msra.gmra.mxu0 %vm334_vm1, %v6813_v49 }
 0x572   : > { %5699 = vmatmul.mubr.msk.bf16.vlgmr.msra.gmra.mxu1 %vm334_vm1, %v6815_v6  ;;  %5692 = vmatprep.mubr.msk.bf16.mxu0 %vm334_vm1, %v6835_v57 }
 0x573   : > { %5702 = vmatprep.mubr.msk.bf16.mxu1 %vm334_vm1, %v6837_v0  ;;  %5707 = vmatpush3.bf16.msra.mxu0 %v3997_v27 }
 0x574   : > { %5717 = vmatpush3.bf16.msra.mxu1 %v4099_v11  ;;  %5782 = vmatprep.subr.msk.bf16.mxu0 %vm2958_vm4, %v5097_v16 }
 0x575   : > { %5783 = vmatprep.subr.msk.bf16.mxu1 %vm2958_vm4, %v5096_v40 }
 0x579   : > { %5693 = vmatmul.mubr.msk.bf16.gmra.mxu0 %vm334_vm1, %v6839_v38 }
 0x57a   : > { %5703 = vmatmul.mubr.msk.bf16.gmra.mxu1 %vm334_vm1, %v6841_v30  ;;  %5708 = vmatprep.mubr.msk.bf16.mxu0 %vm334_vm1, %v6847_v19 }
 0x57b   : > { %5718 = vmatprep.mubr.msk.bf16.mxu1 %vm334_vm1, %v6849_v17 }
 0x581   : > { %5709 = vmatmul.mubr.msk.bf16.vlgmr.msra.gmra.mxu0 %vm334_vm1, %v6859_v25 }
 0x582   : > { %5719 = vmatmul.mubr.msk.bf16.vlgmr.msra.gmra.mxu1 %vm334_vm1, %v6861_v44  ;;  %5712 = vmatprep.mubr.msk.bf16.mxu0 %vm334_vm1, %v6863_v37 }
 0x583   : > { %5722 = vmatprep.mubr.msk.bf16.mxu1 %vm334_vm1, %v6865_v51  ;;  %5727 = vmatpush3.bf16.msra.mxu0 %v4255_v48 }
 0x584   : > { %5737 = vmatpush3.bf16.msra.mxu1 %v4335_v28  ;;  %5784 = vmatprep.subr.msk.bf16.mxu0 %vm2958_vm4, %v5106_v21  ;;  %v3332_v28 = vld [vmem:[%s5961_s26 + $0x30] sm:$0xff] }
 0x585   : > { %5785 = vmatprep.subr.msk.bf16.mxu1 %vm2958_vm4, %v5111_v54 }
 0x589   : > { %5713 = vmatmul.mubr.msk.bf16.gmra.mxu0 %vm334_vm1, %v6885_v55 }
 0x58a   : > { %5723 = vmatmul.mubr.msk.bf16.gmra.mxu1 %vm334_vm1, %v6887_v36  ;;  %5728 = vmatprep.mubr.msk.bf16.mxu0 %vm334_vm1, %v6809_v42 }
 0x58b   : > { %5738 = vmatprep.mubr.msk.bf16.mxu1 %vm334_vm1, %v6811_v34 }
 0x591   : > { %5729 = vmatmul.mubr.msk.bf16.vlgmr.msra.gmra.mxu0 %vm334_vm1, %v6813_v49 }
 0x592   : > { %5739 = vmatmul.mubr.msk.bf16.vlgmr.msra.gmra.mxu1 %vm334_vm1, %v6815_v6  ;;  %5732 = vmatprep.mubr.msk.bf16.mxu0 %vm334_vm1, %v6835_v57 }
 0x593   : > { %5742 = vmatprep.mubr.msk.bf16.mxu1 %vm334_vm1, %v6837_v0  ;;  %5747 = vmatpush3.bf16.msra.mxu0 %v4429_v4 }
 0x594   : > { %5757 = vmatpush3.bf16.msra.mxu1 %v4531_v35 }
 0x599   : > { %5733 = vmatmul.mubr.msk.bf16.gmra.mxu0 %vm334_vm1, %v6839_v38 }
 0x59a   : > { %5743 = vmatmul.mubr.msk.bf16.gmra.mxu1 %vm334_vm1, %v6841_v30  ;;  %5748 = vmatprep.mubr.msk.bf16.mxu0 %vm334_vm1, %v6847_v19 }
 0x59b   : > { %5758 = vmatprep.mubr.msk.bf16.mxu1 %vm334_vm1, %v6849_v17  ;;  %v3326_v17 = vld [vmem:[%s5961_s26] sm:$0xff] }
 0x5a1   : > { %5749 = vmatmul.mubr.msk.bf16.vlgmr.msra.gmra.mxu0 %vm334_vm1, %v6859_v25 }
 0x5a2   : > { %5759 = vmatmul.mubr.msk.bf16.vlgmr.msra.gmra.mxu1 %vm334_vm1, %v6861_v44  ;;  %5752 = vmatprep.mubr.msk.bf16.mxu0 %vm334_vm1, %v6863_v37 }
 0x5a3   : > { %5762 = vmatprep.mubr.msk.bf16.mxu1 %vm334_vm1, %v6865_v51 }
 0x5a9   : > { %5753 = vmatmul.mubr.msk.bf16.gmra.mxu0 %vm334_vm1, %v6885_v55 }
 0x5aa   : > { %5763 = vmatmul.mubr.msk.bf16.gmra.mxu1 %vm334_vm1, %v6887_v36 }
 0x5f1   : > { %v5610_v7 = vpop.f32.mrf.mxu0 }
 0x5f2   : > { %v5620_v3 = vpop.f32.mrf.mxu1 }
 0x5f3   : > { %v2996_v62 = vpop.f32.mrf.mxu0  ;;  %v3085_v2 = vadd.f32 %v5620_v3, %v5610_v7 }
 0x5f4   : > { %v3076_v41 = vpop.f32.mrf.mxu1 }
 0x5f5   : > { %v5611_v47 = vpop.f32.mrf.mxu0  ;;  %v3077_v60 = vadd.f32 %v3076_v41, %v2996_v62  ;;  %v3330_v62 = vld [vmem:[%s5961_s26 + $0x20] sm:$0xff] }
 0x5f6   : > { %v5621_v22 = vpop.f32.mrf.mxu1 }
 0x5f7   : > { %v2999_v61 = vpop.f32.mrf.mxu0  ;;  %v3088_v29 = vadd.f32 %v5621_v22, %v5611_v47 }
 0x5f8   : > { %v3079_v5 = vpop.f32.mrf.mxu1 }
 0x5f9   : > { %v5614_v46 = vpop.f32.mrf.mxu0  ;;  %v3080_v0 = vadd.f32 %v3079_v5, %v2999_v61 }
 0x5fa   : > { %v5624_v20 = vpop.f32.mrf.mxu1 }
 0x5fb   : > { %v3012_v12 = vpop.f32.mrf.mxu0  ;;  %v3101_v19 = vadd.f32 %v5624_v20, %v5614_v46  ;;  %v3333_v20 = vld [vmem:[%s5961_s26 + $0x38] sm:$0xff] }
 0x5fc   : > { %v3092_v42 = vpop.f32.mrf.mxu1 }
 0x5fd   : > { %v5615_v34 = vpop.f32.mrf.mxu0  ;;  %v3093_v26 = vadd.f32 %v3092_v42, %v3012_v12 }
 0x5fe   : > { %v5625_v49 = vpop.f32.mrf.mxu1 }
 0x5ff   : > { %v3015_v14 = vpop.f32.mrf.mxu0  ;;  %v3104_v52 = vadd.f32 %v5625_v49, %v5615_v34 }
 0x600   : > { %v3095_v6 = vpop.f32.mrf.mxu1 }
 0x601   : > { %v5630_v33 = vpop.f32.mrf.mxu0  ;;  %v3096_v48 = vadd.f32 %v3095_v6, %v3015_v14  ;;  %v3331_v6 = vld [vmem:[%s5961_s26 + $0x28] sm:$0xff] }
 0x602   : > { %v5640_v24 = vpop.f32.mrf.mxu1  ;;  %v3203_v39 = vadd.f32 %v5630_v33, %v3085_v2 }
 0x603   : > { %v3170_v9 = vpop.f32.mrf.mxu0 }
 0x604   : > { %v3272_v1 = vpop.f32.mrf.mxu1  ;;  %v3305_v23 = vadd.f32 %v5640_v24, %v3203_v39  ;;  %v3201_v8 = vadd.f32 %v3170_v9, %v3077_v60 }
 0x605   : > { %v5631_v56 = vpop.f32.mrf.mxu0 }
 0x606   : > { %v5641_v57 = vpop.f32.mrf.mxu1  ;;  %v3320_v38 = vadd.f32 %v7034_v43, %v3305_v23  ;;  %v3303_v18 = vadd.f32 %v3272_v1, %v3201_v8  ;;  %v3204_v30 = vadd.f32 %v5631_v56, %v3088_v29 }
 0x607   : > { %v3173_v25 = vpop.f32.mrf.mxu0 }
 0x608   : > { %v3275_v44 = vpop.f32.mrf.mxu1  ;;  %v3336_v37 = vadd.f32 %v3328_v32, %v3320_v38  ;;  %v3318_v51 = vadd.f32 %v7034_v43, %v3303_v18  ;;  %v3306_v45 = vadd.f32 %v5641_v57, %v3204_v30  ;;  %v3202_v58 = vadd.f32 %v3173_v25, %v3080_v0 }
 0x609   : > { %v5634_v55 = vpop.f32.mrf.mxu0 }
 0x60a   : > { %v5644_v36 = vpop.f32.mrf.mxu1  ;;  %3344 = vst.msk [vmem:[%s7042_s28 + $0x10] sm:$0xff] %vm412_vm0, %v3336_v37  ;;  %v3334_v10 = vadd.f32 %v3326_v17, %v3318_v51  ;;  %v3321_v15 = vadd.f32 %v7034_v43, %v3306_v45  ;;  %v3304_v31 = vadd.f32 %v3275_v44, %v3202_v58  ;;  %v3207_v53 = vadd.f32 %v5634_v55, %v3101_v19  ;;  %v5045_v55 = vld [vmem:[%s5961_s26 + $0x60] sm:$0xff] }
 0x60b   : > { %v3186_v63 = vpop.f32.mrf.mxu0 }
 0x60c   : > { %v3288_v50 = vpop.f32.mrf.mxu1  ;;  %3342 = vst.msk [vmem:[%s7042_s28] sm:$0xff] %vm412_vm0, %v3334_v10  ;;  %v3337_v27 = vadd.f32 %v3329_v13, %v3321_v15  ;;  %v3319_v11 = vadd.f32 %v7034_v43, %v3304_v31  ;;  %v3309_v16 = vadd.f32 %v5644_v36, %v3207_v53  ;;  %v3205_v40 = vadd.f32 %v3186_v63, %v3093_v26  ;;  %v5043_v63 = vld [vmem:[%s5961_s26 + $0x50] sm:$0xff] }
 0x60d   : > { %v5635_v21 = vpop.f32.mrf.mxu0 }
 0x60e   : > { %v5645_v54 = vpop.f32.mrf.mxu1  ;;  %3345 = vst.msk [vmem:[%s7042_s28 + $0x18] sm:$0xff] %vm412_vm0, %v3337_v27  ;;  %v3335_v4 = vadd.f32 %v3327_v59, %v3319_v11  ;;  %v3324_v35 = vadd.f32 %v7034_v43, %v3309_v16  ;;  %v3307_v7 = vadd.f32 %v3288_v50, %v3205_v40  ;;  %v3208_v3 = vadd.f32 %v5635_v21, %v3104_v52  ;;  %v5046_v21 = vld [vmem:[%s5961_s26 + $0x68] sm:$0xff] }
 0x60f   : > { %v3189_v41 = vpop.f32.mrf.mxu0 }
 0x610   : > { %v3291_v47 = vpop.f32.mrf.mxu1  ;;  %3343 = vst.msk [vmem:[%s7042_s28 + $0x8] sm:$0xff] %vm412_vm0, %v3335_v4  ;;  %v3340_v22 = vadd.f32 %v3332_v28, %v3324_v35  ;;  %v3322_v61 = vadd.f32 %v7034_v43, %v3307_v7  ;;  %v3310_v5 = vadd.f32 %v5645_v54, %v3208_v3  ;;  %v3206_v46 = vadd.f32 %v3189_v41, %v3096_v48 }
 0x611   : > { %v5650_v12 = vpop.f32.mrf.mxu0 }
 0x612   : > { %v5660_v42 = vpop.f32.mrf.mxu1  ;;  %3348 = vst.msk [vmem:[%s7042_s28 + $0x30] sm:$0xff] %vm412_vm0, %v3340_v22  ;;  %v3338_v34 = vadd.f32 %v3330_v62, %v3322_v61  ;;  %v3325_v49 = vadd.f32 %v7034_v43, %v3310_v5  ;;  %v3308_v14 = vadd.f32 %v3291_v47, %v3206_v46  ;;  %v5044_v47 = vld [vmem:[%s5961_s26 + $0x58] sm:$0xff] }
 0x613   : > { %v3427_v2 = vpop.f32.mrf.mxu0  ;;  %v3516_v19 = vadd.f32 %v5660_v42, %v5650_v12 }
 0x614   : > { %v3507_v33 = vpop.f32.mrf.mxu1  ;;  %3346 = vst.msk [vmem:[%s7042_s28 + $0x20] sm:$0xff] %vm412_vm0, %v3338_v34  ;;  %v3341_v24 = vadd.f32 %v3333_v20, %v3325_v49  ;;  %v3323_v60 = vadd.f32 %v7034_v43, %v3308_v14  ;;  %v5049_v34 = vld [vmem:[%s5961_s26 + $0x80] sm:$0xff] }
 0x615   : > { %v5651_v39 = vpop.f32.mrf.mxu0  ;;  %v3508_v44 = vadd.f32 %v3507_v33, %v3427_v2 }
 0x616   : > { %v5661_v9 = vpop.f32.mrf.mxu1  ;;  %3349 = vst.msk [vmem:[%s7042_s28 + $0x38] sm:$0xff] %vm412_vm0, %v3341_v24  ;;  %v3339_v1 = vadd.f32 %v3331_v6, %v3323_v60  ;;  %v5047_v60 = vld [vmem:[%s5961_s26 + $0x70] sm:$0xff] }
 0x617   : > { %v3430_v29 = vpop.f32.mrf.mxu0  ;;  %v3519_v58 = vadd.f32 %v5661_v9, %v5651_v39 }
 0x618   : > { %v3510_v23 = vpop.f32.mrf.mxu1  ;;  %3347 = vst.msk [vmem:[%s7042_s28 + $0x28] sm:$0xff] %vm412_vm0, %v3339_v1 }
 0x619   : > { %v5654_v8 = vpop.f32.mrf.mxu0  ;;  %v3511_v15 = vadd.f32 %v3510_v23, %v3430_v29 }
 0x61a   : > { %v5664_v32 = vpop.f32.mrf.mxu1 }
 0x61b   : > { %v3443_v56 = vpop.f32.mrf.mxu0  ;;  %v3532_v59 = vadd.f32 %v5664_v32, %v5654_v8  ;;  %v5050_v32 = vld [vmem:[%s5961_s26 + $0x88] sm:$0xff] }
 0x61c   : > { %v3523_v57 = vpop.f32.mrf.mxu1 }
 0x61d   : > { %v5655_v0 = vpop.f32.mrf.mxu0  ;;  %v3524_v28 = vadd.f32 %v3523_v57, %v3443_v56 }
 0x61e   : > { %v5665_v38 = vpop.f32.mrf.mxu1 }
 0x61f   : > { %v3446_v18 = vpop.f32.mrf.mxu0  ;;  %v3535_v41 = vadd.f32 %v5665_v38, %v5655_v0 }
 0x620   : > { %v3526_v30 = vpop.f32.mrf.mxu1 }
 0x621   : > { %v5670_v17 = vpop.f32.mrf.mxu0  ;;  %v3527_v42 = vadd.f32 %v3526_v30, %v3446_v18  ;;  %v5048_v30 = vld [vmem:[%s5961_s26 + $0x78] sm:$0xff] }
 0x622   : > { %v5680_v25 = vpop.f32.mrf.mxu1  ;;  %v3634_v37 = vadd.f32 %v5670_v17, %v3516_v19 }
 0x623   : > { %v3601_v51 = vpop.f32.mrf.mxu0 }
 0x624   : > { %v3703_v45 = vpop.f32.mrf.mxu1  ;;  %v3736_v26 = vadd.f32 %v5680_v25, %v3634_v37  ;;  %v3632_v13 = vadd.f32 %v3601_v51, %v3508_v44 }
 0x625   : > { %v5671_v36 = vpop.f32.mrf.mxu0 }
 0x626   : > { %v5681_v10 = vpop.f32.mrf.mxu1  ;;  %v3751_v31 = vadd.f32 %v7034_v43, %v3736_v26  ;;  %v3734_v53 = vadd.f32 %v3703_v45, %v3632_v13  ;;  %v3635_v52 = vadd.f32 %v5671_v36, %v3519_v58 }
 0x627   : > { %v3604_v50 = vpop.f32.mrf.mxu0 }
 0x628   : > { %v3706_v27 = vpop.f32.mrf.mxu1  ;;  %v3767_v11 = vadd.f32 %v5045_v55, %v3751_v31  ;;  %v3749_v16 = vadd.f32 %v7034_v43, %v3734_v53  ;;  %v3737_v40 = vadd.f32 %v5681_v10, %v3635_v52  ;;  %v3633_v48 = vadd.f32 %v3604_v50, %v3511_v15 }
 0x629   : > { %v5674_v54 = vpop.f32.mrf.mxu0 }
 0x62a   : > { %v5684_v4 = vpop.f32.mrf.mxu1  ;;  %5053 = vst.msk [vmem:[%s7042_s28 + $0x50] sm:$0xff] %vm412_vm0, %v3767_v11  ;;  %v3765_v35 = vadd.f32 %v5043_v63, %v3749_v16  ;;  %v3752_v7 = vadd.f32 %v7034_v43, %v3737_v40  ;;  %v3735_v3 = vadd.f32 %v3706_v27, %v3633_v48  ;;  %v3638_v62 = vadd.f32 %v5674_v54, %v3532_v59  ;;  %v5082_v54 = vld [vmem:[%s5961_s26 + $0xb0] sm:$0xff] }
 0x62b   : > { %v3617_v22 = vpop.f32.mrf.mxu0 }
 0x62c   : > { %v3719_v61 = vpop.f32.mrf.mxu1  ;;  %5051 = vst.msk [vmem:[%s7042_s28 + $0x40] sm:$0xff] %vm412_vm0, %v3765_v35  ;;  %v3768_v5 = vadd.f32 %v5046_v21, %v3752_v7  ;;  %v3750_v46 = vadd.f32 %v7034_v43, %v3735_v3  ;;  %v3740_v20 = vadd.f32 %v5684_v4, %v3638_v62  ;;  %v3636_v12 = vadd.f32 %v3617_v22, %v3524_v28  ;;  %v5080_v22 = vld [vmem:[%s5961_s26 + $0xa0] sm:$0xff] }
 0x62d   : > { %v5675_v49 = vpop.f32.mrf.mxu0 }
 0x62e   : > { %v5685_v14 = vpop.f32.mrf.mxu1  ;;  %5054 = vst.msk [vmem:[%s7042_s28 + $0x58] sm:$0xff] %vm412_vm0, %v3768_v5  ;;  %v3766_v6 = vadd.f32 %v5044_v47, %v3750_v46  ;;  %v3755_v2 = vadd.f32 %v7034_v43, %v3740_v20  ;;  %v3738_v33 = vadd.f32 %v3719_v61, %v3636_v12  ;;  %v3639_v24 = vadd.f32 %v5675_v49, %v3535_v41  ;;  %v5083_v49 = vld [vmem:[%s5961_s26 + $0xb8] sm:$0xff] }
 0x62f   : > { %v3620_v39 = vpop.f32.mrf.mxu0 }
 0x630   : > { %v3722_v9 = vpop.f32.mrf.mxu1  ;;  %5052 = vst.msk [vmem:[%s7042_s28 + $0x48] sm:$0xff] %vm412_vm0, %v3766_v6  ;;  %v3771_v1 = vadd.f32 %v5049_v34, %v3755_v2  ;;  %v3753_v29 = vadd.f32 %v7034_v43, %v3738_v33  ;;  %v3741_v23 = vadd.f32 %v5685_v14, %v3639_v24  ;;  %v3637_v8 = vadd.f32 %v3620_v39, %v3527_v42 }
 0x631   : > { %v5690_v56 = vpop.f32.mrf.mxu0 }
 0x632   : > { %v5700_v57 = vpop.f32.mrf.mxu1  ;;  %5057 = vst.msk [vmem:[%s7042_s28 + $0x70] sm:$0xff] %vm412_vm0, %v3771_v1  ;;  %v3769_v0 = vadd.f32 %v5047_v60, %v3753_v29  ;;  %v3756_v38 = vadd.f32 %v7034_v43, %v3741_v23  ;;  %v3739_v18 = vadd.f32 %v3722_v9, %v3637_v8  ;;  %v5081_v9 = vld [vmem:[%s5961_s26 + $0xa8] sm:$0xff] }
 0x633   : > { %v3859_v19 = vpop.f32.mrf.mxu0  ;;  %v3948_v59 = vadd.f32 %v5700_v57, %v5690_v56 }
 0x634   : > { %v3939_v17 = vpop.f32.mrf.mxu1  ;;  %5055 = vst.msk [vmem:[%s7042_s28 + $0x60] sm:$0xff] %vm412_vm0, %v3769_v0  ;;  %v3772_v25 = vadd.f32 %v5050_v32, %v3756_v38  ;;  %v3754_v44 = vadd.f32 %v7034_v43, %v3739_v18  ;;  %v5086_v0 = vld [vmem:[%s5961_s26 + $0xd0] sm:$0xff] }
 0x635   : > { %v5691_v37 = vpop.f32.mrf.mxu0  ;;  %v3940_v27 = vadd.f32 %v3939_v17, %v3859_v19 }
 0x636   : > { %v5701_v51 = vpop.f32.mrf.mxu1  ;;  %5058 = vst.msk [vmem:[%s7042_s28 + $0x78] sm:$0xff] %vm412_vm0, %v3772_v25  ;;  %v3770_v45 = vadd.f32 %v5048_v30, %v3754_v44  ;;  %v5084_v44 = vld [vmem:[%s5961_s26 + $0xc0] sm:$0xff] }
 0x637   : > { %v3862_v58 = vpop.f32.mrf.mxu0  ;;  %v3951_v48 = vadd.f32 %v5701_v51, %v5691_v37 }
 0x638   : > { %v3942_v26 = vpop.f32.mrf.mxu1  ;;  %5056 = vst.msk [vmem:[%s7042_s28 + $0x68] sm:$0xff] %vm412_vm0, %v3770_v45 }
 0x639   : > { %v5694_v13 = vpop.f32.mrf.mxu0  ;;  %v3943_v7 = vadd.f32 %v3942_v26, %v3862_v58 }
 0x63a   : > { %v5704_v55 = vpop.f32.mrf.mxu1 }
 0x63b   : > { %v3875_v36 = vpop.f32.mrf.mxu0  ;;  %v3964_v47 = vadd.f32 %v5704_v55, %v5694_v13  ;;  %v5087_v55 = vld [vmem:[%s5961_s26 + $0xd8] sm:$0xff] }
 0x63c   : > { %v3955_v10 = vpop.f32.mrf.mxu1 }
 0x63d   : > { %v5695_v15 = vpop.f32.mrf.mxu0  ;;  %v3956_v34 = vadd.f32 %v3955_v10, %v3875_v36 }
 0x63e   : > { %v5705_v31 = vpop.f32.mrf.mxu1 }
 0x63f   : > { %v3878_v53 = vpop.f32.mrf.mxu0  ;;  %v3967_v39 = vadd.f32 %v5705_v31, %v5695_v15 }
 0x640   : > { %v3958_v52 = vpop.f32.mrf.mxu1 }
 0x641   : > { %v5710_v63 = vpop.f32.mrf.mxu0  ;;  %v3959_v57 = vadd.f32 %v3958_v52, %v3878_v53  ;;  %v5085_v52 = vld [vmem:[%s5961_s26 + $0xc8] sm:$0xff] }
 0x642   : > { %v5720_v50 = vpop.f32.mrf.mxu1  ;;  %v4066_v11 = vadd.f32 %v5710_v63, %v3948_v59 }
 0x643   : > { %v4033_v16 = vpop.f32.mrf.mxu0 }
 0x644   : > { %v4135_v40 = vpop.f32.mrf.mxu1  ;;  %v4168_v28 = vadd.f32 %v5720_v50, %v4066_v11  ;;  %v4064_v21 = vadd.f32 %v4033_v16, %v3940_v27 }
 0x645   : > { %v5711_v4 = vpop.f32.mrf.mxu0 }
 0x646   : > { %v5721_v35 = vpop.f32.mrf.mxu1  ;;  %v4183_v3 = vadd.f32 %v7034_v43, %v4168_v28  ;;  %v4166_v62 = vadd.f32 %v4135_v40, %v4064_v21  ;;  %v4067_v41 = vadd.f32 %v5711_v4, %v3951_v48 }
 0x647   : > { %v4036_v61 = vpop.f32.mrf.mxu0 }
 0x648   : > { %v4138_v5 = vpop.f32.mrf.mxu1  ;;  %v4199_v46 = vadd.f32 %v5082_v54, %v4183_v3  ;;  %v4181_v20 = vadd.f32 %v7034_v43, %v4166_v62  ;;  %v4169_v12 = vadd.f32 %v5721_v35, %v4067_v41  ;;  %v4065_v42 = vadd.f32 %v4036_v61, %v3943_v7 }
 0x649   : > { %v5714_v14 = vpop.f32.mrf.mxu0 }
 0x64a   : > { %v5724_v6 = vpop.f32.mrf.mxu1  ;;  %5090 = vst.msk [vmem:[%s7042_s28 + $0x90] sm:$0xff] %vm412_vm0, %v4199_v46  ;;  %v4197_v2 = vadd.f32 %v5080_v22, %v4181_v20  ;;  %v4184_v33 = vadd.f32 %v7034_v43, %v4169_v12  ;;  %v4167_v24 = vadd.f32 %v4138_v5, %v4065_v42  ;;  %v4070_v60 = vadd.f32 %v5714_v14, %v3964_v47  ;;  %v5119_v14 = vld [vmem:[%s5961_s26 + $0x100] sm:$0xff] }
 0x64b   : > { %v4049_v1 = vpop.f32.mrf.mxu0 }
 0x64c   : > { %v4151_v29 = vpop.f32.mrf.mxu1  ;;  %5088 = vst.msk [vmem:[%s7042_s28 + $0x80] sm:$0xff] %vm412_vm0, %v4197_v2  ;;  %v4200_v23 = vadd.f32 %v5083_v49, %v4184_v33  ;;  %v4182_v8 = vadd.f32 %v7034_v43, %v4167_v24  ;;  %v4172_v32 = vadd.f32 %v5724_v6, %v4070_v60  ;;  %v4068_v56 = vadd.f32 %v4049_v1, %v3956_v34  ;;  %v5117_v1 = vld [vmem:[%s5961_s26 + $0xf0] sm:$0xff] }
 0x64d   : > { %v5715_v38 = vpop.f32.mrf.mxu0 }
 0x64e   : > { %v5725_v18 = vpop.f32.mrf.mxu1  ;;  %5091 = vst.msk [vmem:[%s7042_s28 + $0x98] sm:$0xff] %vm412_vm0, %v4200_v23  ;;  %v4198_v30 = vadd.f32 %v5081_v9, %v4182_v8  ;;  %v4187_v19 = vadd.f32 %v7034_v43, %v4172_v32  ;;  %v4170_v17 = vadd.f32 %v4151_v29, %v4068_v56  ;;  %v4071_v25 = vadd.f32 %v5715_v38, %v3967_v39  ;;  %v5120_v38 = vld [vmem:[%s5961_s26 + $0x108] sm:$0xff] }
 0x64f   : > { %v4052_v37 = vpop.f32.mrf.mxu0 }
 0x650   : > { %v4154_v51 = vpop.f32.mrf.mxu1  ;;  %5089 = vst.msk [vmem:[%s7042_s28 + $0x88] sm:$0xff] %vm412_vm0, %v4198_v30  ;;  %v4203_v45 = vadd.f32 %v5086_v0, %v4187_v19  ;;  %v4185_v58 = vadd.f32 %v7034_v43, %v4170_v17  ;;  %v4173_v26 = vadd.f32 %v5725_v18, %v4071_v25  ;;  %v4069_v13 = vadd.f32 %v4052_v37, %v3959_v57 }
 0x651   : > { %v5730_v36 = vpop.f32.mrf.mxu0 }
 0x652   : > { %v5740_v10 = vpop.f32.mrf.mxu1  ;;  %5094 = vst.msk [vmem:[%s7042_s28 + $0xb0] sm:$0xff] %vm412_vm0, %v4203_v45  ;;  %v4201_v15 = vadd.f32 %v5084_v44, %v4185_v58  ;;  %v4188_v31 = vadd.f32 %v7034_v43, %v4173_v26  ;;  %v4171_v53 = vadd.f32 %v4154_v51, %v4069_v13  ;;  %v5118_v51 = vld [vmem:[%s5961_s26 + $0xf8] sm:$0xff] }
 0x653   : > { %v4291_v59 = vpop.f32.mrf.mxu0  ;;  %v4380_v47 = vadd.f32 %v5740_v10, %v5730_v36 }
 0x654   : > { %v4371_v63 = vpop.f32.mrf.mxu1  ;;  %5092 = vst.msk [vmem:[%s7042_s28 + $0xa0] sm:$0xff] %vm412_vm0, %v4201_v15  ;;  %v4204_v50 = vadd.f32 %v5087_v55, %v4188_v31  ;;  %v4186_v27 = vadd.f32 %v7034_v43, %v4171_v53  ;;  %v5123_v15 = vld [vmem:[%s5961_s26 + $0x120] sm:$0xff] }
 0x655   : > { %v5731_v11 = vpop.f32.mrf.mxu0  ;;  %v4372_v5 = vadd.f32 %v4371_v63, %v4291_v59 }
 0x656   : > { %v5741_v16 = vpop.f32.mrf.mxu1  ;;  %5095 = vst.msk [vmem:[%s7042_s28 + $0xb8] sm:$0xff] %vm412_vm0, %v4204_v50  ;;  %v4202_v40 = vadd.f32 %v5085_v52, %v4186_v27  ;;  %v5121_v27 = vld [vmem:[%s5961_s26 + $0x110] sm:$0xff] }
 0x657   : > { %v4294_v48 = vpop.f32.mrf.mxu0  ;;  %v4383_v42 = vadd.f32 %v5741_v16, %v5731_v11 }
 0x658   : > { %v4374_v28 = vpop.f32.mrf.mxu1  ;;  %5093 = vst.msk [vmem:[%s7042_s28 + $0xa8] sm:$0xff] %vm412_vm0, %v4202_v40 }
 0x659   : > { %v5734_v21 = vpop.f32.mrf.mxu0  ;;  %v4375_v33 = vadd.f32 %v4374_v28, %v4294_v48 }
 0x65a   : > { %v5744_v54 = vpop.f32.mrf.mxu1 }
 0x65b   : > { %v4307_v4 = vpop.f32.mrf.mxu0  ;;  %v4396_v9 = vadd.f32 %v5744_v54, %v5734_v21  ;;  %v5124_v21 = vld [vmem:[%s5961_s26 + $0x128] sm:$0xff] }
 0x65c   : > { %v4387_v35 = vpop.f32.mrf.mxu1 }
 0x65d   : > { %v5735_v7 = vpop.f32.mrf.mxu0  ;;  %v4388_v0 = vadd.f32 %v4387_v35, %v4307_v4 }
 0x65e   : > { %v5745_v3 = vpop.f32.mrf.mxu1 }
 0x65f   : > { %v4310_v62 = vpop.f32.mrf.mxu0  ;;  %v4399_v37 = vadd.f32 %v5745_v3, %v5735_v7  ;;  %v5122_v3 = vld [vmem:[%s5961_s26 + $0x118] sm:$0xff] }
 0x660   : > { %v4390_v41 = vpop.f32.mrf.mxu1 }
 0x661   : > { %v5750_v22 = vpop.f32.mrf.mxu0  ;;  %v4391_v10 = vadd.f32 %v4390_v41, %v4310_v62 }
 0x662   : > { %v5760_v61 = vpop.f32.mrf.mxu1  ;;  %v4498_v46 = vadd.f32 %v5750_v22, %v4380_v47 }
 0x663   : > { %v4465_v20 = vpop.f32.mrf.mxu0 }
 0x664   : > { %v4567_v12 = vpop.f32.mrf.mxu1  ;;  %v4600_v34 = vadd.f32 %v5760_v61, %v4498_v46  ;;  %v4496_v49 = vadd.f32 %v4465_v20, %v4372_v5 }
 0x665   : > { %v5751_v6 = vpop.f32.mrf.mxu0 }
 0x666   : > { %v5761_v2 = vpop.f32.mrf.mxu1  ;;  %v4615_v24 = vadd.f32 %v7034_v43, %v4600_v34  ;;  %v4598_v60 = vadd.f32 %v4567_v12, %v4496_v49  ;;  %v4499_v39 = vadd.f32 %v5751_v6, %v4383_v42 }
 0x667   : > { %v4468_v29 = vpop.f32.mrf.mxu0 }
 0x668   : > { %v4570_v23 = vpop.f32.mrf.mxu1  ;;  %v4631_v8 = vadd.f32 %v5119_v14, %v4615_v24  ;;  %v4613_v32 = vadd.f32 %v7034_v43, %v4598_v60  ;;  %v4601_v56 = vadd.f32 %v5761_v2, %v4499_v39  ;;  %v4497_v57 = vadd.f32 %v4468_v29, %v4375_v33 }
 0x669   : > { %v5754_v18 = vpop.f32.mrf.mxu0 }
 0x66a   : > { %v5764_v30 = vpop.f32.mrf.mxu1  ;;  %5127 = vst.msk [vmem:[%s7042_s28 + $0xd0] sm:$0xff] %vm412_vm0, %v4631_v8  ;;  %v4629_v19 = vadd.f32 %v5117_v1, %v4613_v32  ;;  %v4616_v17 = vadd.f32 %v7034_v43, %v4601_v56  ;;  %v4599_v25 = vadd.f32 %v4570_v23, %v4497_v57  ;;  %v4502_v44 = vadd.f32 %v5754_v18, %v4396_v9 }
 0x66b   : > { %v4481_v45 = vpop.f32.mrf.mxu0 }
 0x66c   : > { %v4583_v58 = vpop.f32.mrf.mxu1  ;;  %5125 = vst.msk [vmem:[%s7042_s28 + $0xc0] sm:$0xff] %vm412_vm0, %v4629_v19  ;;  %v4632_v26 = vadd.f32 %v5120_v38, %v4616_v17  ;;  %v4614_v13 = vadd.f32 %v7034_v43, %v4599_v25  ;;  %v4604_v55 = vadd.f32 %v5764_v30, %v4502_v44  ;;  %v4500_v36 = vadd.f32 %v4481_v45, %v4388_v0 }
 0x66d   : > { %v5755_v31 = vpop.f32.mrf.mxu0 }
 0x66e   : > { %v5765_v53 = vpop.f32.mrf.mxu1  ;;  %5128 = vst.msk [vmem:[%s7042_s28 + $0xd8] sm:$0xff] %vm412_vm0, %v4632_v26  ;;  %v4630_v52 = vadd.f32 %v5118_v51, %v4614_v13  ;;  %v4619_v59 = vadd.f32 %v7034_v43, %v4604_v55  ;;  %v4602_v63 = vadd.f32 %v4583_v58, %v4500_v36  ;;  %v4503_v50 = vadd.f32 %v5755_v31, %v4399_v37 }
 0x66f   : > { %v4484_v11 = vpop.f32.mrf.mxu0 }
 0x670   : > { %5126 = vst.msk [vmem:[%s7042_s28 + $0xc8] sm:$0xff] %vm412_vm0, %v4630_v52  ;;  %v4635_v16 = vadd.f32 %v5123_v15, %v4619_v59  ;;  %v4617_v40 = vadd.f32 %v7034_v43, %v4602_v63  ;;  %v4605_v48 = vadd.f32 %v5765_v53, %v4503_v50  ;;  %v4501_v28 = vadd.f32 %v4484_v11, %v4391_v10  ;;  %v4586_v54 = vpop.f32.mrf.mxu1 }
 0x672   : > { %5131 = vst.msk [vmem:[%s7042_s28 + $0xf0] sm:$0xff] %vm412_vm0, %v4635_v16  ;;  %v4633_v4 = vadd.f32 %v5121_v27, %v4617_v40  ;;  %v4620_v35 = vadd.f32 %v7034_v43, %v4605_v48  ;;  %v4603_v7 = vadd.f32 %v4586_v54, %v4501_v28 }
 0x674   : > { %5129 = vst.msk [vmem:[%s7042_s28 + $0xe0] sm:$0xff] %vm412_vm0, %v4633_v4  ;;  %v4636_v62 = vadd.f32 %v5124_v21, %v4620_v35  ;;  %v4618_v41 = vadd.f32 %v7034_v43, %v4603_v7 }
 0x676   : > { %5132 = vst.msk [vmem:[%s7042_s28 + $0xf8] sm:$0xff] %vm412_vm0, %v4636_v62  ;;  %v4634_v47 = vadd.f32 %v5122_v3, %v4618_v41 }
 0x678   : > { %5130 = vst.msk [vmem:[%s7042_s28 + $0xe8] sm:$0xff] %vm412_vm0, %v4634_v47 }
 0x679 PF: > { %s19_s30 = sadd.s32 1, %s5875_s30  }
 0x67a   : > { %p16_p4 = scmp.ge.s32.totalorder %s19_s30, 4  }
 0x67c   :  { %18 = sbr.rel (!%p16_p4) target bundleno = 1 (0x1), region = 127 }

</bundles_post_ra>
